<compile_context>
chip_gen: v6e
topology: v6e:2x2x1
jax: 0.10.0
libtpu: 0.0.40
codegen_flags: <defaults>
</compile_context>

<pallas_src>
import functools

import jax
import jax.numpy as jnp
from jax.experimental import pallas as pl
from jax.experimental.pallas import tpu as pltpu

HIDDEN = 256  # LSTM / MLP hidden size fixed by the module definition


# ----------------------------------------------------------------------------
# Pallas kernel: full forward pass (before_lstm MLP, LSTM recurrence, head)
# ----------------------------------------------------------------------------
def actor_kernel(x_ref, h0_ref, c0_ref,
                 w1_ref, b1_ref, w2_ref, b2_ref,
                 wih_ref, whh_ref, blstm_ref,
                 w3_ref, b3_ref,
                 out_ref, hn_ref, cn_ref,
                 gx_ref):
    T, Bp, obs = x_ref.shape
    H = HIDDEN

    # --- before_lstm: Linear(obs,256)+ReLU, Linear(256,256)+ReLU ------------
    # One batched MXU pass over all T*Bp rows; bf16 operands, f32 accumulate.
    x = x_ref[...].reshape(T * Bp, obs).astype(w1_ref.dtype)
    a1 = jnp.maximum(
        jnp.dot(x, w1_ref[...], preferred_element_type=jnp.float32)
        + b1_ref[...], 0.0)
    a2 = jnp.maximum(
        jnp.dot(a1.astype(w2_ref.dtype), w2_ref[...],
                preferred_element_type=jnp.float32)
        + b2_ref[...], 0.0)

    # --- hoisted input->hidden gate pre-activations (biases folded in) ------
    # gates_x = feats @ W_ih + (b_ih + b_hh), computed once, staged in VMEM.
    gx = (jnp.dot(a2.astype(wih_ref.dtype), wih_ref[...],
                  preferred_element_type=jnp.float32)
          + blstm_ref[...])
    gx_ref[...] = gx.reshape(T, Bp, 4 * H)

    # --- LSTM recurrence, fully unrolled (T static at trace time) -----------
    # Gate order here is [i, f, o, g] (permuted in the wrapper).
    h = h0_ref[...]
    c = c0_ref[...]
    for t in range(T):
        gates = gx_ref[t] + jnp.dot(h.astype(whh_ref.dtype), whh_ref[...],
                                    preferred_element_type=jnp.float32)
        sig = jax.nn.sigmoid(gates[:, 0:3 * H])   # i, f, o in one EUP push
        g = jnp.tanh(gates[:, 3 * H:4 * H])
        i = sig[:, 0:H]
        f = sig[:, H:2 * H]
        o = sig[:, 2 * H:3 * H]
        c = f * c + i * g
        h = o * jnp.tanh(c)

    hn_ref[...] = h
    cn_ref[...] = c

    # --- after_lstm: Linear(256, act_size_padded) + Tanh --------------------
    out_ref[...] = jnp.tanh(
        jnp.dot(h.astype(w3_ref.dtype), w3_ref[...],
                preferred_element_type=jnp.float32) + b3_ref[...])


# ----------------------------------------------------------------------------
# Wrapper
# ----------------------------------------------------------------------------
@functools.partial(jax.jit, static_argnames=())
def model_actor_forward(x, hidden_in, params):
    """x: (B, T, obs) float32 ; hidden_in = (h0, c0) each (1, B, 256).

    Returns (actions (B, act_size), (h_n (1,B,256), c_n (1,B,256))).
    """
    B, T, _ = x.shape
    H = HIDDEN
    Bp = ((B + 7) // 8) * 8          # pad batch to a sublane multiple

    h0 = hidden_in[0].reshape(B, H)
    c0 = hidden_in[1].reshape(B, H)
    x_tm = jnp.transpose(x, (1, 0, 2))  # -> (T, B, obs), time-major
    if Bp != B:
        x_tm = jnp.pad(x_tm, ((0, 0), (0, Bp - B), (0, 0)))
        h0 = jnp.pad(h0, ((0, Bp - B), (0, 0)))
        c0 = jnp.pad(c0, ((0, Bp - B), (0, 0)))

    # One-time gate permutation [i, f, g, o] -> [i, f, o, g] and bias folding.
    def permute_gates(w):
        return jnp.concatenate(
            [w[..., 0:H], w[..., H:2 * H], w[..., 3 * H:4 * H], w[..., 2 * H:3 * H]],
            axis=-1)

    wih = permute_gates(params["wih"]).astype(jnp.bfloat16)
    whh = permute_gates(params["whh"]).astype(jnp.bfloat16)
    blstm = permute_gates(params["bih"] + params["bhh"])          # f32 (1, 4H)

    # Pad head output dim to a lane multiple (128) for a dense store.
    act_size = params["w3"].shape[1]
    Np = ((act_size + 127) // 128) * 128
    w3 = params["w3"]
    b3 = params["b3"]
    if Np != act_size:
        w3 = jnp.pad(w3, ((0, 0), (0, Np - act_size)))
        b3 = jnp.pad(b3, ((0, 0), (0, Np - act_size)))

    # bf16 MXU operands; biases stay f32 (added after f32 accumulation).
    w1 = params["w1"].astype(jnp.bfloat16)
    w2 = params["w2"].astype(jnp.bfloat16)
    w3 = w3.astype(jnp.bfloat16)

    vmem = pl.BlockSpec(memory_space=pltpu.MemorySpace.VMEM)

    out, hn, cn = pl.pallas_call(
        actor_kernel,
        out_shape=(
            jax.ShapeDtypeStruct((Bp, Np), jnp.float32),
            jax.ShapeDtypeStruct((Bp, H), jnp.float32),
            jax.ShapeDtypeStruct((Bp, H), jnp.float32),
        ),
        in_specs=[vmem] * 12,
        out_specs=(vmem, vmem, vmem),
        scratch_shapes=[pltpu.VMEM((T, Bp, 4 * H), jnp.float32)],
    )(x_tm, h0, c0,
      w1, params["b1"], w2, params["b2"],
      wih, whh, blstm,
      w3, b3)

    out = out[:B, :act_size]
    hn = hn[:B].reshape(1, B, H)
    cn = cn[:B].reshape(1, B, H)
    return out, (hn, cn)


# ----------------------------------------------------------------------------
# Deterministic parameter initialization (PyTorch-style uniform bounds)
# ----------------------------------------------------------------------------
def init_params(key, obs_size, act_size):
    ks = jax.random.split(key, 12)

    def uni(k, shape, fan_in):
        bound = 1.0 / jnp.sqrt(fan_in)
        return jax.random.uniform(k, shape, jnp.float32, -bound, bound)

    params = {
        # before_lstm
        "w1": uni(ks[0], (obs_size, HIDDEN), obs_size),
        "b1": uni(ks[1], (1, HIDDEN), obs_size),
        "w2": uni(ks[2], (HIDDEN, HIDDEN), HIDDEN),
        "b2": uni(ks[3], (1, HIDDEN), HIDDEN),
        # LSTM (PyTorch gate order i, f, g, o), stored transposed: (in, 4H)
        "wih": uni(ks[4], (HIDDEN, 4 * HIDDEN), HIDDEN),
        "whh": uni(ks[5], (HIDDEN, 4 * HIDDEN), HIDDEN),
        "bih": uni(ks[6], (1, 4 * HIDDEN), HIDDEN),
        "bhh": uni(ks[7], (1, 4 * HIDDEN), HIDDEN),
        # after_lstm
        "w3": uni(ks[8], (HIDDEN, act_size), HIDDEN),
        "b3": uni(ks[9], (1, act_size), HIDDEN),
        # logstd parameter exists in the module but is unused in forward()
        "logstd": jnp.zeros((act_size,), jnp.float32),
    }
    return params


# ----------------------------------------------------------------------------
# Pure-JAX reference (f32, original [i, f, g, o] gate order)
# ----------------------------------------------------------------------------
def reference_forward(x, hidden_in, params):
    B, T, _ = x.shape
    H = HIDDEN
    h = hidden_in[0].reshape(B, H)
    c = hidden_in[1].reshape(B, H)
    a = jnp.maximum(x @ params["w1"] + params["b1"], 0.0)
    a = jnp.maximum(a @ params["w2"] + params["b2"], 0.0)
    for t in range(T):
        xt = a[:, t, :]
        gates = xt @ params["wih"] + params["bih"] + h @ params["whh"] + params["bhh"]
        i = jax.nn.sigmoid(gates[:, 0:H])
        f = jax.nn.sigmoid(gates[:, H:2 * H])
        g = jnp.tanh(gates[:, 2 * H:3 * H])
        o = jax.nn.sigmoid(gates[:, 3 * H:4 * H])
        c = f * c + i * g
        h = o * jnp.tanh(c)
    out = jnp.tanh(h @ params["w3"] + params["b3"])
    return out, (h.reshape(1, B, H), c.reshape(1, B, H))


if __name__ == "__main__":
    B, T, OBS, ACT = 2, 8, 32, 4

    key = jax.random.PRNGKey(0)
    k_params, k_x = jax.random.split(key)
    params = init_params(k_params, OBS, ACT)

    x = jax.random.normal(k_x, (B, T, OBS), jnp.float32)
    # update_hidden_state(batch_size): zero (h0, c0)
    hidden_in = (jnp.zeros((1, B, HIDDEN), jnp.float32),
                 jnp.zeros((1, B, HIDDEN), jnp.float32))

    out, (hn, cn) = model_actor_forward(x, hidden_in, params)
    jax.block_until_ready((out, hn, cn))

    ref_out, (ref_hn, ref_cn) = reference_forward(x, hidden_in, params)
    assert out.shape == (B, ACT) and hn.shape == (1, B, HIDDEN) and cn.shape == (1, B, HIDDEN)
    assert jnp.allclose(out, ref_out, atol=5e-2), "action mismatch"
    assert jnp.allclose(hn, ref_hn, atol=5e-2), "h_n mismatch"
    assert jnp.allclose(cn, ref_cn, atol=5e-2), "c_n mismatch"

    print("KERNEL_OK")
</pallas_src>

<mosaic_0001>
module attributes {stable_mosaic.version = 11 : i64} {
  func.func @actor_kernel(%arg0: memref<8x8x32xf32, #tpu.memory_space<vmem>>, %arg1: memref<8x256xf32, #tpu.memory_space<vmem>>, %arg2: memref<8x256xf32, #tpu.memory_space<vmem>>, %arg3: memref<32x256xbf16, #tpu.memory_space<vmem>>, %arg4: memref<1x256xf32, #tpu.memory_space<vmem>>, %arg5: memref<256x256xbf16, #tpu.memory_space<vmem>>, %arg6: memref<1x256xf32, #tpu.memory_space<vmem>>, %arg7: memref<256x1024xbf16, #tpu.memory_space<vmem>>, %arg8: memref<256x1024xbf16, #tpu.memory_space<vmem>>, %arg9: memref<1x1024xf32, #tpu.memory_space<vmem>>, %arg10: memref<256x128xbf16, #tpu.memory_space<vmem>>, %arg11: memref<1x128xf32, #tpu.memory_space<vmem>>, %arg12: memref<8x128xf32, #tpu.memory_space<vmem>>, %arg13: memref<8x256xf32, #tpu.memory_space<vmem>>, %arg14: memref<8x256xf32, #tpu.memory_space<vmem>>, %arg15: memref<8x8x1024xf32, #tpu.memory_space<vmem>>) attributes {dimension_semantics = [], scalar_prefetch = 0 : i64, scratch_operands = 1 : i64, tpu.core_type = #tpu.core_type<tc>} {
    %c0 = arith.constant 0 : index
    %c0_0 = arith.constant 0 : index
    %c0_1 = arith.constant 0 : index
    %0 = vector.load %arg0[%c0, %c0_0, %c0_1] : memref<8x8x32xf32, #tpu.memory_space<vmem>>, vector<8x8x32xf32>
    %1 = vector.shape_cast %0 : vector<8x8x32xf32> to vector<64x32xf32>
    %2 = arith.truncf %1 : vector<64x32xf32> to vector<64x32xbf16>
    %c0_2 = arith.constant 0 : index
    %c0_3 = arith.constant 0 : index
    %3 = vector.load %arg3[%c0_2, %c0_3] : memref<32x256xbf16, #tpu.memory_space<vmem>>, vector<32x256xbf16>
    %cst = arith.constant dense<0.000000e+00> : vector<64x256xf32>
    %4 = tpu.matmul %2, %3, %cst {dimension_numbers = #tpu.dot_dimension_numbers<[1], [0], [0], [1], [0, 0, 1, 1], [], []>} : vector<64x32xbf16>, vector<32x256xbf16>, vector<64x256xf32> -> vector<64x256xf32>
    %c0_4 = arith.constant 0 : index
    %c0_5 = arith.constant 0 : index
    %5 = vector.load %arg4[%c0_4, %c0_5] : memref<1x256xf32, #tpu.memory_space<vmem>>, vector<1x256xf32>
    %6 = vector.broadcast %5 : vector<1x256xf32> to vector<64x256xf32>
    %7 = arith.addf %4, %6 : vector<64x256xf32>
    %cst_6 = arith.constant 0.000000e+00 : f32
    %8 = vector.broadcast %cst_6 : f32 to vector<64x256xf32>
    %9 = arith.maximumf %7, %8 : vector<64x256xf32>
    %10 = arith.truncf %9 : vector<64x256xf32> to vector<64x256xbf16>
    %c0_7 = arith.constant 0 : index
    %c0_8 = arith.constant 0 : index
    %11 = vector.load %arg5[%c0_7, %c0_8] : memref<256x256xbf16, #tpu.memory_space<vmem>>, vector<256x256xbf16>
    %cst_9 = arith.constant dense<0.000000e+00> : vector<64x256xf32>
    %12 = tpu.matmul %10, %11, %cst_9 {dimension_numbers = #tpu.dot_dimension_numbers<[1], [0], [0], [1], [0, 0, 1, 1], [], []>} : vector<64x256xbf16>, vector<256x256xbf16>, vector<64x256xf32> -> vector<64x256xf32>
    %c0_10 = arith.constant 0 : index
    %c0_11 = arith.constant 0 : index
    %13 = vector.load %arg6[%c0_10, %c0_11] : memref<1x256xf32, #tpu.memory_space<vmem>>, vector<1x256xf32>
    %14 = vector.broadcast %13 : vector<1x256xf32> to vector<64x256xf32>
    %15 = arith.addf %12, %14 : vector<64x256xf32>
    %cst_12 = arith.constant 0.000000e+00 : f32
    %16 = vector.broadcast %cst_12 : f32 to vector<64x256xf32>
    %17 = arith.maximumf %15, %16 : vector<64x256xf32>
    %18 = arith.truncf %17 : vector<64x256xf32> to vector<64x256xbf16>
    %c0_13 = arith.constant 0 : index
    %c0_14 = arith.constant 0 : index
    %19 = vector.load %arg7[%c0_13, %c0_14] : memref<256x1024xbf16, #tpu.memory_space<vmem>>, vector<256x1024xbf16>
    %cst_15 = arith.constant dense<0.000000e+00> : vector<64x1024xf32>
    %20 = tpu.matmul %18, %19, %cst_15 {dimension_numbers = #tpu.dot_dimension_numbers<[1], [0], [0], [1], [0, 0, 1, 1], [], []>} : vector<64x256xbf16>, vector<256x1024xbf16>, vector<64x1024xf32> -> vector<64x1024xf32>
    %c0_16 = arith.constant 0 : index
    %c0_17 = arith.constant 0 : index
    %21 = vector.load %arg9[%c0_16, %c0_17] : memref<1x1024xf32, #tpu.memory_space<vmem>>, vector<1x1024xf32>
    %22 = vector.broadcast %21 : vector<1x1024xf32> to vector<64x1024xf32>
    %23 = arith.addf %20, %22 : vector<64x1024xf32>
    %24 = vector.shape_cast %23 : vector<64x1024xf32> to vector<8x8x1024xf32>
    %c0_18 = arith.constant 0 : index
    %c0_19 = arith.constant 0 : index
    %c0_20 = arith.constant 0 : index
    %25 = vector.load %arg15[%c0_18, %c0_19, %c0_20] : memref<8x8x1024xf32, #tpu.memory_space<vmem>>, vector<8x8x1024xf32>
    tpu.vector_store %arg15[%c0_18, %c0_19, %c0_20], %24 {strides = array<i32>} : memref<8x8x1024xf32, #tpu.memory_space<vmem>>, vector<8x8x1024xf32>,
    %c0_21 = arith.constant 0 : index
    %c0_22 = arith.constant 0 : index
    %26 = vector.load %arg1[%c0_21, %c0_22] : memref<8x256xf32, #tpu.memory_space<vmem>>, vector<8x256xf32>
    %c0_23 = arith.constant 0 : index
    %c0_24 = arith.constant 0 : index
    %27 = vector.load %arg2[%c0_23, %c0_24] : memref<8x256xf32, #tpu.memory_space<vmem>>, vector<8x256xf32>
    %c0_25 = arith.constant 0 : index
    %c0_26 = arith.constant 0 : index
    %c0_27 = arith.constant 0 : index
    %28 = vector.load %arg15[%c0_25, %c0_26, %c0_27] : memref<8x8x1024xf32, #tpu.memory_space<vmem>>, vector<1x8x1024xf32>
    %29 = vector.shape_cast %28 : vector<1x8x1024xf32> to vector<8x1024xf32>
    %30 = arith.truncf %26 : vector<8x256xf32> to vector<8x256xbf16>
    %c0_28 = arith.constant 0 : index
    %c0_29 = arith.constant 0 : index
    %31 = vector.load %arg8[%c0_28, %c0_29] : memref<256x1024xbf16, #tpu.memory_space<vmem>>, vector<256x1024xbf16>
    %cst_30 = arith.constant dense<0.000000e+00> : vector<8x1024xf32>
    %32 = tpu.matmul %30, %31, %cst_30 {dimension_numbers = #tpu.dot_dimension_numbers<[1], [0], [0], [1], [0, 0, 1, 1], [], []>} : vector<8x256xbf16>, vector<256x1024xbf16>, vector<8x1024xf32> -> vector<8x1024xf32>
    %33 = arith.addf %29, %32 : vector<8x1024xf32>
    %34 = vector.extract_strided_slice %33 {offsets = [0, 0], sizes = [8, 768], strides = [1, 1]} : vector<8x1024xf32> to vector<8x768xf32>
    %35 = arith.negf %34 : vector<8x768xf32>
    %36 = math.exp %35 : vector<8x768xf32>
    %cst_31 = arith.constant 1.000000e+00 : f32
    %37 = vector.broadcast %cst_31 : f32 to vector<8x768xf32>
    %38 = arith.addf %37, %36 : vector<8x768xf32>
    %39 = arith.divf %37, %38 : vector<8x768xf32>
    %40 = vector.extract_strided_slice %33 {offsets = [0, 768], sizes = [8, 256], strides = [1, 1]} : vector<8x1024xf32> to vector<8x256xf32>
    %41 = math.tanh %40 : vector<8x256xf32>
    %42 = vector.extract_strided_slice %39 {offsets = [0, 0], sizes = [8, 256], strides = [1, 1]} : vector<8x768xf32> to vector<8x256xf32>
    %43 = vector.extract_strided_slice %39 {offsets = [0, 256], sizes = [8, 256], strides = [1, 1]} : vector<8x768xf32> to vector<8x256xf32>
    %44 = vector.extract_strided_slice %39 {offsets = [0, 512], sizes = [8, 256], strides = [1, 1]} : vector<8x768xf32> to vector<8x256xf32>
    %45 = arith.mulf %43, %27 : vector<8x256xf32>
    %46 = arith.mulf %42, %41 : vector<8x256xf32>
    %47 = arith.addf %45, %46 : vector<8x256xf32>
    %48 = math.tanh %47 : vector<8x256xf32>
    %49 = arith.mulf %44, %48 : vector<8x256xf32>
    %c1 = arith.constant 1 : index
    %c0_32 = arith.constant 0 : index
    %c0_33 = arith.constant 0 : index
    %50 = vector.load %arg15[%c1, %c0_32, %c0_33] : memref<8x8x1024xf32, #tpu.memory_space<vmem>>, vector<1x8x1024xf32>
    %51 = vector.shape_cast %50 : vector<1x8x1024xf32> to vector<8x1024xf32>
    %52 = arith.truncf %49 : vector<8x256xf32> to vector<8x256xbf16>
    %c0_34 = arith.constant 0 : index
    %c0_35 = arith.constant 0 : index
    %53 = vector.load %arg8[%c0_34, %c0_35] : memref<256x1024xbf16, #tpu.memory_space<vmem>>, vector<256x1024xbf16>
    %cst_36 = arith.constant dense<0.000000e+00> : vector<8x1024xf32>
    %54 = tpu.matmul %52, %53, %cst_36 {dimension_numbers = #tpu.dot_dimension_numbers<[1], [0], [0], [1], [0, 0, 1, 1], [], []>} : vector<8x256xbf16>, vector<256x1024xbf16>, vector<8x1024xf32> -> vector<8x1024xf32>
    %55 = arith.addf %51, %54 : vector<8x1024xf32>
    %56 = vector.extract_strided_slice %55 {offsets = [0, 0], sizes = [8, 768], strides = [1, 1]} : vector<8x1024xf32> to vector<8x768xf32>
    %57 = arith.negf %56 : vector<8x768xf32>
    %58 = math.exp %57 : vector<8x768xf32>
    %cst_37 = arith.constant 1.000000e+00 : f32
    %59 = vector.broadcast %cst_37 : f32 to vector<8x768xf32>
    %60 = arith.addf %59, %58 : vector<8x768xf32>
    %61 = arith.divf %59, %60 : vector<8x768xf32>
    %62 = vector.extract_strided_slice %55 {offsets = [0, 768], sizes = [8, 256], strides = [1, 1]} : vector<8x1024xf32> to vector<8x256xf32>
    %63 = math.tanh %62 : vector<8x256xf32>
    %64 = vector.extract_strided_slice %61 {offsets = [0, 0], sizes = [8, 256], strides = [1, 1]} : vector<8x768xf32> to vector<8x256xf32>
    %65 = vector.extract_strided_slice %61 {offsets = [0, 256], sizes = [8, 256], strides = [1, 1]} : vector<8x768xf32> to vector<8x256xf32>
    %66 = vector.extract_strided_slice %61 {offsets = [0, 512], sizes = [8, 256], strides = [1, 1]} : vector<8x768xf32> to vector<8x256xf32>
    %67 = arith.mulf %65, %47 : vector<8x256xf32>
    %68 = arith.mulf %64, %63 : vector<8x256xf32>
    %69 = arith.addf %67, %68 : vector<8x256xf32>
    %70 = math.tanh %69 : vector<8x256xf32>
    %71 = arith.mulf %66, %70 : vector<8x256xf32>
    %c2 = arith.constant 2 : index
    %c0_38 = arith.constant 0 : index
    %c0_39 = arith.constant 0 : index
    %72 = vector.load %arg15[%c2, %c0_38, %c0_39] : memref<8x8x1024xf32, #tpu.memory_space<vmem>>, vector<1x8x1024xf32>
    %73 = vector.shape_cast %72 : vector<1x8x1024xf32> to vector<8x1024xf32>
    %74 = arith.truncf %71 : vector<8x256xf32> to vector<8x256xbf16>
    %c0_40 = arith.constant 0 : index
    %c0_41 = arith.constant 0 : index
    %75 = vector.load %arg8[%c0_40, %c0_41] : memref<256x1024xbf16, #tpu.memory_space<vmem>>, vector<256x1024xbf16>
    %cst_42 = arith.constant dense<0.000000e+00> : vector<8x1024xf32>
    %76 = tpu.matmul %74, %75, %cst_42 {dimension_numbers = #tpu.dot_dimension_numbers<[1], [0], [0], [1], [0, 0, 1, 1], [], []>} : vector<8x256xbf16>, vector<256x1024xbf16>, vector<8x1024xf32> -> vector<8x1024xf32>
    %77 = arith.addf %73, %76 : vector<8x1024xf32>
    %78 = vector.extract_strided_slice %77 {offsets = [0, 0], sizes = [8, 768], strides = [1, 1]} : vector<8x1024xf32> to vector<8x768xf32>
    %79 = arith.negf %78 : vector<8x768xf32>
    %80 = math.exp %79 : vector<8x768xf32>
    %cst_43 = arith.constant 1.000000e+00 : f32
    %81 = vector.broadcast %cst_43 : f32 to vector<8x768xf32>
    %82 = arith.addf %81, %80 : vector<8x768xf32>
    %83 = arith.divf %81, %82 : vector<8x768xf32>
    %84 = vector.extract_strided_slice %77 {offsets = [0, 768], sizes = [8, 256], strides = [1, 1]} : vector<8x1024xf32> to vector<8x256xf32>
    %85 = math.tanh %84 : vector<8x256xf32>
    %86 = vector.extract_strided_slice %83 {offsets = [0, 0], sizes = [8, 256], strides = [1, 1]} : vector<8x768xf32> to vector<8x256xf32>
    %87 = vector.extract_strided_slice %83 {offsets = [0, 256], sizes = [8, 256], strides = [1, 1]} : vector<8x768xf32> to vector<8x256xf32>
    %88 = vector.extract_strided_slice %83 {offsets = [0, 512], sizes = [8, 256], strides = [1, 1]} : vector<8x768xf32> to vector<8x256xf32>
    %89 = arith.mulf %87, %69 : vector<8x256xf32>
    %90 = arith.mulf %86, %85 : vector<8x256xf32>
    %91 = arith.addf %89, %90 : vector<8x256xf32>
    %92 = math.tanh %91 : vector<8x256xf32>
    %93 = arith.mulf %88, %92 : vector<8x256xf32>
    %c3 = arith.constant 3 : index
    %c0_44 = arith.constant 0 : index
    %c0_45 = arith.constant 0 : index
    %94 = vector.load %arg15[%c3, %c0_44, %c0_45] : memref<8x8x1024xf32, #tpu.memory_space<vmem>>, vector<1x8x1024xf32>
    %95 = vector.shape_cast %94 : vector<1x8x1024xf32> to vector<8x1024xf32>
    %96 = arith.truncf %93 : vector<8x256xf32> to vector<8x256xbf16>
    %c0_46 = arith.constant 0 : index
    %c0_47 = arith.constant 0 : index
    %97 = vector.load %arg8[%c0_46, %c0_47] : memref<256x1024xbf16, #tpu.memory_space<vmem>>, vector<256x1024xbf16>
    %cst_48 = arith.constant dense<0.000000e+00> : vector<8x1024xf32>
    %98 = tpu.matmul %96, %97, %cst_48 {dimension_numbers = #tpu.dot_dimension_numbers<[1], [0], [0], [1], [0, 0, 1, 1], [], []>} : vector<8x256xbf16>, vector<256x1024xbf16>, vector<8x1024xf32> -> vector<8x1024xf32>
    %99 = arith.addf %95, %98 : vector<8x1024xf32>
    %100 = vector.extract_strided_slice %99 {offsets = [0, 0], sizes = [8, 768], strides = [1, 1]} : vector<8x1024xf32> to vector<8x768xf32>
    %101 = arith.negf %100 : vector<8x768xf32>
    %102 = math.exp %101 : vector<8x768xf32>
    %cst_49 = arith.constant 1.000000e+00 : f32
    %103 = vector.broadcast %cst_49 : f32 to vector<8x768xf32>
    %104 = arith.addf %103, %102 : vector<8x768xf32>
    %105 = arith.divf %103, %104 : vector<8x768xf32>
    %106 = vector.extract_strided_slice %99 {offsets = [0, 768], sizes = [8, 256], strides = [1, 1]} : vector<8x1024xf32> to vector<8x256xf32>
    %107 = math.tanh %106 : vector<8x256xf32>
    %108 = vector.extract_strided_slice %105 {offsets = [0, 0], sizes = [8, 256], strides = [1, 1]} : vector<8x768xf32> to vector<8x256xf32>
    %109 = vector.extract_strided_slice %105 {offsets = [0, 256], sizes = [8, 256], strides = [1, 1]} : vector<8x768xf32> to vector<8x256xf32>
    %110 = vector.extract_strided_slice %105 {offsets = [0, 512], sizes = [8, 256], strides = [1, 1]} : vector<8x768xf32> to vector<8x256xf32>
    %111 = arith.mulf %109, %91 : vector<8x256xf32>
    %112 = arith.mulf %108, %107 : vector<8x256xf32>
    %113 = arith.addf %111, %112 : vector<8x256xf32>
    %114 = math.tanh %113 : vector<8x256xf32>
    %115 = arith.mulf %110, %114 : vector<8x256xf32>
    %c4 = arith.constant 4 : index
    %c0_50 = arith.constant 0 : index
    %c0_51 = arith.constant 0 : index
    %116 = vector.load %arg15[%c4, %c0_50, %c0_51] : memref<8x8x1024xf32, #tpu.memory_space<vmem>>, vector<1x8x1024xf32>
    %117 = vector.shape_cast %116 : vector<1x8x1024xf32> to vector<8x1024xf32>
    %118 = arith.truncf %115 : vector<8x256xf32> to vector<8x256xbf16>
    %c0_52 = arith.constant 0 : index
    %c0_53 = arith.constant 0 : index
    %119 = vector.load %arg8[%c0_52, %c0_53] : memref<256x1024xbf16, #tpu.memory_space<vmem>>, vector<256x1024xbf16>
    %cst_54 = arith.constant dense<0.000000e+00> : vector<8x1024xf32>
    %120 = tpu.matmul %118, %119, %cst_54 {dimension_numbers = #tpu.dot_dimension_numbers<[1], [0], [0], [1], [0, 0, 1, 1], [], []>} : vector<8x256xbf16>, vector<256x1024xbf16>, vector<8x1024xf32> -> vector<8x1024xf32>
    %121 = arith.addf %117, %120 : vector<8x1024xf32>
    %122 = vector.extract_strided_slice %121 {offsets = [0, 0], sizes = [8, 768], strides = [1, 1]} : vector<8x1024xf32> to vector<8x768xf32>
    %123 = arith.negf %122 : vector<8x768xf32>
    %124 = math.exp %123 : vector<8x768xf32>
    %cst_55 = arith.constant 1.000000e+00 : f32
    %125 = vector.broadcast %cst_55 : f32 to vector<8x768xf32>
    %126 = arith.addf %125, %124 : vector<8x768xf32>
    %127 = arith.divf %125, %126 : vector<8x768xf32>
    %128 = vector.extract_strided_slice %121 {offsets = [0, 768], sizes = [8, 256], strides = [1, 1]} : vector<8x1024xf32> to vector<8x256xf32>
    %129 = math.tanh %128 : vector<8x256xf32>
    %130 = vector.extract_strided_slice %127 {offsets = [0, 0], sizes = [8, 256], strides = [1, 1]} : vector<8x768xf32> to vector<8x256xf32>
    %131 = vector.extract_strided_slice %127 {offsets = [0, 256], sizes = [8, 256], strides = [1, 1]} : vector<8x768xf32> to vector<8x256xf32>
    %132 = vector.extract_strided_slice %127 {offsets = [0, 512], sizes = [8, 256], strides = [1, 1]} : vector<8x768xf32> to vector<8x256xf32>
    %133 = arith.mulf %131, %113 : vector<8x256xf32>
    %134 = arith.mulf %130, %129 : vector<8x256xf32>
    %135 = arith.addf %133, %134 : vector<8x256xf32>
    %136 = math.tanh %135 : vector<8x256xf32>
    %137 = arith.mulf %132, %136 : vector<8x256xf32>
    %c5 = arith.constant 5 : index
    %c0_56 = arith.constant 0 : index
    %c0_57 = arith.constant 0 : index
    %138 = vector.load %arg15[%c5, %c0_56, %c0_57] : memref<8x8x1024xf32, #tpu.memory_space<vmem>>, vector<1x8x1024xf32>
    %139 = vector.shape_cast %138 : vector<1x8x1024xf32> to vector<8x1024xf32>
    %140 = arith.truncf %137 : vector<8x256xf32> to vector<8x256xbf16>
    %c0_58 = arith.constant 0 : index
    %c0_59 = arith.constant 0 : index
    %141 = vector.load %arg8[%c0_58, %c0_59] : memref<256x1024xbf16, #tpu.memory_space<vmem>>, vector<256x1024xbf16>
    %cst_60 = arith.constant dense<0.000000e+00> : vector<8x1024xf32>
    %142 = tpu.matmul %140, %141, %cst_60 {dimension_numbers = #tpu.dot_dimension_numbers<[1], [0], [0], [1], [0, 0, 1, 1], [], []>} : vector<8x256xbf16>, vector<256x1024xbf16>, vector<8x1024xf32> -> vector<8x1024xf32>
    %143 = arith.addf %139, %142 : vector<8x1024xf32>
    %144 = vector.extract_strided_slice %143 {offsets = [0, 0], sizes = [8, 768], strides = [1, 1]} : vector<8x1024xf32> to vector<8x768xf32>
    %145 = arith.negf %144 : vector<8x768xf32>
    %146 = math.exp %145 : vector<8x768xf32>
    %cst_61 = arith.constant 1.000000e+00 : f32
    %147 = vector.broadcast %cst_61 : f32 to vector<8x768xf32>
    %148 = arith.addf %147, %146 : vector<8x768xf32>
    %149 = arith.divf %147, %148 : vector<8x768xf32>
    %150 = vector.extract_strided_slice %143 {offsets = [0, 768], sizes = [8, 256], strides = [1, 1]} : vector<8x1024xf32> to vector<8x256xf32>
    %151 = math.tanh %150 : vector<8x256xf32>
    %152 = vector.extract_strided_slice %149 {offsets = [0, 0], sizes = [8, 256], strides = [1, 1]} : vector<8x768xf32> to vector<8x256xf32>
    %153 = vector.extract_strided_slice %149 {offsets = [0, 256], sizes = [8, 256], strides = [1, 1]} : vector<8x768xf32> to vector<8x256xf32>
    %154 = vector.extract_strided_slice %149 {offsets = [0, 512], sizes = [8, 256], strides = [1, 1]} : vector<8x768xf32> to vector<8x256xf32>
    %155 = arith.mulf %153, %135 : vector<8x256xf32>
    %156 = arith.mulf %152, %151 : vector<8x256xf32>
    %157 = arith.addf %155, %156 : vector<8x256xf32>
    %158 = math.tanh %157 : vector<8x256xf32>
    %159 = arith.mulf %154, %158 : vector<8x256xf32>
    %c6 = arith.constant 6 : index
    %c0_62 = arith.constant 0 : index
    %c0_63 = arith.constant 0 : index
    %160 = vector.load %arg15[%c6, %c0_62, %c0_63] : memref<8x8x1024xf32, #tpu.memory_space<vmem>>, vector<1x8x1024xf32>
    %161 = vector.shape_cast %160 : vector<1x8x1024xf32> to vector<8x1024xf32>
    %162 = arith.truncf %159 : vector<8x256xf32> to vector<8x256xbf16>
    %c0_64 = arith.constant 0 : index
    %c0_65 = arith.constant 0 : index
    %163 = vector.load %arg8[%c0_64, %c0_65] : memref<256x1024xbf16, #tpu.memory_space<vmem>>, vector<256x1024xbf16>
    %cst_66 = arith.constant dense<0.000000e+00> : vector<8x1024xf32>
    %164 = tpu.matmul %162, %163, %cst_66 {dimension_numbers = #tpu.dot_dimension_numbers<[1], [0], [0], [1], [0, 0, 1, 1], [], []>} : vector<8x256xbf16>, vector<256x1024xbf16>, vector<8x1024xf32> -> vector<8x1024xf32>
    %165 = arith.addf %161, %164 : vector<8x1024xf32>
    %166 = vector.extract_strided_slice %165 {offsets = [0, 0], sizes = [8, 768], strides = [1, 1]} : vector<8x1024xf32> to vector<8x768xf32>
    %167 = arith.negf %166 : vector<8x768xf32>
    %168 = math.exp %167 : vector<8x768xf32>
    %cst_67 = arith.constant 1.000000e+00 : f32
    %169 = vector.broadcast %cst_67 : f32 to vector<8x768xf32>
    %170 = arith.addf %169, %168 : vector<8x768xf32>
    %171 = arith.divf %169, %170 : vector<8x768xf32>
    %172 = vector.extract_strided_slice %165 {offsets = [0, 768], sizes = [8, 256], strides = [1, 1]} : vector<8x1024xf32> to vector<8x256xf32>
    %173 = math.tanh %172 : vector<8x256xf32>
    %174 = vector.extract_strided_slice %171 {offsets = [0, 0], sizes = [8, 256], strides = [1, 1]} : vector<8x768xf32> to vector<8x256xf32>
    %175 = vector.extract_strided_slice %171 {offsets = [0, 256], sizes = [8, 256], strides = [1, 1]} : vector<8x768xf32> to vector<8x256xf32>
    %176 = vector.extract_strided_slice %171 {offsets = [0, 512], sizes = [8, 256], strides = [1, 1]} : vector<8x768xf32> to vector<8x256xf32>
    %177 = arith.mulf %175, %157 : vector<8x256xf32>
    %178 = arith.mulf %174, %173 : vector<8x256xf32>
    %179 = arith.addf %177, %178 : vector<8x256xf32>
    %180 = math.tanh %179 : vector<8x256xf32>
    %181 = arith.mulf %176, %180 : vector<8x256xf32>
    %c7 = arith.constant 7 : index
    %c0_68 = arith.constant 0 : index
    %c0_69 = arith.constant 0 : index
    %182 = vector.load %arg15[%c7, %c0_68, %c0_69] : memref<8x8x1024xf32, #tpu.memory_space<vmem>>, vector<1x8x1024xf32>
    %183 = vector.shape_cast %182 : vector<1x8x1024xf32> to vector<8x1024xf32>
    %184 = arith.truncf %181 : vector<8x256xf32> to vector<8x256xbf16>
    %c0_70 = arith.constant 0 : index
    %c0_71 = arith.constant 0 : index
    %185 = vector.load %arg8[%c0_70, %c0_71] : memref<256x1024xbf16, #tpu.memory_space<vmem>>, vector<256x1024xbf16>
    %cst_72 = arith.constant dense<0.000000e+00> : vector<8x1024xf32>
    %186 = tpu.matmul %184, %185, %cst_72 {dimension_numbers = #tpu.dot_dimension_numbers<[1], [0], [0], [1], [0, 0, 1, 1], [], []>} : vector<8x256xbf16>, vector<256x1024xbf16>, vector<8x1024xf32> -> vector<8x1024xf32>
    %187 = arith.addf %183, %186 : vector<8x1024xf32>
    %188 = vector.extract_strided_slice %187 {offsets = [0, 0], sizes = [8, 768], strides = [1, 1]} : vector<8x1024xf32> to vector<8x768xf32>
    %189 = arith.negf %188 : vector<8x768xf32>
    %190 = math.exp %189 : vector<8x768xf32>
    %cst_73 = arith.constant 1.000000e+00 : f32
    %191 = vector.broadcast %cst_73 : f32 to vector<8x768xf32>
    %192 = arith.addf %191, %190 : vector<8x768xf32>
    %193 = arith.divf %191, %192 : vector<8x768xf32>
    %194 = vector.extract_strided_slice %187 {offsets = [0, 768], sizes = [8, 256], strides = [1, 1]} : vector<8x1024xf32> to vector<8x256xf32>
    %195 = math.tanh %194 : vector<8x256xf32>
    %196 = vector.extract_strided_slice %193 {offsets = [0, 0], sizes = [8, 256], strides = [1, 1]} : vector<8x768xf32> to vector<8x256xf32>
    %197 = vector.extract_strided_slice %193 {offsets = [0, 256], sizes = [8, 256], strides = [1, 1]} : vector<8x768xf32> to vector<8x256xf32>
    %198 = vector.extract_strided_slice %193 {offsets = [0, 512], sizes = [8, 256], strides = [1, 1]} : vector<8x768xf32> to vector<8x256xf32>
    %199 = arith.mulf %197, %179 : vector<8x256xf32>
    %200 = arith.mulf %196, %195 : vector<8x256xf32>
    %201 = arith.addf %199, %200 : vector<8x256xf32>
    %202 = math.tanh %201 : vector<8x256xf32>
    %203 = arith.mulf %198, %202 : vector<8x256xf32>
    %c0_74 = arith.constant 0 : index
    %c0_75 = arith.constant 0 : index
    %204 = vector.load %arg13[%c0_74, %c0_75] : memref<8x256xf32, #tpu.memory_space<vmem>>, vector<8x256xf32>
    tpu.vector_store %arg13[%c0_74, %c0_75], %203 {strides = array<i32>} : memref<8x256xf32, #tpu.memory_space<vmem>>, vector<8x256xf32>,
    %c0_76 = arith.constant 0 : index
    %c0_77 = arith.constant 0 : index
    %205 = vector.load %arg14[%c0_76, %c0_77] : memref<8x256xf32, #tpu.memory_space<vmem>>, vector<8x256xf32>
    tpu.vector_store %arg14[%c0_76, %c0_77], %201 {strides = array<i32>} : memref<8x256xf32, #tpu.memory_space<vmem>>, vector<8x256xf32>,
    %206 = arith.truncf %203 : vector<8x256xf32> to vector<8x256xbf16>
    %c0_78 = arith.constant 0 : index
    %c0_79 = arith.constant 0 : index
    %207 = vector.load %arg10[%c0_78, %c0_79] : memref<256x128xbf16, #tpu.memory_space<vmem>>, vector<256x128xbf16>
    %cst_80 = arith.constant dense<0.000000e+00> : vector<8x128xf32>
    %208 = tpu.matmul %206, %207, %cst_80 {dimension_numbers = #tpu.dot_dimension_numbers<[1], [0], [0], [1], [0, 0, 1, 1], [], []>} : vector<8x256xbf16>, vector<256x128xbf16>, vector<8x128xf32> -> vector<8x128xf32>
    %c0_81 = arith.constant 0 : index
    %c0_82 = arith.constant 0 : index
    %209 = vector.load %arg11[%c0_81, %c0_82] : memref<1x128xf32, #tpu.memory_space<vmem>>, vector<1x128xf32>
    %210 = vector.broadcast %209 : vector<1x128xf32> to vector<8x128xf32>
    %211 = arith.addf %208, %210 : vector<8x128xf32>
    %212 = math.tanh %211 : vector<8x128xf32>
    %c0_83 = arith.constant 0 : index
    %c0_84 = arith.constant 0 : index
    %213 = vector.load %arg12[%c0_83, %c0_84] : memref<8x128xf32, #tpu.memory_space<vmem>>, vector<8x128xf32>
    tpu.vector_store %arg12[%c0_83, %c0_84], %212 {strides = array<i32>} : memref<8x128xf32, #tpu.memory_space<vmem>>, vector<8x128xf32>,
    return
  }
}

</mosaic_0001>

<bundles_post_ra>
// kernel: model_actor_forward.1
= control target key start
LH: loop header
LB: loop body
LE: loop exit
PB: predicated region body
PF: predicated region fallthrough
CT: control target
= control target key end

     0   :  { %v5196_v1 = vmov 0   ;;  %vm93_vm0 = vcmask 261120   ;;  %s8054_s3 = inlined_call_operand.vmem [shape: bf16[32,256], index: 3, kind: input, shape index: {}]   ;;  %s8055_s0 = inlined_call_operand.vmem [shape: f32[8,8,32], index: 0, kind: input, shape index: {}]   ;;  %s8056_s5 = inlined_call_operand.vmem [shape: bf16[256,256], index: 5, kind: input, shape index: {}]   ;;  %s8057_s7 = inlined_call_operand.vmem [shape: bf16[256,1024], index: 7, kind: input, shape index: {}]   ;;  %s8058_s4 = inlined_call_operand.vmem [shape: f32[1,256], index: 4, kind: input, shape index: {}]   ;;  %s8059_s6 = inlined_call_operand.vmem [shape: f32[1,256], index: 6, kind: input, shape index: {}]   ;;  %s8060_s8 = inlined_call_operand.vmem [shape: bf16[256,1024], index: 8, kind: input, shape index: {}]   ;;  %s8061_s1 = inlined_call_operand.vmem [shape: f32[8,256], index: 1, kind: input, shape index: {}]   ;;  %s8062_s9 = inlined_call_operand.vmem [shape: f32[1,1024], index: 9, kind: input, shape index: {}]   ;;  %s8063_s2 = inlined_call_operand.vmem [shape: f32[8,256], index: 2, kind: input, shape index: {}]   ;;  %s8064_s10 = inlined_call_operand.vmem [shape: bf16[256,128], index: 10, kind: input, shape index: {}]   ;;  %s8065_s14 = inlined_call_operand.vmem [shape: f32[8,256], index: 14, kind: output, shape index: {2}]   ;;  %s8066_s13 = inlined_call_operand.vmem [shape: f32[8,256], index: 13, kind: output, shape index: {1}]   ;;  %s8067_s11 = inlined_call_operand.vmem [shape: f32[1,128], index: 11, kind: input, shape index: {}]   ;;  %s8068_s12 = inlined_call_operand.vmem [shape: f32[8,128], index: 12, kind: output, shape index: {0}]  }
   0x1   :  { %v4868_v0 = vld [vmem:[%s8054_s3 + $0x14] ss:$8 sps:$4 sm:$0xff]   ;;  %138 = vmatprep.mubr.bf16.mxu0 %v5196_v1  ;;  %v4870_v2 = vld [vmem:[%s8054_s3 + $0x10] ss:$8 sps:$4 sm:$0xff]   ;;  %v4871_v3 = vld [vmem:[%s8054_s3 + $0x4] ss:$8 sps:$4 sm:$0xff]  }
   0x2   :  { %118 = vmatprep.subr.bf16.mxu0 %v4868_v0  ;;  %v4873_v4 = vld [vmem:[%s8054_s3] ss:$8 sps:$4 sm:$0xff]   ;;  %v4874_v8 = vld [vmem:[%s8056_s5 + $0x74] ss:$8 sps:$4 sm:$0xff]   ;;  %v4876_v9 = vld [vmem:[%s8056_s5 + $0x70] ss:$8 sps:$4 sm:$0xff]  }
   0x3   :  { %119 = vmatpush1.bf16.msra.mxu0 %v4870_v2  ;;  %v45_v5 = vld [vmem:[%s8055_s0] sm:$0xff]  ;;  %v46_v6 = vld [vmem:[%s8055_s0 + $0x8] sm:$0xff]  ;;  %407 = vmatprep.subr.bf16.mxu1 %v4874_v8  ;;  %v4880_v12 = vld [vmem:[%s8056_s5 + $0x54] ss:$8 sps:$4 sm:$0xff]  }
   0x4   :  { %120 = vmatprep.subr.bf16.mxu0 %v4871_v3  ;;  %v53_v7 = vpack.c.bf16 %v46_v6, %v45_v5  ;;  %v4877_v10 = vld [vmem:[%s8056_s5 + $0x64] ss:$8 sps:$4 sm:$0xff]   ;;  %408 = vmatpush1.bf16.msra.mxu1 %v4876_v9  ;;  %v4879_v11 = vld [vmem:[%s8056_s5 + $0x60] ss:$8 sps:$4 sm:$0xff]   ;;  %v47_v13 = vld [vmem:[%s8055_s0 + $0x10] sm:$0xff] }
   0x5   :  { %409 = vmatprep.subr.bf16.mxu1 %v4877_v10  ;;  %v48_v14 = vld [vmem:[%s8055_s0 + $0x18] sm:$0xff]  ;;  %v4883_v17 = vld [vmem:[%s8056_s5 + $0x44] ss:$8 sps:$4 sm:$0xff]   ;;  %v4885_v18 = vld [vmem:[%s8056_s5 + $0x40] ss:$8 sps:$4 sm:$0xff]  }
   0x6   :  { %v4882_v15 = vld [vmem:[%s8056_s5 + $0x50] ss:$8 sps:$4 sm:$0xff]   ;;  %v54_v16 = vpack.c.bf16 %v48_v14, %v47_v13  ;;  %v4886_v19 = vld [vmem:[%s8056_s5 + $0x34] ss:$8 sps:$4 sm:$0xff]   ;;  %v49_v20 = vld [vmem:[%s8055_s0 + $0x20] sm:$0xff] }
   0x7   :  { %121 = vmatpush1.bf16.msra.mxu0 %v4873_v4  ;;  %v50_v21 = vld [vmem:[%s8055_s0 + $0x28] sm:$0xff]  ;;  %v4888_v22 = vld [vmem:[%s8056_s5 + $0x30] ss:$8 sps:$4 sm:$0xff]   ;;  %v4892_v26 = vld [vmem:[%s8056_s5 + $0x14] ss:$8 sps:$4 sm:$0xff]  }
   0x8   :  { %410 = vmatpush1.bf16.msra.mxu1 %v4879_v11  ;;  %v55_v23 = vpack.c.bf16 %v50_v21, %v49_v20  ;;  %v4889_v24 = vld [vmem:[%s8056_s5 + $0x24] ss:$8 sps:$4 sm:$0xff]   ;;  %v4891_v25 = vld [vmem:[%s8056_s5 + $0x20] ss:$8 sps:$4 sm:$0xff]   ;;  %v51_v27 = vld [vmem:[%s8055_s0 + $0x30] sm:$0xff] }
   0x9   :  { %411 = vmatprep.subr.bf16.mxu1 %v4880_v12  ;;  %v52_v28 = vld [vmem:[%s8055_s0 + $0x38] sm:$0xff]  ;;  %v4895_v31 = vld [vmem:[%s8056_s5 + $0x4] ss:$8 sps:$4 sm:$0xff]   ;;  %v4897_v32 = vld [vmem:[%s8056_s5] ss:$8 sps:$4 sm:$0xff]  }
   0xa   :  { %4488 = vmatmul.mubr.msk.bf16.vlgmr.msra.gmra.mxu0 %vm93_vm0, %v53_v7  ;;  %v4894_v29 = vld [vmem:[%s8056_s5 + $0x10] ss:$8 sps:$4 sm:$0xff]   ;;  %v56_v30 = vpack.c.bf16 %v52_v28, %v51_v27  ;;  %v4898_v33 = vld [vmem:[%s8056_s5 + $0xf4] ss:$8 sps:$4 sm:$0xff]   ;;  %v4901_v35 = vld [vmem:[%s8056_s5 + $0xe4] ss:$8 sps:$4 sm:$0xff]  }
   0xb   :  { %148 = vmatprep.mubr.bf16.mxu0 %v5196_v1  ;;  %v4900_v34 = vld [vmem:[%s8056_s5 + $0xf0] ss:$8 sps:$4 sm:$0xff]   ;;  %v4903_v36 = vld [vmem:[%s8056_s5 + $0xe0] ss:$8 sps:$4 sm:$0xff]   ;;  %v4904_v37 = vld [vmem:[%s8056_s5 + $0xd4] ss:$8 sps:$4 sm:$0xff]  }
   0xc   :  { %412 = vmatpush1.bf16.msra.mxu1 %v4882_v15  ;;  %v4906_v38 = vld [vmem:[%s8056_s5 + $0xd0] ss:$8 sps:$4 sm:$0xff]   ;;  %v4907_v39 = vld [vmem:[%s8056_s5 + $0xc4] ss:$8 sps:$4 sm:$0xff]   ;;  %v4909_v40 = vld [vmem:[%s8056_s5 + $0xc0] ss:$8 sps:$4 sm:$0xff]  }
   0xd   :  { %413 = vmatprep.subr.bf16.mxu1 %v4883_v17  ;;  %v4910_v41 = vld [vmem:[%s8056_s5 + $0xb4] ss:$8 sps:$4 sm:$0xff]   ;;  %v4912_v42 = vld [vmem:[%s8056_s5 + $0xb0] ss:$8 sps:$4 sm:$0xff]   ;;  %v4913_v43 = vld [vmem:[%s8056_s5 + $0xa4] ss:$8 sps:$4 sm:$0xff]  }
   0xe   :  { %v4915_v44 = vld [vmem:[%s8056_s5 + $0xa0] ss:$8 sps:$4 sm:$0xff]   ;;  %v4916_v45 = vld [vmem:[%s8056_s5 + $0x94] ss:$8 sps:$4 sm:$0xff]   ;;  %v4918_v46 = vld [vmem:[%s8056_s5 + $0x90] ss:$8 sps:$4 sm:$0xff]  }
   0xf   :  { %v4919_v47 = vld [vmem:[%s8056_s5 + $0x84] ss:$8 sps:$4 sm:$0xff]   ;;  %v4921_v48 = vld [vmem:[%s8056_s5 + $0x80] ss:$8 sps:$4 sm:$0xff]  }
  0x10   :  { %414 = vmatpush1.bf16.msra.mxu1 %v4885_v18  ;;  %v560_v49 = vld [vmem:[%s8057_s7 + $0x1c0] sm:$0xff]  ;;  %v5417_v51 = vld [vmem:[%s8057_s7 + $0x1c8] sm:$0xff] }
  0x11   :  { %415 = vmatprep.subr.bf16.mxu1 %v4886_v19  ;;  %v564_v50 = vld [vmem:[%s8057_s7 + $0x1e0] sm:$0xff]  ;;  %v5422_v54 = vld [vmem:[%s8057_s7 + $0x1e8] sm:$0xff] }
  0x12   :  { %4489 = vmatmul.mubr.msk.bf16.gmra.mxu0 %vm93_vm0, %v54_v16  ;;  %v4580_v52 = vcombine.low %v560_v49, %v564_v50  ;;  %v4581_v53 = vcombine.high %v560_v49, %v564_v50  ;;  %v552_v55 = vld [vmem:[%s8057_s7 + $0x180] sm:$0xff]  ;;  %v4582_v57 = vcombine.low %v5417_v51, %v5422_v54  ;;  %v4583_v58 = vcombine.high %v5417_v51, %v5422_v54 }
  0x13   :  { %158 = vmatprep.mubr.bf16.mxu0 %v5196_v1  ;;  %v556_v56 = vld [vmem:[%s8057_s7 + $0x1a0] sm:$0xff] }
  0x14   :  { %416 = vmatpush1.bf16.msra.mxu1 %v4888_v22  ;;  %v4573_v59 = vcombine.high %v552_v55, %v556_v56  ;;  %v544_v60 = vld [vmem:[%s8057_s7 + $0x140] sm:$0xff]  ;;  %1314 = vmatprep.subr.bf16.mxu0 %v4581_v53  ;;  %v4572_v62 = vcombine.low %v552_v55, %v556_v56 }
  0x15   :  { %417 = vmatprep.subr.bf16.mxu1 %v4889_v24  ;;  %v548_v61 = vld [vmem:[%s8057_s7 + $0x160] sm:$0xff]  ;;  %1315 = vmatpush1.bf16.msra.mxu0 %v4580_v52 }
  0x16   :  { %1316 = vmatprep.subr.bf16.mxu0 %v4573_v59  ;;  %v4565_v63 = vcombine.high %v544_v60, %v548_v61  ;;  %v536_v0 = vld [vmem:[%s8057_s7 + $0x100] sm:$0xff]  ;;  %v4564_v2 = vcombine.low %v544_v60, %v548_v61 }
  0x17   :  { %v528_v4 = vld [vmem:[%s8057_s7 + $0xc0] sm:$0xff] }
  0x18   :  { %418 = vmatpush1.bf16.msra.mxu1 %v4891_v25  ;;  %v532_v5 = vld [vmem:[%s8057_s7 + $0xe0] sm:$0xff] }
  0x19   :  { %419 = vmatprep.subr.bf16.mxu1 %v4892_v26  ;;  %1317 = vmatpush1.bf16.msra.mxu0 %v4572_v62  ;;  %v4549_v7 = vcombine.high %v528_v4, %v532_v5  ;;  %v520_v8 = vld [vmem:[%s8057_s7 + $0x80] sm:$0xff]  ;;  %v4548_v10 = vcombine.low %v528_v4, %v532_v5 }
  0x1a   :  { %4490 = vmatmul.mubr.msk.bf16.gmra.mxu0 %vm93_vm0, %v55_v23  ;;  %1318 = vmatprep.subr.bf16.mxu0 %v4565_v63  ;;  %v524_v9 = vld [vmem:[%s8057_s7 + $0xa0] sm:$0xff]  ;;  %v553_v63 = vld [vmem:[%s8057_s7 + $0x188] sm:$0xff] }
  0x1b   :  { %168 = vmatprep.mubr.bf16.mxu0 %v5196_v1  ;;  %v540_v1 = vld [vmem:[%s8057_s7 + $0x120] sm:$0xff]  ;;  %v4541_v11 = vcombine.high %v520_v8, %v524_v9  ;;  %v4540_v14 = vcombine.low %v520_v8, %v524_v9 }
  0x1c   :  { %420 = vmatpush1.bf16.msra.mxu1 %v4894_v29  ;;  %v4557_v3 = vcombine.high %v536_v0, %v540_v1  ;;  %v4556_v6 = vcombine.low %v536_v0, %v540_v1  ;;  %v512_v12 = vld [vmem:[%s8057_s7 + $0x40] sm:$0xff]  ;;  %v557_v0 = vld [vmem:[%s8057_s7 + $0x1a8] sm:$0xff] }
  0x1d   :  { %421 = vmatprep.subr.bf16.mxu1 %v4895_v31  ;;  %1319 = vmatpush1.bf16.msra.mxu0 %v4564_v2  ;;  %v516_v13 = vld [vmem:[%s8057_s7 + $0x60] sm:$0xff]  ;;  %v4575_v8 = vcombine.high %v553_v63, %v557_v0 }
  0x1e   :  { %1320 = vmatprep.subr.bf16.mxu0 %v4557_v3  ;;  %v4533_v15 = vcombine.high %v512_v12, %v516_v13  ;;  %v504_v16 = vld [vmem:[%s8057_s7] sm:$0xff]  ;;  %v4532_v18 = vcombine.low %v512_v12, %v516_v13 }
  0x1f   :  { %v508_v17 = vld [vmem:[%s8057_s7 + $0x20] sm:$0xff] }
  0x20   :  { %422 = vmatpush1.bf16.msra.mxu1 %v4897_v32  ;;  %v4525_v19 = vcombine.high %v504_v16, %v508_v17  ;;  %v624_v20 = vld [vmem:[%s8057_s7 + $0x3c0] sm:$0xff]  ;;  %v4524_v22 = vcombine.low %v504_v16, %v508_v17  ;;  %v4574_v17 = vcombine.low %v553_v63, %v557_v0 }
  0x21   :  { %423 = vmatprep.subr.bf16.mxu1 %v4898_v33  ;;  %1321 = vmatpush1.bf16.msra.mxu0 %v4556_v6  ;;  %v628_v21 = vld [vmem:[%s8057_s7 + $0x3e0] sm:$0xff] }
  0x22   :  { %4491 = vmatmul.mubr.msk.bf16.gmra.mxu0 %vm93_vm0, %v56_v30  ;;  %1322 = vmatprep.subr.bf16.mxu0 %v4549_v7  ;;  %v4645_v23 = vcombine.high %v624_v20, %v628_v21  ;;  %v616_v24 = vld [vmem:[%s8057_s7 + $0x380] sm:$0xff]  ;;  %v4644_v26 = vcombine.low %v624_v20, %v628_v21  ;;  %v537_v21 = vld [vmem:[%s8057_s7 + $0x108] sm:$0xff] }
  0x23   :  { %v620_v25 = vld [vmem:[%s8057_s7 + $0x3a0] sm:$0xff] }
  0x24   :  { %424 = vmatpush2.bf16.msra.mxu1 %v4900_v34  ;;  %v4637_v27 = vcombine.high %v616_v24, %v620_v25  ;;  %v608_v28 = vld [vmem:[%s8057_s7 + $0x340] sm:$0xff]  ;;  %v4636_v30 = vcombine.low %v616_v24, %v620_v25 }
  0x25   :  { %425 = vmatprep.subr.bf16.mxu1 %v4901_v35  ;;  %1323 = vmatpush1.bf16.msra.mxu0 %v4548_v10  ;;  %v612_v29 = vld [vmem:[%s8057_s7 + $0x360] sm:$0xff]  ;;  %v545_v10 = vld [vmem:[%s8057_s7 + $0x148] sm:$0xff] }
  0x26   :  { %1324 = vmatprep.subr.bf16.mxu0 %v4541_v11  ;;  %v4629_v31 = vcombine.high %v608_v28, %v612_v29  ;;  %v600_v32 = vld [vmem:[%s8057_s7 + $0x300] sm:$0xff]  ;;  %v4628_v34 = vcombine.low %v608_v28, %v612_v29  ;;  %v549_v11 = vld [vmem:[%s8057_s7 + $0x168] sm:$0xff] }
  0x27   :  { %v604_v33 = vld [vmem:[%s8057_s7 + $0x320] sm:$0xff]  ;;  %v4566_v54 = vcombine.low %v545_v10, %v549_v11  ;;  %v529_v29 = vld [vmem:[%s8057_s7 + $0xc8] sm:$0xff] }
  0x28   :  { %426 = vmatpush2.bf16.msra.mxu1 %v4903_v36  ;;  %v4621_v35 = vcombine.high %v600_v32, %v604_v33  ;;  %v592_v36 = vld [vmem:[%s8057_s7 + $0x2c0] sm:$0xff] }
  0x29   :  { %427 = vmatprep.subr.bf16.mxu1 %v4904_v37  ;;  %1325 = vmatpush1.bf16.msra.mxu0 %v4540_v14  ;;  %v596_v37 = vld [vmem:[%s8057_s7 + $0x2e0] sm:$0xff] }
  0x2a   :  { %1326 = vmatprep.subr.bf16.mxu0 %v4533_v15 }
  0x2c   :  { %428 = vmatpush2.bf16.msra.mxu1 %v4906_v38  ;;  %v4620_v38 = vcombine.low %v600_v32, %v604_v33 }
  0x2d   :  { %429 = vmatprep.subr.bf16.mxu1 %v4907_v39  ;;  %1327 = vmatpush1.bf16.msra.mxu0 %v4532_v18  ;;  %v4613_v39 = vcombine.high %v592_v36, %v596_v37 }
  0x2e   :  { %1328 = vmatprep.subr.bf16.mxu0 %v4525_v19  ;;  %v4567_v19 = vcombine.high %v545_v10, %v549_v11  ;;  %v629_v10 = vld [vmem:[%s8057_s7 + $0x3e8] sm:$0xff] }
  0x30   :  { %430 = vmatpush2.bf16.msra.mxu1 %v4909_v40  ;;  %v4612_v40 = vcombine.low %v592_v36, %v596_v37 }
  0x31   :  { %431 = vmatprep.subr.bf16.mxu1 %v4910_v41  ;;  %1329 = vmatpush1.bf16.msra.mxu0 %v4524_v22  ;;  %v63_v41 = vlaneseq  ;;  %v541_v22 = vld [vmem:[%s8057_s7 + $0x128] sm:$0xff] }
  0x32   :  { %1330 = vmatprep.subr.bf16.mxu0 %v4645_v23  ;;  %v4558_v36 = vcombine.low %v537_v21, %v541_v22 }
  0x34   :  { %432 = vmatpush2.bf16.msra.mxu1 %v4912_v42  ;;  %v5500_v42 = vshrl.u32 %v63_v41, 7  ;;  %v525_v41 = vld [vmem:[%s8057_s7 + $0xa8] sm:$0xff] }
  0x35   :  { %433 = vmatprep.subr.bf16.mxu1 %v4913_v43  ;;  %1331 = vmatpush2.bf16.msra.mxu0 %v4644_v26 }
  0x36   :  { %1332 = vmatprep.subr.bf16.mxu0 %v4637_v27  ;;  %v5503_v43 = vsub.s32 1, %v5500_v42  ;;  %v4559_v27 = vcombine.high %v537_v21, %v541_v22  ;;  %v601_v21 = vld [vmem:[%s8057_s7 + $0x308] sm:$0xff] }
  0x37   :  { %v605_v22 = vld [vmem:[%s8057_s7 + $0x328] sm:$0xff] }
  0x38   :  { %434 = vmatpush2.bf16.msra.mxu1 %v4915_v44  ;;  %v5506_v44 = vsub.s32 0, %v5500_v42 }
  0x39   :  { %435 = vmatprep.subr.bf16.mxu1 %v4916_v45  ;;  %1333 = vmatpush2.bf16.msra.mxu0 %v4636_v30  ;;  %v61_v45 = vld [vmem:[%s8058_s4] sm:$0x3]  ;;  %v533_v30 = vld [vmem:[%s8057_s7 + $0xe8] sm:$0xff] }
  0x3a   :  { %1334 = vmatprep.subr.bf16.mxu0 %v4629_v31 }
  0x3c   :  { %436 = vmatpush2.bf16.msra.mxu1 %v4918_v46 }
  0x3d   :  { %437 = vmatprep.subr.bf16.mxu1 %v4919_v47  ;;  %1335 = vmatpush2.bf16.msra.mxu0 %v4628_v34  ;;  %v5512_v47 = vrot.slane %v61_v45, %v5503_v43 }
  0x3e   :  { %1336 = vmatprep.subr.bf16.mxu0 %v4621_v35 }
  0x40   :  { %438 = vmatpush2.bf16.msra.mxu1 %v4921_v48  ;;  %v5515_v48 = vrot.slane %v61_v45, %v5506_v44 }
  0x41   :  { %1387 = vmatprep.subr.bf16.mxu1 %v4583_v58  ;;  %1337 = vmatpush2.bf16.msra.mxu0 %v4620_v38  ;;  %v4551_v38 = vcombine.high %v529_v29, %v533_v30 }
  0x42   :  { %1338 = vmatprep.subr.bf16.mxu0 %v4613_v39 }
  0x45   :  { %1339 = vmatpush2.bf16.msra.mxu0 %v4612_v40  ;;  %v521_v40 = vld [vmem:[%s8057_s7 + $0x88] sm:$0xff] }
  0xca   :  { %v140_v46 = vpop.f32.mrf.mxu0 }
  0xcb   :  { %v141_v55 = vadd.f32 %v140_v46, %v5515_v48 }
  0xcc   :  { %v142_v49 = vpop.f32.mrf.mxu0 }
  0xcd   :  { %v143_v52 = vadd.f32 %v142_v49, %v5512_v47  ;;  %v179_v1 = vmax.f32 %v141_v55, 0.0 }
  0xce   :  { %v144_v50 = vpop.f32.mrf.mxu0 }
  0xcf   :  { %v145_v53 = vadd.f32 %v144_v50, %v5515_v48  ;;  %v180_v61 = vmax.f32 %v143_v52, 0.0 }
  0xd0   :  { %v146_v56 = vpop.f32.mrf.mxu0 }
  0xd1   :  { %v147_v58 = vadd.f32 %v146_v56, %v5512_v47  ;;  %v181_v59 = vmax.f32 %v145_v53, 0.0  ;;  %v4550_v53 = vcombine.low %v529_v29, %v533_v30  ;;  %v4543_v56 = vcombine.high %v521_v40, %v525_v41  ;;  %v585_v29 = vld [vmem:[%s8057_s7 + $0x288] sm:$0xff] }
  0xd2   :  { %v150_v60 = vpop.f32.mrf.mxu0 }
  0xd3   :  { %v182_v62 = vmax.f32 %v147_v58, 0.0  ;;  %v151_v2 = vadd.f32 %v150_v60, %v5515_v48  ;;  %v195_v6 = vpack.c.bf16 %v181_v59, %v179_v1  ;;  %v513_v59 = vld [vmem:[%s8057_s7 + $0x48] sm:$0xff] }
  0xd4   :  { %v152_v3 = vpop.f32.mrf.mxu0  ;;  %v517_v60 = vld [vmem:[%s8057_s7 + $0x68] sm:$0xff] }
  0xd5   :  { %v153_v4 = vadd.f32 %v152_v3, %v5512_v47  ;;  %v196_v5 = vpack.c.bf16 %v182_v62, %v180_v61  ;;  %v183_v12 = vmax.f32 %v151_v2, 0.0  ;;  %v4542_v2 = vcombine.low %v521_v40, %v525_v41 }
  0xd6   :  { %v154_v7 = vpop.f32.mrf.mxu0 }
  0xd7   :  { %v155_v9 = vadd.f32 %v154_v7, %v5515_v48  ;;  %439 = vmatprep.mubr.bf16.mxu1 %v196_v5  ;;  %v184_v14 = vmax.f32 %v153_v4, 0.0  ;;  %v505_v4 = vld [vmem:[%s8057_s7 + $0x8] sm:$0xff] }
  0xd8   :  { %v156_v13 = vpop.f32.mrf.mxu0  ;;  %440 = vmatmul.mubr.bf16.vlgmr.msra.gmra.mxu1 %v195_v6  ;;  %v509_v5 = vld [vmem:[%s8057_s7 + $0x28] sm:$0xff] }
  0xd9   :  { %v185_v15 = vmax.f32 %v155_v9, 0.0  ;;  %v157_v16 = vadd.f32 %v156_v13, %v5512_v47  ;;  %1388 = vmatpush1.bf16.msra.mxu1 %v4582_v57  ;;  %v4527_v9 = vcombine.high %v505_v4, %v509_v5  ;;  %v4526_v11 = vcombine.low %v505_v4, %v509_v5  ;;  %v617_v13 = vld [vmem:[%s8057_s7 + $0x388] sm:$0xff] }
  0xda   :  { %v160_v18 = vpop.f32.mrf.mxu0  ;;  %1389 = vmatprep.subr.bf16.mxu1 %v4575_v8  ;;  %v4534_v8 = vcombine.low %v513_v59, %v517_v60 }
  0xdb   :  { %v186_v20 = vmax.f32 %v157_v16, 0.0  ;;  %v197_v23 = vpack.c.bf16 %v185_v15, %v183_v12  ;;  %v161_v24 = vadd.f32 %v160_v18, %v5515_v48  ;;  %v613_v18 = vld [vmem:[%s8057_s7 + $0x368] sm:$0xff] }
  0xdc   :  { %v162_v25 = vpop.f32.mrf.mxu0 }
  0xdd   :  { %v198_v26 = vpack.c.bf16 %v186_v20, %v184_v14  ;;  %v163_v51 = vadd.f32 %v162_v25, %v5512_v47  ;;  %1390 = vmatpush1.bf16.msra.mxu1 %v4574_v17  ;;  %v187_v31 = vmax.f32 %v161_v24, 0.0  ;;  %v621_v14 = vld [vmem:[%s8057_s7 + $0x3a8] sm:$0xff]  ;;  %v4623_v24 = vcombine.high %v601_v21, %v605_v22 }
  0xde   :  { %v164_v57 = vpop.f32.mrf.mxu0  ;;  %1391 = vmatprep.subr.bf16.mxu1 %v4567_v19  ;;  %v4639_v16 = vcombine.high %v617_v13, %v621_v14  ;;  %v609_v17 = vld [vmem:[%s8057_s7 + $0x348] sm:$0xff]  ;;  %v4638_v19 = vcombine.low %v617_v13, %v621_v14  ;;  %v554_v14 = vld [vmem:[%s8057_s7 + $0x190] sm:$0xff] }
  0xdf   :  { %v165_v28 = vadd.f32 %v164_v57, %v5515_v48  ;;  %449 = vmatprep.mubr.bf16.mxu1 %v198_v26  ;;  %v188_v33 = vmax.f32 %v163_v51, 0.0  ;;  %v4631_v20 = vcombine.high %v609_v17, %v613_v18  ;;  %v593_v25 = vld [vmem:[%s8057_s7 + $0x2c8] sm:$0xff]  ;;  %v4622_v51 = vcombine.low %v601_v21, %v605_v22 }
  0xe0   :  { %v166_v32 = vpop.f32.mrf.mxu0  ;;  %450 = vmatmul.mubr.bf16.gmra.mxu1 %v197_v23  ;;  %v4630_v23 = vcombine.low %v609_v17, %v613_v18  ;;  %v597_v26 = vld [vmem:[%s8057_s7 + $0x2e8] sm:$0xff]  ;;  %v558_v17 = vld [vmem:[%s8057_s7 + $0x1b0] sm:$0xff]  ;;  %v555_v18 = vld [vmem:[%s8057_s7 + $0x198] sm:$0xff] }
  0xe1   :  { %v189_v34 = vmax.f32 %v165_v28, 0.0  ;;  %v167_v35 = vadd.f32 %v166_v32, %v5512_v47  ;;  %1392 = vmatpush1.bf16.msra.mxu1 %v4566_v54  ;;  %v4615_v54 = vcombine.high %v593_v25, %v597_v26  ;;  %v4614_v57 = vcombine.low %v593_v25, %v597_v26  ;;  %v588_v28 = vld [vmem:[%s8057_s7 + $0x2a0] sm:$0xff] }
  0xe2   :  { %v170_v37 = vpop.f32.mrf.mxu0  ;;  %1393 = vmatprep.subr.bf16.mxu1 %v4559_v27  ;;  %v584_v27 = vld [vmem:[%s8057_s7 + $0x280] sm:$0xff] }
  0xe3   :  { %v190_v39 = vmax.f32 %v167_v35, 0.0  ;;  %v199_v45 = vpack.c.bf16 %v189_v34, %v187_v31  ;;  %v171_v46 = vadd.f32 %v170_v37, %v5515_v48  ;;  %v4605_v30 = vcombine.high %v584_v27, %v588_v28  ;;  %v589_v31 = vld [vmem:[%s8057_s7 + $0x2a8] sm:$0xff]  ;;  %v576_v35 = vld [vmem:[%s8057_s7 + $0x240] sm:$0xff] }
  0xe4   :  { %v172_v49 = vpop.f32.mrf.mxu0  ;;  %v4604_v32 = vcombine.low %v584_v27, %v588_v28  ;;  %v4607_v34 = vcombine.high %v585_v29, %v589_v31  ;;  %v577_v37 = vld [vmem:[%s8057_s7 + $0x248] sm:$0xff]  ;;  %v550_v28 = vld [vmem:[%s8057_s7 + $0x170] sm:$0xff] }
  0xe5   :  { %v200_v50 = vpack.c.bf16 %v190_v39, %v188_v33  ;;  %v173_v52 = vadd.f32 %v172_v49, %v5512_v47  ;;  %1394 = vmatpush1.bf16.msra.mxu1 %v4558_v36  ;;  %v191_v61 = vmax.f32 %v171_v46, 0.0  ;;  %v4606_v33 = vcombine.low %v585_v29, %v589_v31  ;;  %1340 = vmatprep.subr.bf16.mxu0 %v4605_v30  ;;  %v580_v36 = vld [vmem:[%s8057_s7 + $0x260] sm:$0xff]  ;;  %v581_v39 = vld [vmem:[%s8057_s7 + $0x268] sm:$0xff]  ;;  %v547_v29 = vld [vmem:[%s8057_s7 + $0x158] sm:$0xff] }
  0xe6   :  { %v174_v55 = vpop.f32.mrf.mxu0  ;;  %1395 = vmatprep.subr.bf16.mxu1 %v4551_v38  ;;  %1341 = vmatpush2.bf16.msra.mxu0 %v4604_v32  ;;  %v4597_v38 = vcombine.high %v576_v35, %v580_v36  ;;  %v4596_v40 = vcombine.low %v576_v35, %v580_v36  ;;  %v4598_v41 = vcombine.low %v577_v37, %v581_v39  ;;  %v568_v46 = vld [vmem:[%s8057_s7 + $0x200] sm:$0xff]  ;;  %v551_v30 = vld [vmem:[%s8057_s7 + $0x178] sm:$0xff] }
  0xe7   :  { %v175_v58 = vadd.f32 %v174_v55, %v5515_v48  ;;  %459 = vmatprep.mubr.bf16.mxu1 %v200_v50  ;;  %v192_v63 = vmax.f32 %v173_v52, 0.0  ;;  %v4535_v48 = vcombine.high %v513_v59, %v517_v60  ;;  %v572_v49 = vld [vmem:[%s8057_s7 + $0x220] sm:$0xff]  ;;  %v569_v50 = vld [vmem:[%s8057_s7 + $0x208] sm:$0xff]  ;;  %v562_v59 = vld [vmem:[%s8057_s7 + $0x1d0] sm:$0xff] }
  0xe8   :  { %v176_v62 = vpop.f32.mrf.mxu0  ;;  %460 = vmatmul.mubr.bf16.gmra.mxu1 %v199_v45  ;;  %v4599_v45 = vcombine.high %v577_v37, %v581_v39  ;;  %1342 = vmatprep.subr.bf16.mxu0 %v4597_v38  ;;  %v4589_v52 = vcombine.high %v568_v46, %v572_v49  ;;  %v4588_v55 = vcombine.low %v568_v46, %v572_v49  ;;  %v566_v60 = vld [vmem:[%s8057_s7 + $0x1f0] sm:$0xff]  ;;  %v539_v49 = vld [vmem:[%s8057_s7 + $0x118] sm:$0xff] }
  0xe9   :  { %v193_v0 = vmax.f32 %v175_v58, 0.0  ;;  %v177_v1 = vadd.f32 %v176_v62, %v5512_v47  ;;  %1396 = vmatpush1.bf16.msra.mxu1 %v4550_v53  ;;  %v625_v47 = vld [vmem:[%s8057_s7 + $0x3c8] sm:$0xff]  ;;  %v4585_v62 = vcombine.high %v562_v59, %v566_v60  ;;  %v542_v46 = vld [vmem:[%s8057_s7 + $0x130] sm:$0xff] }
  0xea   :  { %1397 = vmatprep.subr.bf16.mxu1 %v4543_v56  ;;  %v4647_v12 = vcombine.high %v625_v47, %v629_v10  ;;  %v4646_v15 = vcombine.low %v625_v47, %v629_v10  ;;  %1343 = vmatpush2.bf16.msra.mxu0 %v4596_v40  ;;  %v573_v53 = vld [vmem:[%s8057_s7 + $0x228] sm:$0xff]  ;;  %v4571_v40 = vcombine.high %v547_v29, %v551_v30 }
  0xeb   :  { %v194_v3 = vmax.f32 %v177_v1, 0.0  ;;  %v201_v6 = vpack.c.bf16 %v193_v0, %v191_v61  ;;  %v4590_v56 = vcombine.low %v569_v50, %v573_v53  ;;  %v4591_v58 = vcombine.high %v569_v50, %v573_v53  ;;  %1344 = vmatprep.subr.bf16.mxu0 %v4589_v52  ;;  %v563_v61 = vld [vmem:[%s8057_s7 + $0x1d8] sm:$0xff] }
  0xec   :  { %v4584_v0 = vcombine.low %v562_v59, %v566_v60  ;;  %v543_v50 = vld [vmem:[%s8057_s7 + $0x138] sm:$0xff]  ;;  %v4570_v60 = vcombine.low %v547_v29, %v551_v30  ;;  %v514_v29 = vld [vmem:[%s8057_s7 + $0x50] sm:$0xff] }
  0xed   :  { %v202_v7 = vpack.c.bf16 %v194_v3, %v192_v63  ;;  %1398 = vmatpush1.bf16.msra.mxu1 %v4542_v2  ;;  %v567_v63 = vld [vmem:[%s8057_s7 + $0x1f8] sm:$0xff] }
  0xee   :  { %1399 = vmatprep.subr.bf16.mxu1 %v4535_v48  ;;  %1345 = vmatpush2.bf16.msra.mxu0 %v4588_v55  ;;  %v4586_v1 = vcombine.low %v563_v61, %v567_v63  ;;  %v4587_v2 = vcombine.high %v563_v61, %v567_v63  ;;  %v235_v48 = vld [vmem:[%s8059_s6] sm:$0x3]  ;;  %v4563_v63 = vcombine.high %v539_v49, %v543_v50 }
  0xef   :  { %469 = vmatprep.mubr.bf16.mxu1 %v202_v7  ;;  %1460 = vmatprep.subr.bf16.mxu0 %v4585_v62  ;;  %v5660_v4 = vrot.slane %v235_v48, %v5503_v43  ;;  %v5663_v5 = vrot.slane %v235_v48, %v5506_v44  ;;  %v531_v48 = vld [vmem:[%s8057_s7 + $0xd8] sm:$0xff] }
  0xf0   :  { %470 = vmatmul.mubr.bf16.gmra.mxu1 %v201_v6 }
  0xf1   :  { %1400 = vmatpush1.bf16.msra.mxu1 %v4534_v8 }
  0xf2   :  { %1401 = vmatprep.subr.bf16.mxu1 %v4527_v9 }
  0xf5   :  { %1402 = vmatpush1.bf16.msra.mxu1 %v4526_v11 }
  0xf6   :  { %1403 = vmatprep.subr.bf16.mxu1 %v4647_v12 }
  0xf9   :  { %1404 = vmatpush2.bf16.msra.mxu1 %v4646_v15 }
  0xfa   :  { %1405 = vmatprep.subr.bf16.mxu1 %v4639_v16 }
  0xfd   :  { %1406 = vmatpush2.bf16.msra.mxu1 %v4638_v19  ;;  %v559_v19 = vld [vmem:[%s8057_s7 + $0x1b8] sm:$0xff] }
  0xfe   :  { %1407 = vmatprep.subr.bf16.mxu1 %v4631_v20  ;;  %v4578_v37 = vcombine.low %v555_v18, %v559_v19 }
 0x101   :  { %1408 = vmatpush2.bf16.msra.mxu1 %v4630_v23 }
 0x102   :  { %1409 = vmatprep.subr.bf16.mxu1 %v4623_v24 }
 0x105   :  { %1410 = vmatpush2.bf16.msra.mxu1 %v4622_v51  ;;  %v4577_v51 = vcombine.high %v554_v14, %v558_v17 }
 0x106   :  { %1411 = vmatprep.subr.bf16.mxu1 %v4615_v54  ;;  %v4579_v54 = vcombine.high %v555_v18, %v559_v19  ;;  %v523_v18 = vld [vmem:[%s8057_s7 + $0x98] sm:$0xff] }
 0x107   :  { %v527_v19 = vld [vmem:[%s8057_s7 + $0xb8] sm:$0xff] }
 0x109   :  { %1412 = vmatpush2.bf16.msra.mxu1 %v4614_v57  ;;  %v546_v57 = vld [vmem:[%s8057_s7 + $0x150] sm:$0xff] }
 0x10a   :  { %1413 = vmatprep.subr.bf16.mxu1 %v4607_v34  ;;  %v4569_v39 = vcombine.high %v546_v57, %v550_v28 }
 0x10d   :  { %1414 = vmatpush2.bf16.msra.mxu1 %v4606_v33  ;;  %v4576_v33 = vcombine.low %v554_v14, %v558_v17  ;;  %v526_v17 = vld [vmem:[%s8057_s7 + $0xb0] sm:$0xff] }
 0x10e   :  { %1415 = vmatprep.subr.bf16.mxu1 %v4599_v45 }
 0x111   :  { %1416 = vmatpush2.bf16.msra.mxu1 %v4598_v41  ;;  %v538_v41 = vld [vmem:[%s8057_s7 + $0x110] sm:$0xff] }
 0x112   :  { %1417 = vmatprep.subr.bf16.mxu1 %v4591_v58  ;;  %v4561_v62 = vcombine.high %v538_v41, %v542_v46 }
 0x115   :  { %1418 = vmatpush2.bf16.msra.mxu1 %v4590_v56  ;;  %v4568_v56 = vcombine.low %v546_v57, %v550_v28  ;;  %v4547_v28 = vcombine.high %v523_v18, %v527_v19 }
 0x116   :  { %1533 = vmatprep.subr.bf16.mxu1 %v4587_v2  ;;  %v534_v2 = vld [vmem:[%s8057_s7 + $0xf0] sm:$0xff] }
 0x198   :  { %v441_v3 = vpop.f32.mrf.mxu1 }
 0x199   :  { %v442_v47 = vadd.f32 %v441_v3, %v5663_v5  ;;  %v535_v3 = vld [vmem:[%s8057_s7 + $0xf8] sm:$0xff] }
 0x19a   :  { %v443_v6 = vpop.f32.mrf.mxu1  ;;  %v4555_v14 = vcombine.high %v531_v48, %v535_v3 }
 0x19b   :  { %v444_v8 = vadd.f32 %v443_v6, %v5660_v4  ;;  %v480_v20 = vmax.f32 %v442_v47, 0.0 }
 0x19c   :  { %v445_v7 = vpop.f32.mrf.mxu1 }
 0x19d   :  { %v446_v9 = vadd.f32 %v445_v7, %v5663_v5  ;;  %v481_v15 = vmax.f32 %v444_v8, 0.0  ;;  %v4560_v8 = vcombine.low %v538_v41, %v542_v46  ;;  %v506_v46 = vld [vmem:[%s8057_s7 + $0x10] sm:$0xff] }
 0x19e   :  { %v447_v10 = vpop.f32.mrf.mxu1 }
 0x19f   :  { %v448_v11 = vadd.f32 %v447_v10, %v5660_v4  ;;  %v482_v12 = vmax.f32 %v446_v9, 0.0 }
 0x1a0   :  { %v451_v13 = vpop.f32.mrf.mxu1 }
 0x1a1   :  { %v483_v16 = vmax.f32 %v448_v11, 0.0  ;;  %v452_v21 = vadd.f32 %v451_v13, %v5663_v5  ;;  %v5685_v25 = vpack.c.bf16 %v482_v12, %v480_v20  ;;  %v4562_v11 = vcombine.low %v539_v49, %v543_v50  ;;  %v510_v50 = vld [vmem:[%s8057_s7 + $0x30] sm:$0xff] }
 0x1a2   :  { %v453_v22 = vpop.f32.mrf.mxu1 }
 0x1a3   :  { %v5682_v23 = vpack.c.bf16 %v483_v16, %v481_v15  ;;  %v454_v24 = vadd.f32 %v453_v22, %v5660_v4  ;;  %v484_v31 = vmax.f32 %v452_v21, 0.0  ;;  %v522_v15 = vld [vmem:[%s8057_s7 + $0x90] sm:$0xff] }
 0x1a4   :  { %v455_v26 = vpop.f32.mrf.mxu1 }
 0x1a5   :  { %v456_v27 = vadd.f32 %v455_v26, %v5663_v5  ;;  %1346 = vmatprep.mubr.bf16.mxu0 %v5682_v23  ;;  %1419 = vmatprep.mubr.bf16.mxu1 %v5682_v23  ;;  %v485_v34 = vmax.f32 %v454_v24, 0.0 }
 0x1a6   :  { %v457_v32 = vpop.f32.mrf.mxu1  ;;  %1347 = vmatmul.mubr.bf16.vlgmr.msra.gmra.mxu0 %v5685_v25  ;;  %1420 = vmatmul.mubr.bf16.vlgmr.msra.gmra.mxu1 %v5685_v25 }
 0x1a7   :  { %v486_v35 = vmax.f32 %v456_v27, 0.0  ;;  %v458_v36 = vadd.f32 %v457_v32, %v5660_v4  ;;  %1461 = vmatpush1.bf16.msra.mxu0 %v4584_v0  ;;  %1534 = vmatpush1.bf16.msra.mxu1 %v4586_v1  ;;  %v530_v0 = vld [vmem:[%s8057_s7 + $0xd0] sm:$0xff]  ;;  %v4545_v27 = vcombine.high %v522_v15, %v526_v17  ;;  %v515_v32 = vld [vmem:[%s8057_s7 + $0x58] sm:$0xff] }
 0x1a8   :  { %v461_v38 = vpop.f32.mrf.mxu1  ;;  %1462 = vmatprep.subr.bf16.mxu0 %v4577_v51  ;;  %1535 = vmatprep.subr.bf16.mxu1 %v4579_v54  ;;  %v4553_v13 = vcombine.high %v530_v0, %v534_v2  ;;  %v4552_v24 = vcombine.low %v530_v0, %v534_v2  ;;  %v4554_v54 = vcombine.low %v531_v48, %v535_v3  ;;  %v627_v0 = vld [vmem:[%s8057_s7 + $0x3d8] sm:$0xff] }
 0x1a9   :  { %v487_v45 = vmax.f32 %v458_v36, 0.0  ;;  %v5717_v52 = vpack.c.bf16 %v486_v35, %v484_v31  ;;  %v462_v53 = vadd.f32 %v461_v38, %v5663_v5  ;;  %v518_v31 = vld [vmem:[%s8057_s7 + $0x70] sm:$0xff]  ;;  %v4528_v2 = vcombine.low %v506_v46, %v510_v50 }
 0x1aa   :  { %v463_v55 = vpop.f32.mrf.mxu1 }
 0x1ab   :  { %v5720_v58 = vpack.c.bf16 %v487_v45, %v485_v34  ;;  %v464_v59 = vadd.f32 %v463_v55, %v5660_v4  ;;  %1463 = vmatpush1.bf16.msra.mxu0 %v4576_v33  ;;  %1536 = vmatpush1.bf16.msra.mxu1 %v4578_v37  ;;  %v488_v6 = vmax.f32 %v462_v53, 0.0  ;;  %v519_v33 = vld [vmem:[%s8057_s7 + $0x78] sm:$0xff] }
 0x1ac   :  { %v465_v61 = vpop.f32.mrf.mxu1  ;;  %1464 = vmatprep.subr.bf16.mxu0 %v4569_v39  ;;  %1537 = vmatprep.subr.bf16.mxu1 %v4571_v40  ;;  %v4546_v39 = vcombine.low %v523_v18, %v527_v19  ;;  %v4537_v40 = vcombine.high %v514_v29, %v518_v31  ;;  %v4539_v41 = vcombine.high %v515_v32, %v519_v33  ;;  %v511_v53 = vld [vmem:[%s8057_s7 + $0x38] sm:$0xff] }
 0x1ad   :  { %v466_v1 = vadd.f32 %v465_v61, %v5663_v5  ;;  %1356 = vmatprep.mubr.bf16.mxu0 %v5720_v58  ;;  %1429 = vmatprep.mubr.bf16.mxu1 %v5720_v58  ;;  %v489_v9 = vmax.f32 %v464_v59, 0.0  ;;  %v4538_v59 = vcombine.low %v515_v32, %v519_v33  ;;  %v4529_v61 = vcombine.high %v506_v46, %v510_v50  ;;  %v595_v32 = vld [vmem:[%s8057_s7 + $0x2d8] sm:$0xff] }
 0x1ae   :  { %v467_v7 = vpop.f32.mrf.mxu1  ;;  %1357 = vmatmul.mubr.bf16.gmra.mxu0 %v5717_v52  ;;  %1430 = vmatmul.mubr.bf16.gmra.mxu1 %v5717_v52  ;;  %v599_v33 = vld [vmem:[%s8057_s7 + $0x2f8] sm:$0xff] }
 0x1af   :  { %v490_v47 = vmax.f32 %v466_v1, 0.0  ;;  %v468_v10 = vadd.f32 %v467_v7, %v5660_v4  ;;  %1465 = vmatpush1.bf16.msra.mxu0 %v4568_v56  ;;  %1538 = vmatpush1.bf16.msra.mxu1 %v4570_v60  ;;  %v4536_v56 = vcombine.low %v514_v29, %v518_v31  ;;  %v626_v60 = vld [vmem:[%s8057_s7 + $0x3d0] sm:$0xff]  ;;  %v631_v1 = vld [vmem:[%s8057_s7 + $0x3f8] sm:$0xff] }
 0x1b0   :  { %v471_v12 = vpop.f32.mrf.mxu1  ;;  %1466 = vmatprep.subr.bf16.mxu0 %v4561_v62  ;;  %1539 = vmatprep.subr.bf16.mxu1 %v4563_v63  ;;  %v630_v63 = vld [vmem:[%s8057_s7 + $0x3f0] sm:$0xff] }
 0x1b1   :  { %v491_v16 = vmax.f32 %v468_v10, 0.0  ;;  %v5753_v20 = vpack.c.bf16 %v490_v47, %v488_v6  ;;  %v472_v21 = vadd.f32 %v471_v12, %v5663_v5  ;;  %v4649_v3 = vcombine.high %v626_v60, %v630_v63  ;;  %v618_v7 = vld [vmem:[%s8057_s7 + $0x390] sm:$0xff] }
 0x1b2   :  { %v473_v22 = vpop.f32.mrf.mxu1  ;;  %v4651_v6 = vcombine.high %v627_v0, %v631_v1  ;;  %v4648_v47 = vcombine.low %v626_v60, %v630_v63  ;;  %v4650_v10 = vcombine.low %v627_v0, %v631_v1  ;;  %v598_v31 = vld [vmem:[%s8057_s7 + $0x2f0] sm:$0xff] }
 0x1b3   :  { %v5756_v26 = vpack.c.bf16 %v491_v16, %v489_v9  ;;  %v474_v51 = vadd.f32 %v473_v22, %v5660_v4  ;;  %1467 = vmatpush1.bf16.msra.mxu0 %v4560_v8  ;;  %1540 = vmatpush1.bf16.msra.mxu1 %v4562_v11  ;;  %v492_v34 = vmax.f32 %v472_v21, 0.0  ;;  %v622_v8 = vld [vmem:[%s8057_s7 + $0x3b0] sm:$0xff]  ;;  %v619_v9 = vld [vmem:[%s8057_s7 + $0x398] sm:$0xff] }
 0x1b4   :  { %v475_v57 = vpop.f32.mrf.mxu1  ;;  %1468 = vmatprep.subr.bf16.mxu0 %v4553_v13  ;;  %1541 = vmatprep.subr.bf16.mxu1 %v4555_v14  ;;  %v4641_v11 = vcombine.high %v618_v7, %v622_v8  ;;  %v610_v13 = vld [vmem:[%s8057_s7 + $0x350] sm:$0xff]  ;;  %v615_v16 = vld [vmem:[%s8057_s7 + $0x378] sm:$0xff] }
 0x1b5   :  { %v476_v30 = vadd.f32 %v475_v57, %v5663_v5  ;;  %1366 = vmatprep.mubr.bf16.mxu0 %v5756_v26  ;;  %1439 = vmatprep.mubr.bf16.mxu1 %v5756_v26  ;;  %v4544_v5 = vcombine.low %v522_v15, %v526_v17  ;;  %v493_v36 = vmax.f32 %v474_v51, 0.0  ;;  %v614_v14 = vld [vmem:[%s8057_s7 + $0x370] sm:$0xff]  ;;  %v611_v15 = vld [vmem:[%s8057_s7 + $0x358] sm:$0xff]  ;;  %v4640_v17 = vcombine.low %v618_v7, %v622_v8 }
 0x1b6   :  { %v477_v35 = vpop.f32.mrf.mxu1  ;;  %1367 = vmatmul.mubr.bf16.gmra.mxu0 %v5753_v20  ;;  %1440 = vmatmul.mubr.bf16.gmra.mxu1 %v5753_v20  ;;  %v4633_v19 = vcombine.high %v610_v13, %v614_v14  ;;  %v4635_v21 = vcombine.high %v611_v15, %v615_v16  ;;  %v602_v22 = vld [vmem:[%s8057_s7 + $0x310] sm:$0xff]  ;;  %v603_v51 = vld [vmem:[%s8057_s7 + $0x318] sm:$0xff]  ;;  %v4632_v57 = vcombine.low %v610_v13, %v614_v14 }
 0x1b7   :  { %v494_v37 = vmax.f32 %v476_v30, 0.0  ;;  %v478_v38 = vadd.f32 %v477_v35, %v5660_v4  ;;  %1469 = vmatpush1.bf16.msra.mxu0 %v4552_v24  ;;  %1542 = vmatpush1.bf16.msra.mxu1 %v4554_v54  ;;  %v507_v4 = vld [vmem:[%s8057_s7 + $0x18] sm:$0xff]  ;;  %v606_v24 = vld [vmem:[%s8057_s7 + $0x330] sm:$0xff] }
 0x1b8   :  { %1470 = vmatprep.subr.bf16.mxu0 %v4545_v27  ;;  %1543 = vmatprep.subr.bf16.mxu1 %v4547_v28  ;;  %v4531_v62 = vcombine.high %v507_v4, %v511_v53  ;;  %v4530_v48 = vcombine.low %v507_v4, %v511_v53  ;;  %v607_v54 = vld [vmem:[%s8057_s7 + $0x338] sm:$0xff]  ;;  %v4634_v27 = vcombine.low %v611_v15, %v615_v16  ;;  %v594_v30 = vld [vmem:[%s8057_s7 + $0x2d0] sm:$0xff]  ;;  %v1732_v15 = vld [vmem:[%s8060_s8 + $0x180] sm:$0xff] }
 0x1b9   :  { %v495_v45 = vmax.f32 %v478_v38, 0.0  ;;  %v5780_v49 = vpack.c.bf16 %v494_v37, %v492_v34  ;;  %v4625_v28 = vcombine.high %v602_v22, %v606_v24  ;;  %v4627_v29 = vcombine.high %v603_v51, %v607_v54  ;;  %v586_v37 = vld [vmem:[%s8057_s7 + $0x290] sm:$0xff]  ;;  %v1736_v16 = vld [vmem:[%s8060_s8 + $0x1a0] sm:$0xff] }
 0x1ba   :  { %v4624_v34 = vcombine.low %v602_v22, %v606_v24  ;;  %v4626_v35 = vcombine.low %v603_v51, %v607_v54  ;;  %v590_v38 = vld [vmem:[%s8057_s7 + $0x2b0] sm:$0xff]  ;;  %v5929_v22 = vcombine.high %v1732_v15, %v1736_v16  ;;  %v1724_v51 = vld [vmem:[%s8060_s8 + $0x140] sm:$0xff] }
 0x1bb   :  { %v5791_v55 = vpack.c.bf16 %v495_v45, %v493_v36  ;;  %1471 = vmatpush1.bf16.msra.mxu0 %v4544_v5  ;;  %1544 = vmatpush1.bf16.msra.mxu1 %v4546_v39  ;;  %v4617_v5 = vcombine.high %v594_v30, %v598_v31  ;;  %v4619_v36 = vcombine.high %v595_v32, %v599_v33  ;;  %v587_v39 = vld [vmem:[%s8057_s7 + $0x298] sm:$0xff]  ;;  %v578_v4 = vld [vmem:[%s8057_s7 + $0x250] sm:$0xff]  ;;  %v1728_v54 = vld [vmem:[%s8060_s8 + $0x160] sm:$0xff] }
 0x1bc   :  { %1472 = vmatprep.subr.bf16.mxu0 %v4537_v40  ;;  %1545 = vmatprep.subr.bf16.mxu1 %v4539_v41  ;;  %v591_v40 = vld [vmem:[%s8057_s7 + $0x2b8] sm:$0xff]  ;;  %v4616_v41 = vcombine.low %v594_v30, %v598_v31  ;;  %v4618_v45 = vcombine.low %v595_v32, %v599_v33  ;;  %v4609_v46 = vcombine.high %v586_v37, %v590_v38  ;;  %v582_v53 = vld [vmem:[%s8057_s7 + $0x270] sm:$0xff]  ;;  %v1720_v31 = vld [vmem:[%s8060_s8 + $0x120] sm:$0xff] }
 0x1bd   :  { %1376 = vmatprep.mubr.bf16.mxu0 %v5791_v55  ;;  %1449 = vmatprep.mubr.bf16.mxu1 %v5791_v55  ;;  %v4611_v50 = vcombine.high %v587_v39, %v591_v40  ;;  %v4608_v60 = vcombine.low %v586_v37, %v590_v38  ;;  %v570_v0 = vld [vmem:[%s8057_s7 + $0x210] sm:$0xff]  ;;  %8343 = vst [vmem:[#allocation7_spill] sm:$0xff] %v5929_v22  ;;  %v1717_v32 = vld [vmem:[%s8060_s8 + $0x108] sm:$0xff]  ;;  %v1708_v37 = vld [vmem:[%s8060_s8 + $0xc0] sm:$0xff] }
 0x1be   :  { %1377 = vmatmul.mubr.bf16.gmra.mxu0 %v5780_v49  ;;  %1450 = vmatmul.mubr.bf16.gmra.mxu1 %v5780_v49  ;;  %v574_v1 = vld [vmem:[%s8057_s7 + $0x230] sm:$0xff]  ;;  %v1721_v33 = vld [vmem:[%s8060_s8 + $0x128] sm:$0xff]  ;;  %v1712_v38 = vld [vmem:[%s8060_s8 + $0xe0] sm:$0xff] }
 0x1bf   :  { %1473 = vmatpush1.bf16.msra.mxu0 %v4536_v56  ;;  %1546 = vmatpush1.bf16.msra.mxu1 %v4538_v59  ;;  %v579_v56 = vld [vmem:[%s8057_s7 + $0x258] sm:$0xff]  ;;  %v4593_v7 = vcombine.high %v570_v0, %v574_v1 }
 0x1c0   :  { %1492 = vmatprep.mubr.bf16.mxu0 %v5682_v23  ;;  %1565 = vmatprep.mubr.bf16.mxu1 %v5682_v23  ;;  %v623_v23 = vld [vmem:[%s8057_s7 + $0x3b8] sm:$0xff] }
 0x1c1   :  { %1474 = vmatprep.subr.bf16.mxu0 %v4529_v61  ;;  %1547 = vmatprep.subr.bf16.mxu1 %v4531_v62  ;;  %v4643_v12 = vcombine.high %v619_v9, %v623_v23  ;;  %v4642_v18 = vcombine.low %v619_v9, %v623_v23  ;;  %v583_v59 = vld [vmem:[%s8057_s7 + $0x278] sm:$0xff]  ;;  %v4610_v61 = vcombine.low %v587_v39, %v591_v40  ;;  %v1740_v9 = vld [vmem:[%s8060_s8 + $0x1c0] sm:$0xff]  ;;  %v1709_v39 = vld [vmem:[%s8060_s8 + $0xc8] sm:$0xff] }
 0x1c2   :  { %v4601_v62 = vcombine.high %v578_v4, %v582_v53  ;;  %v4603_v63 = vcombine.high %v579_v56, %v583_v59  ;;  %v1744_v23 = vld [vmem:[%s8060_s8 + $0x1e0] sm:$0xff]  ;;  %v1713_v40 = vld [vmem:[%s8060_s8 + $0xe8] sm:$0xff] }
 0x1c3   :  { %1475 = vmatpush1.bf16.msra.mxu0 %v4528_v2  ;;  %1548 = vmatpush1.bf16.msra.mxu1 %v4530_v48  ;;  %v571_v2 = vld [vmem:[%s8057_s7 + $0x218] sm:$0xff]  ;;  %v5907_v13 = vcombine.high %v1740_v9, %v1744_v23 }
 0x1c4   :  { %1476 = vmatprep.subr.bf16.mxu0 %v4649_v3  ;;  %1549 = vmatprep.subr.bf16.mxu1 %v4651_v6  ;;  %v575_v48 = vld [vmem:[%s8057_s7 + $0x238] sm:$0xff]  ;;  %v4600_v3 = vcombine.low %v578_v4, %v582_v53  ;;  %v4602_v6 = vcombine.low %v579_v56, %v583_v59  ;;  %v1701_v4 = vld [vmem:[%s8060_s8 + $0x88] sm:$0xff]  ;;  %v6027_v56 = vcombine.low %v1708_v37, %v1712_v38 }
 0x1c5   :  { %v4595_v8 = vcombine.high %v571_v2, %v575_v48  ;;  %8339 = vst [vmem:[#allocation3_spill] sm:$0xff] %v5907_v13  ;;  %v1705_v53 = vld [vmem:[%s8060_s8 + $0xa8] sm:$0xff]  ;;  %v6029_v59 = vcombine.low %v1709_v39, %v1713_v40 }
 0x1c6   :  { %8357 = vst [vmem:[#allocation21_spill] sm:$0xff] %v6027_v56 }
 0x1c7   :  { %1477 = vmatpush2.bf16.msra.mxu0 %v4648_v47  ;;  %1550 = vmatpush2.bf16.msra.mxu1 %v4650_v10  ;;  %v1741_v47 = vld [vmem:[%s8060_s8 + $0x1c8] sm:$0xff]  ;;  %8358 = vst [vmem:[#allocation22_spill] sm:$0xff] %v6029_v59 }
 0x1c8   :  { %1478 = vmatprep.subr.bf16.mxu0 %v4641_v11  ;;  %1551 = vmatprep.subr.bf16.mxu1 %v4643_v12  ;;  %v1745_v10 = vld [vmem:[%s8060_s8 + $0x1e8] sm:$0xff]  ;;  %v4592_v11 = vcombine.low %v570_v0, %v574_v1  ;;  %v4594_v12 = vcombine.low %v571_v2, %v575_v48  ;;  %v6057_v2 = vcombine.low %v1701_v4, %v1705_v53 }
 0x1c9   :  { %v5909_v14 = vcombine.high %v1741_v47, %v1745_v10  ;;  %v1693_v0 = vld [vmem:[%s8060_s8 + $0x48] sm:$0xff] }
 0x1ca   :  { %v1697_v1 = vld [vmem:[%s8060_s8 + $0x68] sm:$0xff]  ;;  %8362 = vst [vmem:[#allocation26_spill] sm:$0xff] %v6057_v2 }
 0x1cb   :  { %1479 = vmatpush2.bf16.msra.mxu0 %v4640_v17  ;;  %1552 = vmatpush2.bf16.msra.mxu1 %v4642_v18  ;;  %8340 = vst [vmem:[#allocation4_spill] sm:$0xff] %v5909_v14  ;;  %v1733_v17 = vld [vmem:[%s8060_s8 + $0x188] sm:$0xff] }
 0x1cc   :  { %1480 = vmatprep.subr.bf16.mxu0 %v4633_v19  ;;  %1553 = vmatprep.subr.bf16.mxu1 %v4635_v21  ;;  %v1737_v18 = vld [vmem:[%s8060_s8 + $0x1a8] sm:$0xff]  ;;  %v5925_v19 = vcombine.low %v1740_v9, %v1744_v23  ;;  %v5927_v21 = vcombine.low %v1741_v47, %v1745_v10  ;;  %v6086_v10 = vcombine.low %v1693_v0, %v1697_v1 }
 0x1cd   :  { %v5931_v24 = vcombine.high %v1733_v17, %v1737_v18  ;;  %v1671_v48 = vld [vmem:[%s8061_s1 + $0x8] sm:$0xff] }
 0x1ce   :  { %8341 = vst [vmem:[#allocation5_spill] sm:$0xff] %v5925_v19  ;;  %8342 = vst [vmem:[#allocation6_spill] sm:$0xff] %v5927_v21  ;;  %v1689_v9 = vld [vmem:[%s8060_s8 + $0x28] sm:$0xff]  ;;  %v6080_v23 = vpack.c.bf16 %v1671_v48, %v1671_v48  ;;  %v1784_v48 = vld [vmem:[%s8060_s8 + $0x320] sm:$0xff] }
 0x1cf   :  { %1481 = vmatpush2.bf16.msra.mxu0 %v4632_v57  ;;  %1554 = vmatpush2.bf16.msra.mxu1 %v4634_v27  ;;  %8344 = vst [vmem:[#allocation8_spill] sm:$0xff] %v5931_v24  ;;  %v1725_v57 = vld [vmem:[%s8060_s8 + $0x148] sm:$0xff]  ;;  %8366 = vst [vmem:[#allocation30_spill] sm:$0xff] %v6086_v10 }
 0x1d0   :  { %1482 = vmatprep.subr.bf16.mxu0 %v4625_v28  ;;  %1555 = vmatprep.subr.bf16.mxu1 %v4627_v29  ;;  %v1729_v27 = vld [vmem:[%s8060_s8 + $0x168] sm:$0xff]  ;;  %v5953_v28 = vcombine.low %v1733_v17, %v1737_v18  ;;  %v5957_v29 = vcombine.high %v1724_v51, %v1728_v54 }
 0x1d1   :  { %v5959_v30 = vcombine.high %v1725_v57, %v1729_v27  ;;  %v1805_v17 = vld [vmem:[%s8060_s8 + $0x3c8] sm:$0xff] }
 0x1d2   :  { %8346 = vst [vmem:[#allocation10_spill] sm:$0xff] %v5953_v28  ;;  %8347 = vst [vmem:[#allocation11_spill] sm:$0xff] %v5957_v29  ;;  %v1809_v18 = vld [vmem:[%s8060_s8 + $0x3e8] sm:$0xff] }
 0x1d3   :  { %1483 = vmatpush2.bf16.msra.mxu0 %v4624_v34  ;;  %1556 = vmatpush2.bf16.msra.mxu1 %v4626_v35  ;;  %8348 = vst [vmem:[#allocation12_spill] sm:$0xff] %v5959_v30  ;;  %v5975_v34 = vcombine.low %v1724_v51, %v1728_v54  ;;  %v5977_v35 = vcombine.low %v1725_v57, %v1729_v27  ;;  %v1796_v27 = vld [vmem:[%s8060_s8 + $0x380] sm:$0xff] }
 0x1d4   :  { %1484 = vmatprep.subr.bf16.mxu0 %v4617_v5  ;;  %1557 = vmatprep.subr.bf16.mxu1 %v4619_v36  ;;  %v5983_v36 = vcombine.high %v1717_v32, %v1721_v33  ;;  %v6120_v57 = vcombine.high %v1805_v17, %v1809_v18 }
 0x1d5   :  { %8349 = vst [vmem:[#allocation13_spill] sm:$0xff] %v5975_v34  ;;  %8350 = vst [vmem:[#allocation14_spill] sm:$0xff] %v5977_v35 }
 0x1d6   :  { %8352 = vst [vmem:[#allocation16_spill] sm:$0xff] %v5983_v36  ;;  %8372 = vst [vmem:[#allocation36_spill] sm:$0xff] %v6120_v57 }
 0x1d7   :  { %1485 = vmatpush2.bf16.msra.mxu0 %v4616_v41  ;;  %1558 = vmatpush2.bf16.msra.mxu1 %v4618_v45  ;;  %v6005_v41 = vcombine.low %v1717_v32, %v1721_v33  ;;  %v6009_v45 = vcombine.high %v1708_v37, %v1712_v38  ;;  %v1801_v32 = vld [vmem:[%s8060_s8 + $0x3a8] sm:$0xff]  ;;  %v6138_v37 = vcombine.low %v1805_v17, %v1809_v18  ;;  %v1772_v17 = vld [vmem:[%s8060_s8 + $0x2c0] sm:$0xff] }
 0x1d8   :  { %1486 = vmatprep.subr.bf16.mxu0 %v4609_v46  ;;  %1559 = vmatprep.subr.bf16.mxu1 %v4611_v50  ;;  %v6011_v46 = vcombine.high %v1709_v39, %v1713_v40  ;;  %v1704_v50 = vld [vmem:[%s8060_s8 + $0xa0] sm:$0xff] }
 0x1d9   :  { %8354 = vst [vmem:[#allocation18_spill] sm:$0xff] %v6005_v41  ;;  %8355 = vst [vmem:[#allocation19_spill] sm:$0xff] %v6009_v45  ;;  %v1788_v40 = vld [vmem:[%s8060_s8 + $0x340] sm:$0xff] }
 0x1da   :  { %8356 = vst [vmem:[#allocation20_spill] sm:$0xff] %v6011_v46  ;;  %8374 = vst [vmem:[#allocation38_spill] sm:$0xff] %v6138_v37  ;;  %v1776_v18 = vld [vmem:[%s8060_s8 + $0x2e0] sm:$0xff] }
 0x1db   :  { %1487 = vmatpush2.bf16.msra.mxu0 %v4608_v60  ;;  %1560 = vmatpush2.bf16.msra.mxu1 %v4610_v61  ;;  %v6035_v61 = vcombine.high %v1701_v4, %v1705_v53  ;;  %v1793_v4 = vld [vmem:[%s8060_s8 + $0x368] sm:$0xff] }
 0x1dc   :  { %1488 = vmatprep.subr.bf16.mxu0 %v4601_v62  ;;  %1561 = vmatprep.subr.bf16.mxu1 %v4603_v63  ;;  %v1692_v62 = vld [vmem:[%s8060_s8 + $0x40] sm:$0xff] }
 0x1dd   :  { %8360 = vst [vmem:[#allocation24_spill] sm:$0xff] %v6035_v61  ;;  %v1696_v63 = vld [vmem:[%s8060_s8 + $0x60] sm:$0xff] }
 0x1de   :  { %v6084_v47 = vcombine.low %v1692_v62, %v1696_v63 }
 0x1df   :  { %1489 = vmatpush2.bf16.msra.mxu0 %v4600_v3  ;;  %1562 = vmatpush2.bf16.msra.mxu1 %v4602_v6  ;;  %v6064_v3 = vcombine.high %v1692_v62, %v1696_v63  ;;  %v6066_v6 = vcombine.high %v1693_v0, %v1697_v1  ;;  %v1780_v1 = vld [vmem:[%s8060_s8 + $0x300] sm:$0xff] }
 0x1e0   :  { %1490 = vmatprep.subr.bf16.mxu0 %v4593_v7  ;;  %1563 = vmatprep.subr.bf16.mxu1 %v4595_v8  ;;  %v1688_v7 = vld [vmem:[%s8060_s8 + $0x20] sm:$0xff]  ;;  %v1685_v8 = vld [vmem:[%s8060_s8 + $0x8] sm:$0xff]  ;;  %8365 = vst [vmem:[#allocation29_spill] sm:$0xff] %v6084_v47 }
 0x1e1   :  { %8363 = vst [vmem:[#allocation27_spill] sm:$0xff] %v6064_v3  ;;  %8364 = vst [vmem:[#allocation28_spill] sm:$0xff] %v6066_v6  ;;  %v6114_v51 = vcombine.low %v1685_v8, %v1689_v9 }
 0x1e3   :  { %1491 = vmatpush2.bf16.msra.mxu0 %v4592_v11  ;;  %1564 = vmatpush2.bf16.msra.mxu1 %v4594_v12  ;;  %v6092_v12 = vcombine.high %v1685_v8, %v1689_v9  ;;  %8370 = vst [vmem:[#allocation34_spill] sm:$0xff] %v6114_v51 }
 0x1e4   :  { %2452 = vmatprep.subr.bf16.mxu0 %v5907_v13  ;;  %2493 = vmatprep.subr.bf16.mxu1 %v5909_v14 }
 0x1e5   :  { %8368 = vst [vmem:[#allocation32_spill] sm:$0xff] %v6092_v12 }
 0x1e6   :  { %1493 = vmatmul.mubr.bf16.vlgmr.msra.gmra.mxu0 %v5685_v25  ;;  %1566 = vmatmul.mubr.bf16.vlgmr.msra.gmra.mxu1 %v5685_v25  ;;  %v5951_v25 = vcombine.low %v1732_v15, %v1736_v16  ;;  %v1804_v15 = vld [vmem:[%s8060_s8 + $0x3c0] sm:$0xff] }
 0x1e7   :  { %1502 = vmatprep.mubr.bf16.mxu0 %v5720_v58  ;;  %1575 = vmatprep.mubr.bf16.mxu1 %v5720_v58  ;;  %v1716_v58 = vld [vmem:[%s8060_s8 + $0x100] sm:$0xff] }
 0x1e8   :  { %2453 = vmatpush1.bf16.msra.mxu0 %v5925_v19  ;;  %2494 = vmatpush1.bf16.msra.mxu1 %v5927_v21  ;;  %8345 = vst [vmem:[#allocation9_spill] sm:$0xff] %v5951_v25  ;;  %v5981_v5 = vcombine.high %v1716_v58, %v1720_v31  ;;  %v1808_v16 = vld [vmem:[%s8060_s8 + $0x3e0] sm:$0xff] }
 0x1e9   :  { %2454 = vmatprep.subr.bf16.mxu0 %v5929_v22  ;;  %2495 = vmatprep.subr.bf16.mxu1 %v5931_v24  ;;  %v6118_v54 = vcombine.high %v1804_v15, %v1808_v16  ;;  %v6136_v33 = vcombine.low %v1804_v15, %v1808_v16  ;;  %v6190_v15 = vcombine.high %v1780_v1, %v1784_v48 }
 0x1ea   :  { %8351 = vst [vmem:[#allocation15_spill] sm:$0xff] %v5981_v5 }
 0x1eb   :  { %8371 = vst [vmem:[#allocation35_spill] sm:$0xff] %v6118_v54  ;;  %8373 = vst [vmem:[#allocation37_spill] sm:$0xff] %v6136_v33 }
 0x1ec   :  { %2455 = vmatpush1.bf16.msra.mxu0 %v5951_v25  ;;  %2496 = vmatpush1.bf16.msra.mxu1 %v5953_v28  ;;  %8383 = vst [vmem:[#allocation47_spill] sm:$0xff] %v6190_v15 }
 0x1ed   :  { %2456 = vmatprep.subr.bf16.mxu0 %v5957_v29  ;;  %2497 = vmatprep.subr.bf16.mxu1 %v5959_v30 }
 0x1ee   :  { %1503 = vmatmul.mubr.bf16.gmra.mxu0 %v5717_v52  ;;  %1576 = vmatmul.mubr.bf16.gmra.mxu1 %v5717_v52  ;;  %v6003_v52 = vcombine.low %v1716_v58, %v1720_v31  ;;  %v1800_v58 = vld [vmem:[%s8060_s8 + $0x3a0] sm:$0xff]  ;;  %v1797_v31 = vld [vmem:[%s8060_s8 + $0x388] sm:$0xff] }
 0x1ef   :  { %1512 = vmatprep.mubr.bf16.mxu0 %v5756_v26  ;;  %1585 = vmatprep.mubr.bf16.mxu1 %v5756_v26  ;;  %v1700_v26 = vld [vmem:[%s8060_s8 + $0x80] sm:$0xff]  ;;  %v6142_v38 = vcombine.high %v1796_v27, %v1800_v58  ;;  %v6144_v39 = vcombine.high %v1797_v31, %v1801_v32  ;;  %v6160_v53 = vcombine.low %v1796_v27, %v1800_v58  ;;  %v1773_v27 = vld [vmem:[%s8060_s8 + $0x2c8] sm:$0xff] }
 0x1f0   :  { %2457 = vmatpush1.bf16.msra.mxu0 %v5975_v34  ;;  %2498 = vmatpush1.bf16.msra.mxu1 %v5977_v35  ;;  %8353 = vst [vmem:[#allocation17_spill] sm:$0xff] %v6003_v52  ;;  %v6033_v60 = vcombine.high %v1700_v26, %v1704_v50  ;;  %v6162_v62 = vcombine.low %v1797_v31, %v1801_v32  ;;  %v1777_v58 = vld [vmem:[%s8060_s8 + $0x2e8] sm:$0xff] }
 0x1f1   :  { %2458 = vmatprep.subr.bf16.mxu0 %v5981_v5  ;;  %2499 = vmatprep.subr.bf16.mxu1 %v5983_v36  ;;  %8375 = vst [vmem:[#allocation39_spill] sm:$0xff] %v6142_v38  ;;  %8376 = vst [vmem:[#allocation40_spill] sm:$0xff] %v6144_v39  ;;  %v6208_v31 = vcombine.low %v1780_v1, %v1784_v48  ;;  %v1765_v1 = vld [vmem:[%s8060_s8 + $0x288] sm:$0xff] }
 0x1f2   :  { %8359 = vst [vmem:[#allocation23_spill] sm:$0xff] %v6033_v60  ;;  %8377 = vst [vmem:[#allocation41_spill] sm:$0xff] %v6160_v53  ;;  %v1769_v48 = vld [vmem:[%s8060_s8 + $0x2a8] sm:$0xff] }
 0x1f3   :  { %8378 = vst [vmem:[#allocation42_spill] sm:$0xff] %v6162_v62  ;;  %8385 = vst [vmem:[#allocation49_spill] sm:$0xff] %v6208_v31 }
 0x1f4   :  { %2459 = vmatpush1.bf16.msra.mxu0 %v6003_v52  ;;  %2500 = vmatpush1.bf16.msra.mxu1 %v6005_v41 }
 0x1f5   :  { %2460 = vmatprep.subr.bf16.mxu0 %v6009_v45  ;;  %2501 = vmatprep.subr.bf16.mxu1 %v6011_v46 }
 0x1f6   :  { %1513 = vmatmul.mubr.bf16.gmra.mxu0 %v5753_v20  ;;  %1586 = vmatmul.mubr.bf16.gmra.mxu1 %v5753_v20  ;;  %v6055_v20 = vcombine.low %v1700_v26, %v1704_v50  ;;  %v1792_v26 = vld [vmem:[%s8060_s8 + $0x360] sm:$0xff]  ;;  %v1789_v50 = vld [vmem:[%s8060_s8 + $0x348] sm:$0xff] }
 0x1f7   :  { %1522 = vmatprep.mubr.bf16.mxu0 %v5791_v55  ;;  %1595 = vmatprep.mubr.bf16.mxu1 %v5791_v55  ;;  %v1684_v55 = vld [vmem:[%s8060_s8] sm:$0xff]  ;;  %v6166_v63 = vcombine.high %v1788_v40, %v1792_v26  ;;  %v6168_v0 = vcombine.high %v1789_v50, %v1793_v4  ;;  %v6184_v8 = vcombine.low %v1788_v40, %v1792_v26 }
 0x1f8   :  { %2461 = vmatpush1.bf16.msra.mxu0 %v6027_v56  ;;  %2502 = vmatpush1.bf16.msra.mxu1 %v6029_v59  ;;  %8361 = vst [vmem:[#allocation25_spill] sm:$0xff] %v6055_v20  ;;  %v6090_v11 = vcombine.high %v1684_v55, %v1688_v7  ;;  %v6186_v9 = vcombine.low %v1789_v50, %v1793_v4  ;;  %v1764_v50 = vld [vmem:[%s8060_s8 + $0x280] sm:$0xff] }
 0x1f9   :  { %2462 = vmatprep.subr.bf16.mxu0 %v6033_v60  ;;  %2503 = vmatprep.subr.bf16.mxu1 %v6035_v61  ;;  %8379 = vst [vmem:[#allocation43_spill] sm:$0xff] %v6166_v63  ;;  %8380 = vst [vmem:[#allocation44_spill] sm:$0xff] %v6168_v0  ;;  %v6214_v40 = vcombine.high %v1772_v17, %v1776_v18  ;;  %v6216_v26 = vcombine.high %v1773_v27, %v1777_v58  ;;  %v1768_v4 = vld [vmem:[%s8060_s8 + $0x2a0] sm:$0xff] }
 0x1fa   :  { %8367 = vst [vmem:[#allocation31_spill] sm:$0xff] %v6090_v11  ;;  %8381 = vst [vmem:[#allocation45_spill] sm:$0xff] %v6184_v8 }
 0x1fb   :  { %8382 = vst [vmem:[#allocation46_spill] sm:$0xff] %v6186_v9  ;;  %8387 = vst [vmem:[#allocation51_spill] sm:$0xff] %v6214_v40 }
 0x1fc   :  { %2463 = vmatpush1.bf16.msra.mxu0 %v6055_v20  ;;  %2504 = vmatpush1.bf16.msra.mxu1 %v6057_v2  ;;  %8388 = vst [vmem:[#allocation52_spill] sm:$0xff] %v6216_v26 }
 0x1fd   :  { %2464 = vmatprep.subr.bf16.mxu0 %v6064_v3  ;;  %2505 = vmatprep.subr.bf16.mxu1 %v6066_v6 }
 0x1fe   :  { %1523 = vmatmul.mubr.bf16.gmra.mxu0 %v5780_v49  ;;  %1596 = vmatmul.mubr.bf16.gmra.mxu1 %v5780_v49  ;;  %v6112_v49 = vcombine.low %v1684_v55, %v1688_v7  ;;  %v1781_v55 = vld [vmem:[%s8060_s8 + $0x308] sm:$0xff] }
 0x1ff   :  { %2484 = vmatprep.mubr.bf16.mxu0 %v6080_v23  ;;  %2525 = vmatprep.mubr.bf16.mxu1 %v6080_v23  ;;  %v1785_v7 = vld [vmem:[%s8060_s8 + $0x328] sm:$0xff] }
 0x200   :  { %2465 = vmatpush1.bf16.msra.mxu0 %v6084_v47  ;;  %2506 = vmatpush1.bf16.msra.mxu1 %v6086_v10  ;;  %8369 = vst [vmem:[#allocation33_spill] sm:$0xff] %v6112_v49  ;;  %v6192_v16 = vcombine.high %v1781_v55, %v1785_v7  ;;  %v6210_v32 = vcombine.low %v1781_v55, %v1785_v7 }
 0x201   :  { %2466 = vmatprep.subr.bf16.mxu0 %v6090_v11  ;;  %2507 = vmatprep.subr.bf16.mxu1 %v6092_v12  ;;  %v6232_v55 = vcombine.low %v1772_v17, %v1776_v18  ;;  %v6234_v7 = vcombine.low %v1773_v27, %v1777_v58  ;;  %v1757_v17 = vld [vmem:[%s8060_s8 + $0x248] sm:$0xff]  ;;  %v6256_v27 = vcombine.low %v1764_v50, %v1768_v4 }
 0x202   :  { %8384 = vst [vmem:[#allocation48_spill] sm:$0xff] %v6192_v16  ;;  %8386 = vst [vmem:[#allocation50_spill] sm:$0xff] %v6210_v32  ;;  %v1761_v18 = vld [vmem:[%s8060_s8 + $0x268] sm:$0xff]  ;;  %v6258_v58 = vcombine.low %v1765_v1, %v1769_v48 }
 0x203   :  { %8389 = vst [vmem:[#allocation53_spill] sm:$0xff] %v6232_v55  ;;  %8390 = vst [vmem:[#allocation54_spill] sm:$0xff] %v6234_v7 }
 0x204   :  { %2467 = vmatpush1.bf16.msra.mxu0 %v6112_v49  ;;  %2508 = vmatpush1.bf16.msra.mxu1 %v6114_v51  ;;  %8393 = vst [vmem:[#allocation57_spill] sm:$0xff] %v6256_v27  ;;  %8394 = vst [vmem:[#allocation58_spill] sm:$0xff] %v6258_v58 }
 0x205   :  { %2468 = vmatprep.subr.bf16.mxu0 %v6118_v54  ;;  %2509 = vmatprep.subr.bf16.mxu1 %v6120_v57 }
 0x208   :  { %2469 = vmatpush2.bf16.msra.mxu0 %v6136_v33  ;;  %2510 = vmatpush2.bf16.msra.mxu1 %v6138_v37 }
 0x209   :  { %2470 = vmatprep.subr.bf16.mxu0 %v6142_v38  ;;  %2511 = vmatprep.subr.bf16.mxu1 %v6144_v39 }
 0x20c   :  { %2471 = vmatpush2.bf16.msra.mxu0 %v6160_v53  ;;  %2512 = vmatpush2.bf16.msra.mxu1 %v6162_v62 }
 0x20d   :  { %2472 = vmatprep.subr.bf16.mxu0 %v6166_v63  ;;  %2513 = vmatprep.subr.bf16.mxu1 %v6168_v0 }
 0x210   :  { %2473 = vmatpush2.bf16.msra.mxu0 %v6184_v8  ;;  %2514 = vmatpush2.bf16.msra.mxu1 %v6186_v9  ;;  %v1756_v9 = vld [vmem:[%s8060_s8 + $0x240] sm:$0xff] }
 0x211   :  { %2474 = vmatprep.subr.bf16.mxu0 %v6190_v15  ;;  %2515 = vmatprep.subr.bf16.mxu1 %v6192_v16  ;;  %v6238_v16 = vcombine.high %v1764_v50, %v1768_v4  ;;  %v6240_v15 = vcombine.high %v1765_v1, %v1769_v48  ;;  %v1749_v50 = vld [vmem:[%s8060_s8 + $0x208] sm:$0xff]  ;;  %v6282_v48 = vcombine.low %v1757_v17, %v1761_v18 }
 0x212   :  { %v1753_v4 = vld [vmem:[%s8060_s8 + $0x228] sm:$0xff] }
 0x213   :  { %8391 = vst [vmem:[#allocation55_spill] sm:$0xff] %v6238_v16  ;;  %8392 = vst [vmem:[#allocation56_spill] sm:$0xff] %v6240_v15 }
 0x214   :  { %2475 = vmatpush2.bf16.msra.mxu0 %v6208_v31  ;;  %2516 = vmatpush2.bf16.msra.mxu1 %v6210_v32  ;;  %v1760_v32 = vld [vmem:[%s8060_s8 + $0x260] sm:$0xff]  ;;  %8398 = vst [vmem:[#allocation62_spill] sm:$0xff] %v6282_v48 }
 0x215   :  { %2476 = vmatprep.subr.bf16.mxu0 %v6214_v40  ;;  %2517 = vmatprep.subr.bf16.mxu1 %v6216_v26  ;;  %v6262_v26 = vcombine.high %v1756_v9, %v1760_v32  ;;  %v6264_v40 = vcombine.high %v1757_v17, %v1761_v18  ;;  %v1748_v31 = vld [vmem:[%s8060_s8 + $0x200] sm:$0xff]  ;;  %v6280_v1 = vcombine.low %v1756_v9, %v1760_v32  ;;  %v1743_v9 = vld [vmem:[%s8060_s8 + $0x1d8] sm:$0xff] }
 0x216   :  { %v1747_v32 = vld [vmem:[%s8060_s8 + $0x1f8] sm:$0xff]  ;;  %v6306_v18 = vcombine.low %v1749_v50, %v1753_v4 }
 0x217   :  { %8395 = vst [vmem:[#allocation59_spill] sm:$0xff] %v6262_v26  ;;  %8396 = vst [vmem:[#allocation60_spill] sm:$0xff] %v6264_v40 }
 0x218   :  { %2477 = vmatpush2.bf16.msra.mxu0 %v6232_v55  ;;  %2518 = vmatpush2.bf16.msra.mxu1 %v6234_v7  ;;  %v1752_v7 = vld [vmem:[%s8060_s8 + $0x220] sm:$0xff]  ;;  %8397 = vst [vmem:[#allocation61_spill] sm:$0xff] %v6280_v1  ;;  %v1742_v55 = vld [vmem:[%s8060_s8 + $0x1d0] sm:$0xff]  ;;  %8402 = vst [vmem:[#allocation66_spill] sm:$0xff] %v6306_v18 }
 0x219   :  { %2478 = vmatprep.subr.bf16.mxu0 %v6238_v16  ;;  %2519 = vmatprep.subr.bf16.mxu1 %v6240_v15  ;;  %v6286_v15 = vcombine.high %v1748_v31, %v1752_v7  ;;  %v6288_v16 = vcombine.high %v1749_v50, %v1753_v4  ;;  %v6304_v17 = vcombine.low %v1748_v31, %v1752_v7  ;;  %v1738_v31 = vld [vmem:[%s8060_s8 + $0x1b0] sm:$0xff]  ;;  %v1735_v7 = vld [vmem:[%s8060_s8 + $0x198] sm:$0xff] }
 0x21a   :  { %v1739_v50 = vld [vmem:[%s8060_s8 + $0x1b8] sm:$0xff] }
 0x21b   :  { %8399 = vst [vmem:[#allocation63_spill] sm:$0xff] %v6286_v15  ;;  %8400 = vst [vmem:[#allocation64_spill] sm:$0xff] %v6288_v16  ;;  %v6341_v8 = vcombine.high %v1735_v7, %v1739_v50 }
 0x21c   :  { %2479 = vmatpush2.bf16.msra.mxu0 %v6256_v27  ;;  %2520 = vmatpush2.bf16.msra.mxu1 %v6258_v58  ;;  %v1746_v58 = vld [vmem:[%s8060_s8 + $0x1f0] sm:$0xff]  ;;  %8401 = vst [vmem:[#allocation65_spill] sm:$0xff] %v6304_v17  ;;  %v6315_v27 = vcombine.high %v1743_v9, %v1747_v32 }
 0x21d   :  { %2480 = vmatprep.subr.bf16.mxu0 %v6262_v26  ;;  %2521 = vmatprep.subr.bf16.mxu1 %v6264_v40  ;;  %v1670_v40 = vld [vmem:[%s8061_s1] sm:$0xff]  ;;  %v6313_v26 = vcombine.high %v1742_v55, %v1746_v58  ;;  %8407 = vst [vmem:[#allocation71_spill] sm:$0xff] %v6341_v8 }
 0x21e   :  { %8404 = vst [vmem:[#allocation68_spill] sm:$0xff] %v6315_v27  ;;  %v6329_v4 = vpack.c.bf16 %v1670_v40, %v1670_v40  ;;  %v1726_v40 = vld [vmem:[%s8060_s8 + $0x150] sm:$0xff] }
 0x21f   :  { %8403 = vst [vmem:[#allocation67_spill] sm:$0xff] %v6313_v26 }
 0x220   :  { %2481 = vmatpush2.bf16.msra.mxu0 %v6280_v1  ;;  %2522 = vmatpush2.bf16.msra.mxu1 %v6282_v48  ;;  %v1734_v48 = vld [vmem:[%s8060_s8 + $0x190] sm:$0xff] }
 0x221   :  { %2482 = vmatprep.subr.bf16.mxu0 %v6286_v15  ;;  %2523 = vmatprep.subr.bf16.mxu1 %v6288_v16  ;;  %v6333_v16 = vcombine.low %v1742_v55, %v1746_v58  ;;  %v6335_v15 = vcombine.low %v1743_v9, %v1747_v32  ;;  %v6339_v1 = vcombine.high %v1734_v48, %v1738_v31  ;;  %v1727_v55 = vld [vmem:[%s8060_s8 + $0x158] sm:$0xff] }
 0x222   :  { %v1731_v58 = vld [vmem:[%s8060_s8 + $0x178] sm:$0xff]  ;;  %v6359_v9 = vcombine.low %v1734_v48, %v1738_v31  ;;  %v6361_v32 = vcombine.low %v1735_v7, %v1739_v50 }
 0x223   :  { %8405 = vst [vmem:[#allocation69_spill] sm:$0xff] %v6335_v15  ;;  %8406 = vst [vmem:[#allocation70_spill] sm:$0xff] %v6339_v1  ;;  %v1719_v48 = vld [vmem:[%s8060_s8 + $0x118] sm:$0xff]  ;;  %v6387_v50 = vcombine.low %v1727_v55, %v1731_v58 }
 0x224   :  { %2483 = vmatpush2.bf16.msra.mxu0 %v6304_v17  ;;  %2524 = vmatpush2.bf16.msra.mxu1 %v6306_v18  ;;  %v1730_v18 = vld [vmem:[%s8060_s8 + $0x170] sm:$0xff]  ;;  %8408 = vst [vmem:[#allocation72_spill] sm:$0xff] %v6359_v9  ;;  %8409 = vst [vmem:[#allocation73_spill] sm:$0xff] %v6361_v32  ;;  %v1723_v31 = vld [vmem:[%s8060_s8 + $0x138] sm:$0xff] }
 0x225   :  { %2534 = vmatprep.subr.bf16.mxu0 %v6313_v26  ;;  %2575 = vmatprep.subr.bf16.mxu1 %v6315_v27  ;;  %v6365_v27 = vcombine.high %v1726_v40, %v1730_v18  ;;  %v6367_v26 = vcombine.high %v1727_v55, %v1731_v58  ;;  %v1718_v17 = vld [vmem:[%s8060_s8 + $0x110] sm:$0xff]  ;;  %v6385_v7 = vcombine.low %v1726_v40, %v1730_v18  ;;  %v1711_v18 = vld [vmem:[%s8060_s8 + $0xd8] sm:$0xff] }
 0x226   :  { %8413 = vst [vmem:[#allocation77_spill] sm:$0xff] %v6387_v50  ;;  %v1715_v40 = vld [vmem:[%s8060_s8 + $0xf8] sm:$0xff]  ;;  %v6411_v58 = vcombine.low %v1719_v48, %v1723_v31 }
 0x227   :  { %2485 = vmatmul.mubr.bf16.vlgmr.msra.gmra.mxu0 %v6329_v4  ;;  %2526 = vmatmul.mubr.bf16.vlgmr.msra.gmra.mxu1 %v6329_v4  ;;  %8410 = vst [vmem:[#allocation74_spill] sm:$0xff] %v6365_v27  ;;  %8411 = vst [vmem:[#allocation75_spill] sm:$0xff] %v6367_v26 }
 0x228   :  { %2535 = vmatpush1.bf16.msra.mxu0 %v6333_v16  ;;  %2576 = vmatpush1.bf16.msra.mxu1 %v6335_v15  ;;  %v1722_v15 = vld [vmem:[%s8060_s8 + $0x130] sm:$0xff]  ;;  %8412 = vst [vmem:[#allocation76_spill] sm:$0xff] %v6385_v7  ;;  %8417 = vst [vmem:[#allocation81_spill] sm:$0xff] %v6411_v58 }
 0x229   :  { %2536 = vmatprep.subr.bf16.mxu0 %v6339_v1  ;;  %2577 = vmatprep.subr.bf16.mxu1 %v6341_v8  ;;  %v6391_v8 = vcombine.high %v1718_v17, %v1722_v15  ;;  %v6393_v1 = vcombine.high %v1719_v48, %v1723_v31  ;;  %v6409_v55 = vcombine.low %v1718_v17, %v1722_v15  ;;  %v1703_v15 = vld [vmem:[%s8060_s8 + $0x98] sm:$0xff] }
 0x22a   :  { %2566 = vmatprep.mubr.bf16.mxu0 %v6080_v23  ;;  %2607 = vmatprep.mubr.bf16.mxu1 %v6080_v23  ;;  %v1710_v23 = vld [vmem:[%s8060_s8 + $0xd0] sm:$0xff]  ;;  %v1707_v17 = vld [vmem:[%s8060_s8 + $0xb8] sm:$0xff]  ;;  %v6435_v31 = vcombine.low %v1711_v18, %v1715_v40 }
 0x22b   :  { %8414 = vst [vmem:[#allocation78_spill] sm:$0xff] %v6391_v8  ;;  %8415 = vst [vmem:[#allocation79_spill] sm:$0xff] %v6393_v1 }
 0x22c   :  { %2537 = vmatpush1.bf16.msra.mxu0 %v6359_v9  ;;  %2578 = vmatpush1.bf16.msra.mxu1 %v6361_v32  ;;  %v1714_v32 = vld [vmem:[%s8060_s8 + $0xf0] sm:$0xff]  ;;  %8416 = vst [vmem:[#allocation80_spill] sm:$0xff] %v6409_v55  ;;  %8421 = vst [vmem:[#allocation85_spill] sm:$0xff] %v6435_v31 }
 0x22d   :  { %2538 = vmatprep.subr.bf16.mxu0 %v6365_v27  ;;  %2579 = vmatprep.subr.bf16.mxu1 %v6367_v26  ;;  %v6415_v26 = vcombine.high %v1710_v23, %v1714_v32  ;;  %v6417_v27 = vcombine.high %v1711_v18, %v1715_v40  ;;  %v1702_v9 = vld [vmem:[%s8060_s8 + $0x90] sm:$0xff]  ;;  %v6433_v48 = vcombine.low %v1710_v23, %v1714_v32  ;;  %v1695_v32 = vld [vmem:[%s8060_s8 + $0x58] sm:$0xff] }
 0x22e   :  { %v1699_v23 = vld [vmem:[%s8060_s8 + $0x78] sm:$0xff]  ;;  %v6459_v40 = vcombine.low %v1703_v15, %v1707_v17 }
 0x22f   :  { %8418 = vst [vmem:[#allocation82_spill] sm:$0xff] %v6415_v26  ;;  %8419 = vst [vmem:[#allocation83_spill] sm:$0xff] %v6417_v27 }
 0x230   :  { %2539 = vmatpush1.bf16.msra.mxu0 %v6385_v7  ;;  %2580 = vmatpush1.bf16.msra.mxu1 %v6387_v50  ;;  %v1706_v50 = vld [vmem:[%s8060_s8 + $0xb0] sm:$0xff]  ;;  %8420 = vst [vmem:[#allocation84_spill] sm:$0xff] %v6433_v48  ;;  %8425 = vst [vmem:[#allocation89_spill] sm:$0xff] %v6459_v40 }
 0x231   :  { %2540 = vmatprep.subr.bf16.mxu0 %v6391_v8  ;;  %2581 = vmatprep.subr.bf16.mxu1 %v6393_v1  ;;  %v6439_v1 = vcombine.high %v1702_v9, %v1706_v50  ;;  %v6441_v8 = vcombine.high %v1703_v15, %v1707_v17  ;;  %v1694_v7 = vld [vmem:[%s8060_s8 + $0x50] sm:$0xff]  ;;  %v6457_v18 = vcombine.low %v1702_v9, %v1706_v50  ;;  %v1687_v9 = vld [vmem:[%s8060_s8 + $0x18] sm:$0xff] }
 0x232   :  { %v1691_v50 = vld [vmem:[%s8060_s8 + $0x38] sm:$0xff]  ;;  %v6483_v17 = vcombine.low %v1695_v32, %v1699_v23 }
 0x233   :  { %8422 = vst [vmem:[#allocation86_spill] sm:$0xff] %v6439_v1  ;;  %8423 = vst [vmem:[#allocation87_spill] sm:$0xff] %v6441_v8 }
 0x234   :  { %2541 = vmatpush1.bf16.msra.mxu0 %v6409_v55  ;;  %2582 = vmatpush1.bf16.msra.mxu1 %v6411_v58  ;;  %v1698_v58 = vld [vmem:[%s8060_s8 + $0x70] sm:$0xff]  ;;  %8424 = vst [vmem:[#allocation88_spill] sm:$0xff] %v6457_v18  ;;  %8429 = vst [vmem:[#allocation93_spill] sm:$0xff] %v6483_v17 }
 0x235   :  { %2542 = vmatprep.subr.bf16.mxu0 %v6415_v26  ;;  %2583 = vmatprep.subr.bf16.mxu1 %v6417_v27  ;;  %v6463_v27 = vcombine.high %v1694_v7, %v1698_v58  ;;  %v6465_v26 = vcombine.high %v1695_v32, %v1699_v23  ;;  %v1686_v55 = vld [vmem:[%s8060_s8 + $0x10] sm:$0xff]  ;;  %v6481_v15 = vcombine.low %v1694_v7, %v1698_v58  ;;  %v1807_v7 = vld [vmem:[%s8060_s8 + $0x3d8] sm:$0xff] }
 0x236   :  { %v1811_v58 = vld [vmem:[%s8060_s8 + $0x3f8] sm:$0xff]  ;;  %v6507_v23 = vcombine.low %v1687_v9, %v1691_v50 }
 0x237   :  { %8426 = vst [vmem:[#allocation90_spill] sm:$0xff] %v6463_v27  ;;  %8427 = vst [vmem:[#allocation91_spill] sm:$0xff] %v6465_v26 }
 0x238   :  { %2543 = vmatpush1.bf16.msra.mxu0 %v6433_v48  ;;  %2584 = vmatpush1.bf16.msra.mxu1 %v6435_v31  ;;  %v1690_v31 = vld [vmem:[%s8060_s8 + $0x30] sm:$0xff]  ;;  %8428 = vst [vmem:[#allocation92_spill] sm:$0xff] %v6481_v15  ;;  %8433 = vst [vmem:[#allocation97_spill] sm:$0xff] %v6507_v23 }
 0x239   :  { %2544 = vmatprep.subr.bf16.mxu0 %v6439_v1  ;;  %2585 = vmatprep.subr.bf16.mxu1 %v6441_v8  ;;  %v6487_v8 = vcombine.high %v1686_v55, %v1690_v31  ;;  %v6489_v1 = vcombine.high %v1687_v9, %v1691_v50  ;;  %v1806_v48 = vld [vmem:[%s8060_s8 + $0x3d0] sm:$0xff]  ;;  %v6505_v32 = vcombine.low %v1686_v55, %v1690_v31  ;;  %v1799_v55 = vld [vmem:[%s8060_s8 + $0x398] sm:$0xff] }
 0x23a   :  { %v1803_v31 = vld [vmem:[%s8060_s8 + $0x3b8] sm:$0xff]  ;;  %v6531_v50 = vcombine.low %v1807_v7, %v1811_v58 }
 0x23b   :  { %8430 = vst [vmem:[#allocation94_spill] sm:$0xff] %v6487_v8  ;;  %8431 = vst [vmem:[#allocation95_spill] sm:$0xff] %v6489_v1 }
 0x23c   :  { %2545 = vmatpush1.bf16.msra.mxu0 %v6457_v18  ;;  %2586 = vmatpush1.bf16.msra.mxu1 %v6459_v40  ;;  %v1810_v40 = vld [vmem:[%s8060_s8 + $0x3f0] sm:$0xff]  ;;  %8432 = vst [vmem:[#allocation96_spill] sm:$0xff] %v6505_v32  ;;  %8437 = vst [vmem:[#allocation101_spill] sm:$0xff] %v6531_v50 }
 0x23d   :  { %2546 = vmatprep.subr.bf16.mxu0 %v6463_v27  ;;  %2587 = vmatprep.subr.bf16.mxu1 %v6465_v26  ;;  %v6511_v26 = vcombine.high %v1806_v48, %v1810_v40  ;;  %v6513_v27 = vcombine.high %v1807_v7, %v1811_v58  ;;  %v1798_v18 = vld [vmem:[%s8060_s8 + $0x390] sm:$0xff]  ;;  %v6529_v9 = vcombine.low %v1806_v48, %v1810_v40  ;;  %v1791_v48 = vld [vmem:[%s8060_s8 + $0x358] sm:$0xff] }
 0x23e   :  { %v1795_v40 = vld [vmem:[%s8060_s8 + $0x378] sm:$0xff]  ;;  %v6555_v58 = vcombine.low %v1799_v55, %v1803_v31 }
 0x23f   :  { %8434 = vst [vmem:[#allocation98_spill] sm:$0xff] %v6511_v26  ;;  %8435 = vst [vmem:[#allocation99_spill] sm:$0xff] %v6513_v27 }
 0x240   :  { %2547 = vmatpush1.bf16.msra.mxu0 %v6481_v15  ;;  %2588 = vmatpush1.bf16.msra.mxu1 %v6483_v17  ;;  %v1802_v17 = vld [vmem:[%s8060_s8 + $0x3b0] sm:$0xff]  ;;  %8436 = vst [vmem:[#allocation100_spill] sm:$0xff] %v6529_v9  ;;  %8441 = vst [vmem:[#allocation105_spill] sm:$0xff] %v6555_v58 }
 0x241   :  { %2548 = vmatprep.subr.bf16.mxu0 %v6487_v8  ;;  %2589 = vmatprep.subr.bf16.mxu1 %v6489_v1  ;;  %v6535_v1 = vcombine.high %v1798_v18, %v1802_v17  ;;  %v6537_v8 = vcombine.high %v1799_v55, %v1803_v31  ;;  %v1790_v15 = vld [vmem:[%s8060_s8 + $0x350] sm:$0xff]  ;;  %v6553_v7 = vcombine.low %v1798_v18, %v1802_v17  ;;  %v1783_v18 = vld [vmem:[%s8060_s8 + $0x318] sm:$0xff] }
 0x242   :  { %v1787_v17 = vld [vmem:[%s8060_s8 + $0x338] sm:$0xff]  ;;  %v6579_v31 = vcombine.low %v1791_v48, %v1795_v40 }
 0x243   :  { %8438 = vst [vmem:[#allocation102_spill] sm:$0xff] %v6535_v1  ;;  %8439 = vst [vmem:[#allocation103_spill] sm:$0xff] %v6537_v8 }
 0x244   :  { %2549 = vmatpush1.bf16.msra.mxu0 %v6505_v32  ;;  %2590 = vmatpush1.bf16.msra.mxu1 %v6507_v23  ;;  %v1794_v23 = vld [vmem:[%s8060_s8 + $0x370] sm:$0xff]  ;;  %8440 = vst [vmem:[#allocation104_spill] sm:$0xff] %v6553_v7  ;;  %8445 = vst [vmem:[#allocation109_spill] sm:$0xff] %v6579_v31 }
 0x245   :  { %2550 = vmatprep.subr.bf16.mxu0 %v6511_v26  ;;  %2591 = vmatprep.subr.bf16.mxu1 %v6513_v27  ;;  %v6559_v27 = vcombine.high %v1790_v15, %v1794_v23  ;;  %v6561_v26 = vcombine.high %v1791_v48, %v1795_v40  ;;  %v1782_v32 = vld [vmem:[%s8060_s8 + $0x310] sm:$0xff]  ;;  %v6577_v55 = vcombine.low %v1790_v15, %v1794_v23  ;;  %v1775_v15 = vld [vmem:[%s8060_s8 + $0x2d8] sm:$0xff] }
 0x246   :  { %v1779_v23 = vld [vmem:[%s8060_s8 + $0x2f8] sm:$0xff]  ;;  %v6603_v40 = vcombine.low %v1783_v18, %v1787_v17 }
 0x247   :  { %8442 = vst [vmem:[#allocation106_spill] sm:$0xff] %v6559_v27  ;;  %8443 = vst [vmem:[#allocation107_spill] sm:$0xff] %v6561_v26 }
 0x248   :  { %2551 = vmatpush2.bf16.msra.mxu0 %v6529_v9  ;;  %2592 = vmatpush2.bf16.msra.mxu1 %v6531_v50  ;;  %v1786_v50 = vld [vmem:[%s8060_s8 + $0x330] sm:$0xff]  ;;  %8444 = vst [vmem:[#allocation108_spill] sm:$0xff] %v6577_v55  ;;  %8449 = vst [vmem:[#allocation113_spill] sm:$0xff] %v6603_v40 }
 0x249   :  { %2552 = vmatprep.subr.bf16.mxu0 %v6535_v1  ;;  %2593 = vmatprep.subr.bf16.mxu1 %v6537_v8  ;;  %v6583_v8 = vcombine.high %v1782_v32, %v1786_v50  ;;  %v6585_v1 = vcombine.high %v1783_v18, %v1787_v17  ;;  %v1774_v9 = vld [vmem:[%s8060_s8 + $0x2d0] sm:$0xff]  ;;  %v6601_v48 = vcombine.low %v1782_v32, %v1786_v50  ;;  %v1767_v32 = vld [vmem:[%s8060_s8 + $0x298] sm:$0xff] }
 0x24a   :  { %v1771_v50 = vld [vmem:[%s8060_s8 + $0x2b8] sm:$0xff]  ;;  %v6627_v17 = vcombine.low %v1775_v15, %v1779_v23 }
 0x24b   :  { %8446 = vst [vmem:[#allocation110_spill] sm:$0xff] %v6583_v8  ;;  %8447 = vst [vmem:[#allocation111_spill] sm:$0xff] %v6585_v1 }
 0x24c   :  { %2553 = vmatpush2.bf16.msra.mxu0 %v6553_v7  ;;  %2594 = vmatpush2.bf16.msra.mxu1 %v6555_v58  ;;  %v1778_v58 = vld [vmem:[%s8060_s8 + $0x2f0] sm:$0xff]  ;;  %8448 = vst [vmem:[#allocation112_spill] sm:$0xff] %v6601_v48  ;;  %8453 = vst [vmem:[#allocation117_spill] sm:$0xff] %v6627_v17 }
 0x24d   :  { %2554 = vmatprep.subr.bf16.mxu0 %v6559_v27  ;;  %2595 = vmatprep.subr.bf16.mxu1 %v6561_v26  ;;  %v6607_v26 = vcombine.high %v1774_v9, %v1778_v58  ;;  %v6609_v27 = vcombine.high %v1775_v15, %v1779_v23  ;;  %v1766_v7 = vld [vmem:[%s8060_s8 + $0x290] sm:$0xff]  ;;  %v6625_v18 = vcombine.low %v1774_v9, %v1778_v58  ;;  %v1759_v9 = vld [vmem:[%s8060_s8 + $0x258] sm:$0xff] }
 0x24e   :  { %v1763_v58 = vld [vmem:[%s8060_s8 + $0x278] sm:$0xff]  ;;  %v6651_v23 = vcombine.low %v1767_v32, %v1771_v50 }
 0x24f   :  { %8450 = vst [vmem:[#allocation114_spill] sm:$0xff] %v6607_v26  ;;  %8451 = vst [vmem:[#allocation115_spill] sm:$0xff] %v6609_v27 }
 0x250   :  { %2555 = vmatpush2.bf16.msra.mxu0 %v6577_v55  ;;  %2596 = vmatpush2.bf16.msra.mxu1 %v6579_v31  ;;  %v1770_v31 = vld [vmem:[%s8060_s8 + $0x2b0] sm:$0xff]  ;;  %8452 = vst [vmem:[#allocation116_spill] sm:$0xff] %v6625_v18  ;;  %8457 = vst [vmem:[#allocation121_spill] sm:$0xff] %v6651_v23 }
 0x251   :  { %2556 = vmatprep.subr.bf16.mxu0 %v6583_v8  ;;  %2597 = vmatprep.subr.bf16.mxu1 %v6585_v1  ;;  %v6631_v1 = vcombine.high %v1766_v7, %v1770_v31  ;;  %v6633_v8 = vcombine.high %v1767_v32, %v1771_v50  ;;  %v1758_v55 = vld [vmem:[%s8060_s8 + $0x250] sm:$0xff]  ;;  %v6649_v15 = vcombine.low %v1766_v7, %v1770_v31  ;;  %v1751_v7 = vld [vmem:[%s8060_s8 + $0x218] sm:$0xff] }
 0x252   :  { %v1755_v31 = vld [vmem:[%s8060_s8 + $0x238] sm:$0xff]  ;;  %v6675_v50 = vcombine.low %v1759_v9, %v1763_v58 }
 0x253   :  { %8454 = vst [vmem:[#allocation118_spill] sm:$0xff] %v6631_v1  ;;  %8455 = vst [vmem:[#allocation119_spill] sm:$0xff] %v6633_v8 }
 0x254   :  { %2557 = vmatpush2.bf16.msra.mxu0 %v6601_v48  ;;  %2598 = vmatpush2.bf16.msra.mxu1 %v6603_v40  ;;  %v1762_v40 = vld [vmem:[%s8060_s8 + $0x270] sm:$0xff]  ;;  %8456 = vst [vmem:[#allocation120_spill] sm:$0xff] %v6649_v15  ;;  %8461 = vst [vmem:[#allocation125_spill] sm:$0xff] %v6675_v50 }
 0x255   :  { %2558 = vmatprep.subr.bf16.mxu0 %v6607_v26  ;;  %2599 = vmatprep.subr.bf16.mxu1 %v6609_v27  ;;  %v6655_v27 = vcombine.high %v1758_v55, %v1762_v40  ;;  %v6657_v26 = vcombine.high %v1759_v9, %v1763_v58  ;;  %v1750_v48 = vld [vmem:[%s8060_s8 + $0x210] sm:$0xff]  ;;  %v6673_v32 = vcombine.low %v1758_v55, %v1762_v40  ;;  %v644_v55 = vsub.s32 2, %v5500_v42 }
 0x256   :  { %v648_v9 = vsub.s32 3, %v5500_v42 }
 0x257   :  { %8458 = vst [vmem:[#allocation122_spill] sm:$0xff] %v6655_v27  ;;  %8459 = vst [vmem:[#allocation123_spill] sm:$0xff] %v6657_v26 }
 0x258   :  { %2559 = vmatpush2.bf16.msra.mxu0 %v6625_v18  ;;  %2600 = vmatpush2.bf16.msra.mxu1 %v6627_v17  ;;  %v1754_v17 = vld [vmem:[%s8060_s8 + $0x230] sm:$0xff]  ;;  %8460 = vst [vmem:[#allocation124_spill] sm:$0xff] %v6673_v32 }
 0x259   :  { %2560 = vmatprep.subr.bf16.mxu0 %v6631_v1  ;;  %2601 = vmatprep.subr.bf16.mxu1 %v6633_v8  ;;  %v6679_v8 = vcombine.high %v1750_v48, %v1754_v17  ;;  %v6681_v1 = vcombine.high %v1751_v7, %v1755_v31  ;;  %v6685_v18 = vcombine.low %v1750_v48, %v1754_v17  ;;  %v6699_v48 = vld [vmem:[%s8062_s9] sm:$0xff] }
 0x25b   :  { %8462 = vst [vmem:[#allocation126_spill] sm:$0xff] %v6679_v8  ;;  %8463 = vst [vmem:[#allocation127_spill] sm:$0xff] %v6681_v1 }
 0x25c   :  { %2561 = vmatpush2.bf16.msra.mxu0 %v6649_v15  ;;  %2602 = vmatpush2.bf16.msra.mxu1 %v6651_v23  ;;  %8464 = vst [vmem:[#allocation128_spill] sm:$0xff] %v6685_v18  ;;  %v6687_v15 = vcombine.low %v1751_v7, %v1755_v31  ;;  %v6716_v31 = vrot.slane %v6699_v48, %v5506_v44 }
 0x25d   :  { %2562 = vmatprep.subr.bf16.mxu0 %v6655_v27  ;;  %2603 = vmatprep.subr.bf16.mxu1 %v6657_v26 }
 0x25e   :  { %8465 = vst [vmem:[#allocation129_spill] sm:$0xff] %v6687_v15 }
 0x260   :  { %2563 = vmatpush2.bf16.msra.mxu0 %v6673_v32  ;;  %2604 = vmatpush2.bf16.msra.mxu1 %v6675_v50 }
 0x261   :  { %2564 = vmatprep.subr.bf16.mxu0 %v6679_v8  ;;  %2605 = vmatprep.subr.bf16.mxu1 %v6681_v1 }
 0x264   :  { %2565 = vmatpush2.bf16.msra.mxu0 %v6685_v18  ;;  %2606 = vmatpush2.bf16.msra.mxu1 %v6687_v15  ;;  %v6725_v15 = vrot.slane %v6699_v48, %v5503_v43 }
 0x265   :  { %2683 = vmatprep.subr.bf16.mxu0 %v5907_v13  ;;  %2724 = vmatprep.subr.bf16.mxu1 %v5909_v14  ;;  %v6719_v14 = vrot.slane %v6699_v48, %v644_v55 }
 0x266   :  { %v6701_v40 = vpop.f32.mrf.mxu0  ;;  %v6703_v17 = vpop.f32.mrf.mxu1 }
 0x267   :  { %2567 = vmatmul.mubr.bf16.vlgmr.msra.gmra.mxu0 %v6329_v4  ;;  %2608 = vmatmul.mubr.bf16.vlgmr.msra.gmra.mxu1 %v6329_v4 }
 0x268   :  { %v6708_v58 = vpop.f32.mrf.mxu0  ;;  %v6710_v7 = vpop.f32.mrf.mxu1  ;;  %2684 = vmatpush1.bf16.msra.mxu0 %v5925_v19  ;;  %2725 = vmatpush1.bf16.msra.mxu1 %v5927_v21  ;;  %v6728_v19 = vrot.slane %v6699_v48, %v648_v9 }
 0x269   :  { %2685 = vmatprep.subr.bf16.mxu0 %v5929_v22  ;;  %2726 = vmatprep.subr.bf16.mxu1 %v5931_v24 }
 0x26a   :  { %v1352_v4 = vpop.f32.mrf.mxu0  ;;  %v1425_v13 = vpop.f32.mrf.mxu1 }
 0x26b   :  { %v6731_v21 = vadd.f32 %v1352_v4, %v6716_v31  ;;  %v6734_v44 = vadd.f32 %v1425_v13, %v6719_v14 }
 0x26c   :  { %v1354_v55 = vpop.f32.mrf.mxu0  ;;  %v1427_v18 = vpop.f32.mrf.mxu1  ;;  %2686 = vmatpush1.bf16.msra.mxu0 %v5951_v25  ;;  %2727 = vmatpush1.bf16.msra.mxu1 %v5953_v28 }
 0x26d   :  { %8466 = vst [vmem:[#allocation130_spill] sm:$0xff] %v6731_v21  ;;  %8467 = vst [vmem:[#allocation131_spill] sm:$0xff] %v6734_v44  ;;  %v6739_v24 = vadd.f32 %v1354_v55, %v6725_v15  ;;  %v6742_v43 = vadd.f32 %v1427_v18, %v6728_v19  ;;  %2687 = vmatprep.subr.bf16.mxu0 %v5957_v29  ;;  %2728 = vmatprep.subr.bf16.mxu1 %v5959_v30 }
 0x26e   :  { %v1358_v9 = vpop.f32.mrf.mxu0  ;;  %v1431_v4 = vpop.f32.mrf.mxu1 }
 0x26f   :  { %8468 = vst [vmem:[#allocation132_spill] sm:$0xff] %v6739_v24  ;;  %8469 = vst [vmem:[#allocation133_spill] sm:$0xff] %v6742_v43  ;;  %v6747_v13 = vadd.f32 %v1358_v9, %v6716_v31  ;;  %v6750_v44 = vadd.f32 %v1431_v4, %v6719_v14 }
 0x270   :  { %v1360_v21 = vpop.f32.mrf.mxu0  ;;  %v1433_v28 = vpop.f32.mrf.mxu1  ;;  %2688 = vmatpush1.bf16.msra.mxu0 %v5975_v34  ;;  %2729 = vmatpush1.bf16.msra.mxu1 %v5977_v35 }
 0x271   :  { %8470 = vst [vmem:[#allocation134_spill] sm:$0xff] %v6747_v13  ;;  %8471 = vst [vmem:[#allocation135_spill] sm:$0xff] %v6750_v44  ;;  %v6755_v18 = vadd.f32 %v1360_v21, %v6725_v15  ;;  %v6758_v55 = vadd.f32 %v1433_v28, %v6728_v19  ;;  %2689 = vmatprep.subr.bf16.mxu0 %v5981_v5  ;;  %2730 = vmatprep.subr.bf16.mxu1 %v5983_v36 }
 0x272   :  { %v1362_v9 = vpop.f32.mrf.mxu0  ;;  %v1435_v13 = vpop.f32.mrf.mxu1 }
 0x273   :  { %8472 = vst [vmem:[#allocation136_spill] sm:$0xff] %v6755_v18  ;;  %8473 = vst [vmem:[#allocation137_spill] sm:$0xff] %v6758_v55  ;;  %v6763_v4 = vadd.f32 %v1362_v9, %v6716_v31  ;;  %v6766_v44 = vadd.f32 %v1435_v13, %v6719_v14 }
 0x274   :  { %v1364_v43 = vpop.f32.mrf.mxu0  ;;  %v1437_v24 = vpop.f32.mrf.mxu1  ;;  %2690 = vmatpush1.bf16.msra.mxu0 %v6003_v52  ;;  %2731 = vmatpush1.bf16.msra.mxu1 %v6005_v41 }
 0x275   :  { %8474 = vst [vmem:[#allocation138_spill] sm:$0xff] %v6763_v4  ;;  %8475 = vst [vmem:[#allocation139_spill] sm:$0xff] %v6766_v44  ;;  %v6771_v21 = vadd.f32 %v1364_v43, %v6725_v15  ;;  %v6774_v28 = vadd.f32 %v1437_v24, %v6728_v19  ;;  %2691 = vmatprep.subr.bf16.mxu0 %v6009_v45  ;;  %2732 = vmatprep.subr.bf16.mxu1 %v6011_v46 }
 0x276   :  { %v1368_v9 = vpop.f32.mrf.mxu0  ;;  %v1441_v4 = vpop.f32.mrf.mxu1 }
 0x277   :  { %8476 = vst [vmem:[#allocation140_spill] sm:$0xff] %v6771_v21  ;;  %8477 = vst [vmem:[#allocation141_spill] sm:$0xff] %v6774_v28  ;;  %v6779_v13 = vadd.f32 %v1368_v9, %v6716_v31  ;;  %v6782_v44 = vadd.f32 %v1441_v4, %v6719_v14 }
 0x278   :  { %v1370_v55 = vpop.f32.mrf.mxu0  ;;  %v1443_v18 = vpop.f32.mrf.mxu1  ;;  %2692 = vmatpush1.bf16.msra.mxu0 %v6027_v56  ;;  %2733 = vmatpush1.bf16.msra.mxu1 %v6029_v59 }
 0x279   :  { %8478 = vst [vmem:[#allocation142_spill] sm:$0xff] %v6779_v13  ;;  %8479 = vst [vmem:[#allocation143_spill] sm:$0xff] %v6782_v44  ;;  %v6787_v24 = vadd.f32 %v1370_v55, %v6725_v15  ;;  %v6790_v43 = vadd.f32 %v1443_v18, %v6728_v19  ;;  %2693 = vmatprep.subr.bf16.mxu0 %v6033_v60  ;;  %2734 = vmatprep.subr.bf16.mxu1 %v6035_v61 }
 0x27a   :  { %v1372_v9 = vpop.f32.mrf.mxu0  ;;  %v1445_v13 = vpop.f32.mrf.mxu1 }
 0x27b   :  { %8480 = vst [vmem:[#allocation144_spill] sm:$0xff] %v6787_v24  ;;  %8481 = vst [vmem:[#allocation145_spill] sm:$0xff] %v6790_v43  ;;  %v6795_v4 = vadd.f32 %v1372_v9, %v6716_v31  ;;  %v6798_v44 = vadd.f32 %v1445_v13, %v6719_v14 }
 0x27c   :  { %v1374_v28 = vpop.f32.mrf.mxu0  ;;  %v1447_v21 = vpop.f32.mrf.mxu1  ;;  %2694 = vmatpush1.bf16.msra.mxu0 %v6055_v20  ;;  %2735 = vmatpush1.bf16.msra.mxu1 %v6057_v2 }
 0x27d   :  { %8482 = vst [vmem:[#allocation146_spill] sm:$0xff] %v6795_v4  ;;  %8483 = vst [vmem:[#allocation147_spill] sm:$0xff] %v6798_v44  ;;  %v6803_v18 = vadd.f32 %v1374_v28, %v6725_v15  ;;  %v6806_v55 = vadd.f32 %v1447_v21, %v6728_v19  ;;  %2695 = vmatprep.subr.bf16.mxu0 %v6064_v3  ;;  %2736 = vmatprep.subr.bf16.mxu1 %v6066_v6 }
 0x27e   :  { %v1378_v9 = vpop.f32.mrf.mxu0  ;;  %v1451_v4 = vpop.f32.mrf.mxu1 }
 0x27f   :  { %8484 = vst [vmem:[#allocation148_spill] sm:$0xff] %v6803_v18  ;;  %8485 = vst [vmem:[#allocation149_spill] sm:$0xff] %v6806_v55  ;;  %v6811_v13 = vadd.f32 %v1378_v9, %v6716_v31  ;;  %v6814_v44 = vadd.f32 %v1451_v4, %v6719_v14 }
 0x280   :  { %v1380_v43 = vpop.f32.mrf.mxu0  ;;  %v1453_v24 = vpop.f32.mrf.mxu1  ;;  %2696 = vmatpush1.bf16.msra.mxu0 %v6084_v47  ;;  %2737 = vmatpush1.bf16.msra.mxu1 %v6086_v10 }
 0x281   :  { %8486 = vst [vmem:[#allocation150_spill] sm:$0xff] %v6811_v13  ;;  %8487 = vst [vmem:[#allocation151_spill] sm:$0xff] %v6814_v44  ;;  %v6819_v21 = vadd.f32 %v1380_v43, %v6725_v15  ;;  %v6822_v28 = vadd.f32 %v1453_v24, %v6728_v19  ;;  %2697 = vmatprep.subr.bf16.mxu0 %v6090_v11  ;;  %2738 = vmatprep.subr.bf16.mxu1 %v6092_v12 }
 0x282   :  { %v1382_v9 = vpop.f32.mrf.mxu0  ;;  %v1455_v13 = vpop.f32.mrf.mxu1 }
 0x283   :  { %8488 = vst [vmem:[#allocation152_spill] sm:$0xff] %v6819_v21  ;;  %8489 = vst [vmem:[#allocation153_spill] sm:$0xff] %v6822_v28  ;;  %v6827_v4 = vadd.f32 %v1382_v9, %v6716_v31  ;;  %v6830_v44 = vadd.f32 %v1455_v13, %v6719_v14  ;;  %v8496_v13 = vld [vmem:[#allocation47_spill] sm:$0xff]  ;;  %v8497_v9 = vld [vmem:[#allocation48_spill] sm:$0xff] }
 0x284   :  { %v1384_v55 = vpop.f32.mrf.mxu0  ;;  %v1457_v18 = vpop.f32.mrf.mxu1  ;;  %2698 = vmatpush1.bf16.msra.mxu0 %v6112_v49  ;;  %2739 = vmatpush1.bf16.msra.mxu1 %v6114_v51  ;;  %v8502_v28 = vld [vmem:[#allocation53_spill] sm:$0xff]  ;;  %v8503_v21 = vld [vmem:[#allocation54_spill] sm:$0xff] }
 0x285   :  { %8490 = vst [vmem:[#allocation154_spill] sm:$0xff] %v6827_v4  ;;  %8491 = vst [vmem:[#allocation155_spill] sm:$0xff] %v6830_v44  ;;  %v6835_v24 = vadd.f32 %v1384_v55, %v6725_v15  ;;  %v6838_v43 = vadd.f32 %v1457_v18, %v6728_v19  ;;  %2699 = vmatprep.subr.bf16.mxu0 %v6118_v54  ;;  %2740 = vmatprep.subr.bf16.mxu1 %v6120_v57  ;;  %v8494_v18 = vld [vmem:[#allocation45_spill] sm:$0xff]  ;;  %v8495_v55 = vld [vmem:[#allocation46_spill] sm:$0xff] }
 0x286   :  { %v8500_v44 = vld [vmem:[#allocation51_spill] sm:$0xff]  ;;  %v8501_v4 = vld [vmem:[#allocation52_spill] sm:$0xff] }
 0x287   :  { %8492 = vst [vmem:[#allocation156_spill] sm:$0xff] %v6835_v24  ;;  %8493 = vst [vmem:[#allocation157_spill] sm:$0xff] %v6838_v43  ;;  %v8498_v43 = vld [vmem:[#allocation49_spill] sm:$0xff]  ;;  %v8499_v24 = vld [vmem:[#allocation50_spill] sm:$0xff] }
 0x288   :  { %2700 = vmatpush2.bf16.msra.mxu0 %v6136_v33  ;;  %2741 = vmatpush2.bf16.msra.mxu1 %v6138_v37 }
 0x289   :  { %2701 = vmatprep.subr.bf16.mxu0 %v6142_v38  ;;  %2742 = vmatprep.subr.bf16.mxu1 %v6144_v39 }
 0x28c   :  { %2702 = vmatpush2.bf16.msra.mxu0 %v6160_v53  ;;  %2743 = vmatpush2.bf16.msra.mxu1 %v6162_v62 }
 0x28d   :  { %2703 = vmatprep.subr.bf16.mxu0 %v6166_v63  ;;  %2744 = vmatprep.subr.bf16.mxu1 %v6168_v0  ;;  %v8504_v0 = vld [vmem:[#allocation55_spill] sm:$0xff] }
 0x290   :  { %2704 = vmatpush2.bf16.msra.mxu0 %v8494_v18  ;;  %2745 = vmatpush2.bf16.msra.mxu1 %v8495_v55  ;;  %v8505_v18 = vld [vmem:[#allocation56_spill] sm:$0xff]  ;;  %v8506_v55 = vld [vmem:[#allocation57_spill] sm:$0xff] }
 0x291   :  { %2705 = vmatprep.subr.bf16.mxu0 %v8496_v13  ;;  %2746 = vmatprep.subr.bf16.mxu1 %v8497_v9  ;;  %v8507_v13 = vld [vmem:[#allocation58_spill] sm:$0xff]  ;;  %v8508_v9 = vld [vmem:[#allocation59_spill] sm:$0xff] }
 0x294   :  { %2706 = vmatpush2.bf16.msra.mxu0 %v8498_v43  ;;  %2747 = vmatpush2.bf16.msra.mxu1 %v8499_v24  ;;  %v8509_v43 = vld [vmem:[#allocation60_spill] sm:$0xff]  ;;  %v8510_v24 = vld [vmem:[#allocation61_spill] sm:$0xff] }
 0x295   :  { %2707 = vmatprep.subr.bf16.mxu0 %v8500_v44  ;;  %2748 = vmatprep.subr.bf16.mxu1 %v8501_v4  ;;  %v8511_v44 = vld [vmem:[#allocation62_spill] sm:$0xff]  ;;  %v8512_v4 = vld [vmem:[#allocation63_spill] sm:$0xff] }
 0x298   :  { %2708 = vmatpush2.bf16.msra.mxu0 %v8502_v28  ;;  %2749 = vmatpush2.bf16.msra.mxu1 %v8503_v21  ;;  %v8513_v28 = vld [vmem:[#allocation64_spill] sm:$0xff]  ;;  %v8514_v21 = vld [vmem:[#allocation65_spill] sm:$0xff] }
 0x299   :  { %2709 = vmatprep.subr.bf16.mxu0 %v8504_v0  ;;  %2750 = vmatprep.subr.bf16.mxu1 %v8505_v18  ;;  %v8515_v0 = vld [vmem:[#allocation66_spill] sm:$0xff]  ;;  %v8516_v18 = vld [vmem:[#allocation67_spill] sm:$0xff] }
 0x29c   :  { %2710 = vmatpush2.bf16.msra.mxu0 %v8506_v55  ;;  %2751 = vmatpush2.bf16.msra.mxu1 %v8507_v13  ;;  %v652_v55 = vsub.s32 4, %v5500_v42  ;;  %v660_v13 = vsub.s32 6, %v5500_v42 }
 0x29d   :  { %2711 = vmatprep.subr.bf16.mxu0 %v8508_v9  ;;  %2752 = vmatprep.subr.bf16.mxu1 %v8509_v43  ;;  %v8517_v9 = vld [vmem:[#allocation68_spill] sm:$0xff] }
 0x29e   :  { %v6890_v63 = vrot.slane %v6699_v48, %v660_v13 }
 0x2a0   :  { %2712 = vmatpush2.bf16.msra.mxu0 %v8510_v24  ;;  %2753 = vmatpush2.bf16.msra.mxu1 %v8511_v44 }
 0x2a1   :  { %2713 = vmatprep.subr.bf16.mxu0 %v8512_v4  ;;  %2754 = vmatprep.subr.bf16.mxu1 %v8513_v28  ;;  %v656_v4 = vsub.s32 5, %v5500_v42  ;;  %v664_v28 = vsub.s32 7, %v5500_v42 }
 0x2a3   :  { %v6893_v62 = vrot.slane %v6699_v48, %v656_v4  ;;  %v6896_v53 = vrot.slane %v6699_v48, %v664_v28 }
 0x2a4   :  { %2714 = vmatpush2.bf16.msra.mxu0 %v8514_v21  ;;  %2755 = vmatpush2.bf16.msra.mxu1 %v8515_v0  ;;  %v6887_v0 = vrot.slane %v6699_v48, %v652_v55 }
 0x2a5   :  { %2765 = vmatprep.subr.bf16.mxu0 %v8516_v18  ;;  %2806 = vmatprep.subr.bf16.mxu1 %v8517_v9 }
 0x2a6   :  { %v6876_v43 = vpop.f32.mrf.mxu0  ;;  %v6878_v24 = vpop.f32.mrf.mxu1 }
 0x2a8   :  { %v6882_v44 = vpop.f32.mrf.mxu0  ;;  %v6884_v21 = vpop.f32.mrf.mxu1 }
 0x2aa   :  { %v1498_v18 = vpop.f32.mrf.mxu0  ;;  %v1571_v9 = vpop.f32.mrf.mxu1 }
 0x2ab   :  { %v6899_v42 = vadd.f32 %v1498_v18, %v6887_v0  ;;  %v6902_v39 = vadd.f32 %v1571_v9, %v6890_v63 }
 0x2ac   :  { %v1500_v38 = vpop.f32.mrf.mxu0  ;;  %v1573_v55 = vpop.f32.mrf.mxu1 }
 0x2ad   :  { %8518 = vst [vmem:[#allocation158_spill] sm:$0xff] %v6899_v42  ;;  %8519 = vst [vmem:[#allocation159_spill] sm:$0xff] %v6902_v39  ;;  %v6905_v37 = vadd.f32 %v1500_v38, %v6893_v62  ;;  %v6908_v13 = vadd.f32 %v1573_v55, %v6896_v53 }
 0x2ae   :  { %v1504_v33 = vpop.f32.mrf.mxu0  ;;  %v1577_v4 = vpop.f32.mrf.mxu1 }
 0x2af   :  { %8520 = vst [vmem:[#allocation160_spill] sm:$0xff] %v6905_v37  ;;  %8521 = vst [vmem:[#allocation161_spill] sm:$0xff] %v6908_v13  ;;  %v6911_v57 = vadd.f32 %v1504_v33, %v6887_v0  ;;  %v6914_v48 = vadd.f32 %v1577_v4, %v6890_v63 }
 0x2b0   :  { %v1506_v28 = vpop.f32.mrf.mxu0  ;;  %v1579_v18 = vpop.f32.mrf.mxu1 }
 0x2b1   :  { %8522 = vst [vmem:[#allocation162_spill] sm:$0xff] %v6911_v57  ;;  %8523 = vst [vmem:[#allocation163_spill] sm:$0xff] %v6914_v48  ;;  %v6917_v9 = vadd.f32 %v1506_v28, %v6893_v62  ;;  %v6920_v39 = vadd.f32 %v1579_v18, %v6896_v53 }
 0x2b2   :  { %v1508_v38 = vpop.f32.mrf.mxu0  ;;  %v1581_v37 = vpop.f32.mrf.mxu1 }
 0x2b3   :  { %8524 = vst [vmem:[#allocation164_spill] sm:$0xff] %v6917_v9  ;;  %8525 = vst [vmem:[#allocation165_spill] sm:$0xff] %v6920_v39  ;;  %v6923_v55 = vadd.f32 %v1508_v38, %v6887_v0  ;;  %v6926_v13 = vadd.f32 %v1581_v37, %v6890_v63 }
 0x2b4   :  { %v1510_v33 = vpop.f32.mrf.mxu0  ;;  %v1583_v57 = vpop.f32.mrf.mxu1 }
 0x2b5   :  { %8526 = vst [vmem:[#allocation166_spill] sm:$0xff] %v6923_v55  ;;  %8527 = vst [vmem:[#allocation167_spill] sm:$0xff] %v6926_v13  ;;  %v6929_v4 = vadd.f32 %v1510_v33, %v6893_v62  ;;  %v6932_v48 = vadd.f32 %v1583_v57, %v6896_v53 }
 0x2b6   :  { %v1514_v28 = vpop.f32.mrf.mxu0  ;;  %v1587_v9 = vpop.f32.mrf.mxu1 }
 0x2b7   :  { %8528 = vst [vmem:[#allocation168_spill] sm:$0xff] %v6929_v4  ;;  %8529 = vst [vmem:[#allocation169_spill] sm:$0xff] %v6932_v48  ;;  %v6935_v18 = vadd.f32 %v1514_v28, %v6887_v0  ;;  %v6938_v39 = vadd.f32 %v1587_v9, %v6890_v63 }
 0x2b8   :  { %v1516_v38 = vpop.f32.mrf.mxu0  ;;  %v1589_v55 = vpop.f32.mrf.mxu1 }
 0x2b9   :  { %8530 = vst [vmem:[#allocation170_spill] sm:$0xff] %v6935_v18  ;;  %8531 = vst [vmem:[#allocation171_spill] sm:$0xff] %v6938_v39  ;;  %v6941_v37 = vadd.f32 %v1516_v38, %v6893_v62  ;;  %v6944_v13 = vadd.f32 %v1589_v55, %v6896_v53 }
 0x2ba   :  { %v1518_v33 = vpop.f32.mrf.mxu0  ;;  %v1591_v4 = vpop.f32.mrf.mxu1 }
 0x2bb   :  { %8532 = vst [vmem:[#allocation172_spill] sm:$0xff] %v6941_v37  ;;  %8533 = vst [vmem:[#allocation173_spill] sm:$0xff] %v6944_v13  ;;  %v6947_v57 = vadd.f32 %v1518_v33, %v6887_v0  ;;  %v6950_v48 = vadd.f32 %v1591_v4, %v6890_v63 }
 0x2bc   :  { %v1520_v28 = vpop.f32.mrf.mxu0  ;;  %v1593_v18 = vpop.f32.mrf.mxu1 }
 0x2bd   :  { %8534 = vst [vmem:[#allocation174_spill] sm:$0xff] %v6947_v57  ;;  %8535 = vst [vmem:[#allocation175_spill] sm:$0xff] %v6950_v48  ;;  %v6953_v9 = vadd.f32 %v1520_v28, %v6893_v62  ;;  %v6956_v39 = vadd.f32 %v1593_v18, %v6896_v53 }
 0x2be   :  { %v1524_v38 = vpop.f32.mrf.mxu0  ;;  %v1597_v37 = vpop.f32.mrf.mxu1 }
 0x2bf   :  { %8536 = vst [vmem:[#allocation176_spill] sm:$0xff] %v6953_v9  ;;  %8537 = vst [vmem:[#allocation177_spill] sm:$0xff] %v6956_v39  ;;  %v6959_v55 = vadd.f32 %v1524_v38, %v6887_v0  ;;  %v6962_v13 = vadd.f32 %v1597_v37, %v6890_v63 }
 0x2c0   :  { %v1526_v33 = vpop.f32.mrf.mxu0  ;;  %v1599_v57 = vpop.f32.mrf.mxu1 }
 0x2c1   :  { %8538 = vst [vmem:[#allocation178_spill] sm:$0xff] %v6959_v55  ;;  %8539 = vst [vmem:[#allocation179_spill] sm:$0xff] %v6962_v13  ;;  %v6965_v4 = vadd.f32 %v1526_v33, %v6893_v62  ;;  %v6968_v48 = vadd.f32 %v1599_v57, %v6896_v53 }
 0x2c2   :  { %v1528_v28 = vpop.f32.mrf.mxu0  ;;  %v1601_v9 = vpop.f32.mrf.mxu1 }
 0x2c3   :  { %8540 = vst [vmem:[#allocation180_spill] sm:$0xff] %v6965_v4  ;;  %8541 = vst [vmem:[#allocation181_spill] sm:$0xff] %v6968_v48  ;;  %v6971_v18 = vadd.f32 %v1528_v28, %v6887_v0  ;;  %v6974_v39 = vadd.f32 %v1601_v9, %v6890_v63  ;;  %v1349_v9 = vadd.f32 %v6701_v40, %v6716_v31 }
 0x2c4   :  { %v1530_v38 = vpop.f32.mrf.mxu0  ;;  %v1603_v55 = vpop.f32.mrf.mxu1 }
 0x2c5   :  { %8542 = vst [vmem:[#allocation182_spill] sm:$0xff] %v6971_v18  ;;  %8543 = vst [vmem:[#allocation183_spill] sm:$0xff] %v6974_v39  ;;  %v6977_v37 = vadd.f32 %v1530_v38, %v6893_v62  ;;  %v6980_v13 = vadd.f32 %v1603_v55, %v6896_v53  ;;  %v1422_v39 = vadd.f32 %v6703_v17, %v6719_v14 }
 0x2c6   :  { %v1351_v38 = vadd.f32 %v6708_v58, %v6725_v15 }
 0x2c7   :  { %8544 = vst [vmem:[#allocation184_spill] sm:$0xff] %v6977_v37  ;;  %8545 = vst [vmem:[#allocation185_spill] sm:$0xff] %v6980_v13  ;;  %v1424_v13 = vadd.f32 %v6710_v7, %v6728_v19  ;;  %v1495_v19 = vadd.f32 %v6876_v43, %v6887_v0  ;;  %v1568_v7 = vadd.f32 %v6878_v24, %v6890_v63 }
 0x2e7   :  { %v2486_v33 = vpop.f32.mrf.mxu0  ;;  %v2527_v4 = vpop.f32.mrf.mxu1 }
 0x2e8   :  { %v2616_v37 = vadd.f32 %v2486_v33, %v1349_v9  ;;  %v2618_v55 = vadd.f32 %v2527_v4, %v1422_v39 }
 0x2e9   :  { %v2488_v57 = vpop.f32.mrf.mxu0  ;;  %v2529_v48 = vpop.f32.mrf.mxu1 }
 0x2ea   :  { %v2617_v18 = vadd.f32 %v2488_v57, %v1351_v38  ;;  %v4780_v49 = vmul.f32 -1.442695, %v2616_v37 }
 0x2eb   :  { %v2490_v42 = vpop.f32.mrf.mxu0  ;;  %v2531_v54 = vpop.f32.mrf.mxu1 }
 0x2ec   :  { %v2619_v42 = vadd.f32 %v2529_v48, %v1424_v13  ;;  %v4782_v54 = vmul.f32 -1.442695, %v2618_v55  ;;  %4938 = vpow2.f32 %v4780_v49  ;;  %v1497_v49 = vadd.f32 %v6882_v44, %v6893_v62 }
 0x2ed   :  { %v2491_v51 = vpop.f32.mrf.mxu0  ;;  %v2532_v28 = vpop.f32.mrf.mxu1 }
 0x2ee   :  { %v4781_v51 = vmul.f32 -1.442695, %v2617_v18  ;;  %v4783_v28 = vmul.f32 -1.442695, %v2619_v42  ;;  %4940 = vpow2.f32 %v4782_v54  ;;  %v1570_v18 = vadd.f32 %v6884_v21, %v6896_v53  ;;  %v1672_v42 = vld [vmem:[%s8063_s2] sm:$0xff] }
 0x2f0   :  { %4942 = vpow2.f32 %v4781_v51 }
 0x2f1   :  { %4944 = vpow2.f32 %v4783_v28 }
 0x2f9   :  { %v4939_v40 = vpop.eup %4938 }
 0x2fa   :  { %v2642_v31 = vadd.f32 1.0, %v4939_v40 }
 0x2fb   :  { %v4941_v14 = vpop.eup %4940 }
 0x2fc   :  { %v2644_v58 = vadd.f32 1.0, %v4941_v14  ;;  %4946 = vrcp.f32 %v2642_v31 }
 0x2fd   :  { %v4943_v17 = vpop.eup %4942 }
 0x2fe   :  { %v4945_v15 = vpop.eup %4944  ;;  %v2643_v39 = vadd.f32 1.0, %v4943_v17  ;;  %4948 = vrcp.f32 %v2644_v58  ;;  %v1673_v17 = vld [vmem:[%s8063_s2 + $0x8] sm:$0xff] }
 0x2ff   :  { %v2645_v13 = vadd.f32 1.0, %v4945_v15 }
 0x300   :  { %4950 = vrcp.f32 %v2643_v39 }
 0x309   :  { %v4947_v53 = vpop.eup %4946 }
 0x30b   :  { %v4949_v21 = vpop.eup %4948 }
 0x30c   :  { %v2662_v40 = vmul.f32 %v4949_v21, %v1672_v42  ;;  %v8553_v21 = vld [vmem:[#allocation76_spill] sm:$0xff]  ;;  %v8554_v42 = vld [vmem:[#allocation77_spill] sm:$0xff] }
 0x30d   :  { %v4951_v54 = vpop.eup %4950 }
 0x327   :  { %v2568_v48 = vpop.f32.mrf.mxu0  ;;  %v2609_v4 = vpop.f32.mrf.mxu1 }
 0x328   :  { %v2620_v37 = vadd.f32 %v2568_v48, %v1495_v19  ;;  %v2622_v33 = vadd.f32 %v2609_v4, %v1568_v7 }
 0x329   :  { %v2570_v57 = vpop.f32.mrf.mxu0  ;;  %v2611_v9 = vpop.f32.mrf.mxu1 }
 0x32a   :  { %v4784_v0 = vmul.f32 -1.442695, %v2620_v37  ;;  %4952 = vtanh.f32 %v2622_v33  ;;  %v2621_v43 = vadd.f32 %v2570_v57, %v1497_v49  ;;  %v2623_v63 = vadd.f32 %v2611_v9, %v1570_v18 }
 0x32b   :  { %4954 = vrcp.f32 %v2645_v13  ;;  %v2572_v24 = vpop.f32.mrf.mxu0  ;;  %v2613_v62 = vpop.f32.mrf.mxu1 }
 0x32c   :  { %4956 = vpow2.f32 %v4784_v0  ;;  %v4785_v44 = vmul.f32 -1.442695, %v2621_v43  ;;  %v8547_v24 = vld [vmem:[#allocation70_spill] sm:$0xff]  ;;  %v8548_v62 = vld [vmem:[#allocation71_spill] sm:$0xff] }
 0x32d   :  { %4958 = vtanh.f32 %v2623_v63  ;;  %v2573_v38 = vpop.f32.mrf.mxu0  ;;  %v2614_v55 = vpop.f32.mrf.mxu1  ;;  %v8546_v63 = vld [vmem:[#allocation69_spill] sm:$0xff] }
 0x32e   :  { %4960 = vpow2.f32 %v4785_v44  ;;  %v8549_v44 = vld [vmem:[#allocation72_spill] sm:$0xff]  ;;  %v8550_v38 = vld [vmem:[#allocation73_spill] sm:$0xff]  ;;  %v8551_v55 = vld [vmem:[#allocation74_spill] sm:$0xff] }
 0x337   :  { %v4953_v51 = vpop.eup %4952 }
 0x338   :  { %v4955_v28 = vpop.eup %4954  ;;  %v2664_v14 = vmul.f32 %v4953_v51, %v4947_v53  ;;  %v8552_v53 = vld [vmem:[#allocation75_spill] sm:$0xff] }
 0x339   :  { %v4957_v31 = vpop.eup %4956  ;;  %v2663_v7 = vmul.f32 %v4955_v28, %v1673_v17  ;;  %v8556_v51 = vld [vmem:[#allocation79_spill] sm:$0xff]  ;;  %v8557_v28 = vld [vmem:[#allocation80_spill] sm:$0xff] }
 0x33a   :  { %v4959_v15 = vpop.eup %4958  ;;  %v2646_v58 = vadd.f32 1.0, %v4957_v31  ;;  %v7004_v39 = vadd.f32 %v2664_v14, %v2662_v40  ;;  %v8558_v40 = vld [vmem:[#allocation81_spill] sm:$0xff]  ;;  %v8559_v14 = vld [vmem:[#allocation82_spill] sm:$0xff]  ;;  %v8560_v17 = vld [vmem:[#allocation83_spill] sm:$0xff] }
 0x33b   :  { %v4961_v19 = vpop.eup %4960  ;;  %v2665_v49 = vmul.f32 %v4959_v15, %v4951_v54  ;;  %v8555_v54 = vld [vmem:[#allocation78_spill] sm:$0xff]  ;;  %v8561_v31 = vld [vmem:[#allocation84_spill] sm:$0xff]  ;;  %v8562_v15 = vld [vmem:[#allocation85_spill] sm:$0xff] }
 0x33c   :  { %4962 = vrcp.f32 %v2646_v58  ;;  %v2647_v13 = vadd.f32 1.0, %v4961_v19  ;;  %v8563_v58 = vld [vmem:[#allocation86_spill] sm:$0xff]  ;;  %v8564_v19 = vld [vmem:[#allocation87_spill] sm:$0xff] }
 0x33d   :  { %4964 = vtanh.f32 %v7004_v39  ;;  %v7007_v48 = vadd.f32 %v2665_v49, %v2663_v7  ;;  %v8565_v7 = vld [vmem:[#allocation88_spill] sm:$0xff]  ;;  %v8566_v49 = vld [vmem:[#allocation89_spill] sm:$0xff] }
 0x33e   :  { %4966 = vrcp.f32 %v2647_v13  ;;  %v8567_v13 = vld [vmem:[#allocation90_spill] sm:$0xff] }
 0x33f   :  { %4968 = vtanh.f32 %v7007_v48 }
 0x349   :  { %v4963_v4 = vpop.eup %4962 }
 0x34a   :  { %v4965_v18 = vpop.eup %4964 }
 0x34b   :  { %v4967_v37 = vpop.eup %4966  ;;  %v2670_v57 = vmul.f32 %v4965_v18, %v4963_v4  ;;  %v8568_v4 = vld [vmem:[#allocation91_spill] sm:$0xff]  ;;  %v8569_v18 = vld [vmem:[#allocation92_spill] sm:$0xff] }
 0x34c   :  { %v4969_v33 = vpop.eup %4968 }
 0x34d   :  { %v2671_v9 = vmul.f32 %v4969_v33, %v4967_v37  ;;  %v7010_v43 = vpack.c.bf16 %v2670_v57, %v2670_v57  ;;  %v8570_v37 = vld [vmem:[#allocation93_spill] sm:$0xff]  ;;  %v8571_v33 = vld [vmem:[#allocation94_spill] sm:$0xff]  ;;  %v8572_v57 = vld [vmem:[#allocation95_spill] sm:$0xff] }
 0x34f   :  { %v2682_v0 = vpack.c.bf16 %v2671_v9, %v2671_v9  ;;  %v8573_v9 = vld [vmem:[#allocation96_spill] sm:$0xff] }
 0x351   :  { %2715 = vmatprep.mubr.bf16.mxu0 %v2682_v0  ;;  %2756 = vmatprep.mubr.bf16.mxu1 %v2682_v0 }
 0x352   :  { %2716 = vmatmul.mubr.bf16.vlgmr.msra.gmra.mxu0 %v7010_v43  ;;  %2757 = vmatmul.mubr.bf16.vlgmr.msra.gmra.mxu1 %v7010_v43 }
 0x353   :  { %2766 = vmatpush1.bf16.msra.mxu0 %v6333_v16  ;;  %2807 = vmatpush1.bf16.msra.mxu1 %v8546_v63 }
 0x354   :  { %2797 = vmatprep.mubr.bf16.mxu0 %v2682_v0  ;;  %2838 = vmatprep.mubr.bf16.mxu1 %v2682_v0  ;;  %v8574_v0 = vld [vmem:[#allocation97_spill] sm:$0xff] }
 0x355   :  { %2767 = vmatprep.subr.bf16.mxu0 %v8547_v24  ;;  %2808 = vmatprep.subr.bf16.mxu1 %v8548_v62 }
 0x357   :  { %2768 = vmatpush1.bf16.msra.mxu0 %v8549_v44  ;;  %2809 = vmatpush1.bf16.msra.mxu1 %v8550_v38 }
 0x358   :  { %2769 = vmatprep.subr.bf16.mxu0 %v8551_v55  ;;  %2810 = vmatprep.subr.bf16.mxu1 %v8552_v53 }
 0x35b   :  { %2770 = vmatpush1.bf16.msra.mxu0 %v8553_v21  ;;  %2811 = vmatpush1.bf16.msra.mxu1 %v8554_v42 }
 0x35c   :  { %2771 = vmatprep.subr.bf16.mxu0 %v8555_v54  ;;  %2812 = vmatprep.subr.bf16.mxu1 %v8556_v51 }
 0x35f   :  { %2772 = vmatpush1.bf16.msra.mxu0 %v8557_v28  ;;  %2813 = vmatpush1.bf16.msra.mxu1 %v8558_v40 }
 0x360   :  { %2773 = vmatprep.subr.bf16.mxu0 %v8559_v14  ;;  %2814 = vmatprep.subr.bf16.mxu1 %v8560_v17 }
 0x363   :  { %2774 = vmatpush1.bf16.msra.mxu0 %v8561_v31  ;;  %2815 = vmatpush1.bf16.msra.mxu1 %v8562_v15 }
 0x364   :  { %2775 = vmatprep.subr.bf16.mxu0 %v8563_v58  ;;  %2816 = vmatprep.subr.bf16.mxu1 %v8564_v19  ;;  %v8575_v19 = vld [vmem:[#allocation98_spill] sm:$0xff] }
 0x367   :  { %2776 = vmatpush1.bf16.msra.mxu0 %v8565_v7  ;;  %2817 = vmatpush1.bf16.msra.mxu1 %v8566_v49  ;;  %v8576_v7 = vld [vmem:[#allocation99_spill] sm:$0xff]  ;;  %v8577_v49 = vld [vmem:[#allocation100_spill] sm:$0xff] }
 0x368   :  { %2777 = vmatprep.subr.bf16.mxu0 %v8567_v13  ;;  %2818 = vmatprep.subr.bf16.mxu1 %v8568_v4  ;;  %v8578_v13 = vld [vmem:[#allocation101_spill] sm:$0xff]  ;;  %v8579_v4 = vld [vmem:[#allocation102_spill] sm:$0xff] }
 0x36b   :  { %2778 = vmatpush1.bf16.msra.mxu0 %v8569_v18  ;;  %2819 = vmatpush1.bf16.msra.mxu1 %v8570_v37  ;;  %v8580_v18 = vld [vmem:[#allocation103_spill] sm:$0xff]  ;;  %v8581_v37 = vld [vmem:[#allocation104_spill] sm:$0xff] }
 0x36c   :  { %2779 = vmatprep.subr.bf16.mxu0 %v8571_v33  ;;  %2820 = vmatprep.subr.bf16.mxu1 %v8572_v57  ;;  %v8582_v33 = vld [vmem:[#allocation105_spill] sm:$0xff]  ;;  %v8583_v57 = vld [vmem:[#allocation106_spill] sm:$0xff] }
 0x36f   :  { %2780 = vmatpush1.bf16.msra.mxu0 %v8573_v9  ;;  %2821 = vmatpush1.bf16.msra.mxu1 %v8574_v0  ;;  %v8584_v9 = vld [vmem:[#allocation107_spill] sm:$0xff]  ;;  %v8585_v0 = vld [vmem:[#allocation108_spill] sm:$0xff] }
 0x370   :  { %2781 = vmatprep.subr.bf16.mxu0 %v8575_v19  ;;  %2822 = vmatprep.subr.bf16.mxu1 %v8576_v7  ;;  %v8586_v19 = vld [vmem:[#allocation109_spill] sm:$0xff]  ;;  %v8587_v7 = vld [vmem:[#allocation110_spill] sm:$0xff] }
 0x373   :  { %2782 = vmatpush2.bf16.msra.mxu0 %v8577_v49  ;;  %2823 = vmatpush2.bf16.msra.mxu1 %v8578_v13  ;;  %v8588_v49 = vld [vmem:[#allocation111_spill] sm:$0xff]  ;;  %v8589_v13 = vld [vmem:[#allocation112_spill] sm:$0xff] }
 0x374   :  { %2783 = vmatprep.subr.bf16.mxu0 %v8579_v4  ;;  %2824 = vmatprep.subr.bf16.mxu1 %v8580_v18  ;;  %v8590_v4 = vld [vmem:[#allocation113_spill] sm:$0xff]  ;;  %v8591_v18 = vld [vmem:[#allocation114_spill] sm:$0xff] }
 0x377   :  { %2784 = vmatpush2.bf16.msra.mxu0 %v8581_v37  ;;  %2825 = vmatpush2.bf16.msra.mxu1 %v8582_v33  ;;  %v8592_v37 = vld [vmem:[#allocation115_spill] sm:$0xff]  ;;  %v8593_v33 = vld [vmem:[#allocation116_spill] sm:$0xff] }
 0x378   :  { %2785 = vmatprep.subr.bf16.mxu0 %v8583_v57  ;;  %2826 = vmatprep.subr.bf16.mxu1 %v8584_v9  ;;  %v8594_v57 = vld [vmem:[#allocation117_spill] sm:$0xff]  ;;  %v8595_v9 = vld [vmem:[#allocation118_spill] sm:$0xff] }
 0x37b   :  { %2786 = vmatpush2.bf16.msra.mxu0 %v8585_v0  ;;  %2827 = vmatpush2.bf16.msra.mxu1 %v8586_v19  ;;  %v8596_v0 = vld [vmem:[#allocation119_spill] sm:$0xff]  ;;  %v8597_v19 = vld [vmem:[#allocation120_spill] sm:$0xff] }
 0x37c   :  { %2787 = vmatprep.subr.bf16.mxu0 %v8587_v7  ;;  %2828 = vmatprep.subr.bf16.mxu1 %v8588_v49 }
 0x37f   :  { %2788 = vmatpush2.bf16.msra.mxu0 %v8589_v13  ;;  %2829 = vmatpush2.bf16.msra.mxu1 %v8590_v4 }
 0x380   :  { %2789 = vmatprep.subr.bf16.mxu0 %v8591_v18  ;;  %2830 = vmatprep.subr.bf16.mxu1 %v8592_v37 }
 0x383   :  { %2790 = vmatpush2.bf16.msra.mxu0 %v8593_v33  ;;  %2831 = vmatpush2.bf16.msra.mxu1 %v8594_v57  ;;  %v8598_v57 = vld [vmem:[#allocation128_spill] sm:$0xff] }
 0x384   :  { %2791 = vmatprep.subr.bf16.mxu0 %v8595_v9  ;;  %2832 = vmatprep.subr.bf16.mxu1 %v8596_v0  ;;  %v8599_v9 = vld [vmem:[#allocation129_spill] sm:$0xff]  ;;  %v8600_v0 = vld [vmem:[#allocation3_spill] sm:$0xff] }
 0x387   :  { %2792 = vmatpush2.bf16.msra.mxu0 %v8597_v19  ;;  %2833 = vmatpush2.bf16.msra.mxu1 %v6651_v23  ;;  %v8601_v19 = vld [vmem:[#allocation4_spill] sm:$0xff] }
 0x388   :  { %2793 = vmatprep.subr.bf16.mxu0 %v6655_v27  ;;  %2834 = vmatprep.subr.bf16.mxu1 %v6657_v26  ;;  %v8602_v26 = vld [vmem:[#allocation5_spill] sm:$0xff] }
 0x38b   :  { %2794 = vmatpush2.bf16.msra.mxu0 %v6673_v32  ;;  %2835 = vmatpush2.bf16.msra.mxu1 %v6675_v50  ;;  %v8603_v32 = vld [vmem:[#allocation6_spill] sm:$0xff] }
 0x38c   :  { %2795 = vmatprep.subr.bf16.mxu0 %v6679_v8  ;;  %2836 = vmatprep.subr.bf16.mxu1 %v6681_v1  ;;  %v8604_v8 = vld [vmem:[#allocation8_spill] sm:$0xff] }
 0x38f   :  { %2796 = vmatpush2.bf16.msra.mxu0 %v8598_v57  ;;  %2837 = vmatpush2.bf16.msra.mxu1 %v8599_v9  ;;  %v8605_v57 = vld [vmem:[#allocation10_spill] sm:$0xff] }
 0x390   :  { %2914 = vmatprep.subr.bf16.mxu0 %v8600_v0  ;;  %2955 = vmatprep.subr.bf16.mxu1 %v8601_v19 }
 0x392   :  { %2798 = vmatmul.mubr.bf16.vlgmr.msra.gmra.mxu0 %v7010_v43  ;;  %2839 = vmatmul.mubr.bf16.vlgmr.msra.gmra.mxu1 %v7010_v43  ;;  %v8606_v43 = vld [vmem:[#allocation33_spill] sm:$0xff] }
 0x393   :  { %2915 = vmatpush1.bf16.msra.mxu0 %v8602_v26  ;;  %2956 = vmatpush1.bf16.msra.mxu1 %v8603_v32 }
 0x394   :  { %2916 = vmatprep.subr.bf16.mxu0 %v5929_v22  ;;  %2957 = vmatprep.subr.bf16.mxu1 %v8604_v8 }
 0x397   :  { %2917 = vmatpush1.bf16.msra.mxu0 %v5951_v25  ;;  %2958 = vmatpush1.bf16.msra.mxu1 %v8605_v57 }
 0x398   :  { %2918 = vmatprep.subr.bf16.mxu0 %v5957_v29  ;;  %2959 = vmatprep.subr.bf16.mxu1 %v5959_v30 }
 0x39b   :  { %2919 = vmatpush1.bf16.msra.mxu0 %v5975_v34  ;;  %2960 = vmatpush1.bf16.msra.mxu1 %v5977_v35 }
 0x39c   :  { %2920 = vmatprep.subr.bf16.mxu0 %v5981_v5  ;;  %2961 = vmatprep.subr.bf16.mxu1 %v5983_v36 }
 0x39f   :  { %2921 = vmatpush1.bf16.msra.mxu0 %v6003_v52  ;;  %2962 = vmatpush1.bf16.msra.mxu1 %v6005_v41  ;;  %v8643_v41 = vld [vmem:[#allocation131_spill] sm:$0xff]  ;;  %v8644_v52 = vld [vmem:[#allocation132_spill] sm:$0xff] }
 0x3a0   :  { %2922 = vmatprep.subr.bf16.mxu0 %v6009_v45  ;;  %2963 = vmatprep.subr.bf16.mxu1 %v6011_v46  ;;  %v8642_v45 = vld [vmem:[#allocation130_spill] sm:$0xff] }
 0x3a3   :  { %2923 = vmatpush1.bf16.msra.mxu0 %v6027_v56  ;;  %2964 = vmatpush1.bf16.msra.mxu1 %v6029_v59 }
 0x3a4   :  { %2924 = vmatprep.subr.bf16.mxu0 %v6033_v60  ;;  %2965 = vmatprep.subr.bf16.mxu1 %v6035_v61  ;;  %v8607_v60 = vld [vmem:[#allocation34_spill] sm:$0xff]  ;;  %v8608_v61 = vld [vmem:[#allocation35_spill] sm:$0xff] }
 0x3a7   :  { %2925 = vmatpush1.bf16.msra.mxu0 %v6055_v20  ;;  %2966 = vmatpush1.bf16.msra.mxu1 %v6057_v2  ;;  %v8609_v20 = vld [vmem:[#allocation36_spill] sm:$0xff]  ;;  %v8610_v2 = vld [vmem:[#allocation37_spill] sm:$0xff] }
 0x3a8   :  { %2926 = vmatprep.subr.bf16.mxu0 %v6064_v3  ;;  %2967 = vmatprep.subr.bf16.mxu1 %v6066_v6  ;;  %v8611_v3 = vld [vmem:[#allocation38_spill] sm:$0xff]  ;;  %v8612_v6 = vld [vmem:[#allocation39_spill] sm:$0xff] }
 0x3ab   :  { %2927 = vmatpush1.bf16.msra.mxu0 %v6084_v47  ;;  %2968 = vmatpush1.bf16.msra.mxu1 %v6086_v10  ;;  %v8613_v47 = vld [vmem:[#allocation40_spill] sm:$0xff]  ;;  %v8614_v10 = vld [vmem:[#allocation41_spill] sm:$0xff] }
 0x3ac   :  { %2928 = vmatprep.subr.bf16.mxu0 %v6090_v11  ;;  %2969 = vmatprep.subr.bf16.mxu1 %v6092_v12  ;;  %v8615_v11 = vld [vmem:[#allocation42_spill] sm:$0xff]  ;;  %v8616_v12 = vld [vmem:[#allocation43_spill] sm:$0xff] }
 0x3af   :  { %2929 = vmatpush1.bf16.msra.mxu0 %v8606_v43  ;;  %2970 = vmatpush1.bf16.msra.mxu1 %v8607_v60  ;;  %v8617_v43 = vld [vmem:[#allocation44_spill] sm:$0xff]  ;;  %v8618_v60 = vld [vmem:[#allocation45_spill] sm:$0xff] }
 0x3b0   :  { %2930 = vmatprep.subr.bf16.mxu0 %v8608_v61  ;;  %2971 = vmatprep.subr.bf16.mxu1 %v8609_v20  ;;  %v8619_v61 = vld [vmem:[#allocation46_spill] sm:$0xff]  ;;  %v8620_v20 = vld [vmem:[#allocation47_spill] sm:$0xff] }
 0x3b3   :  { %2931 = vmatpush2.bf16.msra.mxu0 %v8610_v2  ;;  %2972 = vmatpush2.bf16.msra.mxu1 %v8611_v3  ;;  %v8621_v2 = vld [vmem:[#allocation48_spill] sm:$0xff]  ;;  %v8622_v3 = vld [vmem:[#allocation49_spill] sm:$0xff] }
 0x3b4   :  { %2932 = vmatprep.subr.bf16.mxu0 %v8612_v6  ;;  %2973 = vmatprep.subr.bf16.mxu1 %v8613_v47  ;;  %v8623_v6 = vld [vmem:[#allocation50_spill] sm:$0xff]  ;;  %v8624_v47 = vld [vmem:[#allocation51_spill] sm:$0xff] }
 0x3b7   :  { %2933 = vmatpush2.bf16.msra.mxu0 %v8614_v10  ;;  %2974 = vmatpush2.bf16.msra.mxu1 %v8615_v11  ;;  %v8625_v10 = vld [vmem:[#allocation52_spill] sm:$0xff]  ;;  %v8626_v11 = vld [vmem:[#allocation53_spill] sm:$0xff] }
 0x3b8   :  { %2934 = vmatprep.subr.bf16.mxu0 %v8616_v12  ;;  %2975 = vmatprep.subr.bf16.mxu1 %v8617_v43  ;;  %v8627_v12 = vld [vmem:[#allocation54_spill] sm:$0xff]  ;;  %v8628_v43 = vld [vmem:[#allocation55_spill] sm:$0xff] }
 0x3bb   :  { %2935 = vmatpush2.bf16.msra.mxu0 %v8618_v60  ;;  %2976 = vmatpush2.bf16.msra.mxu1 %v8619_v61  ;;  %v8629_v60 = vld [vmem:[#allocation56_spill] sm:$0xff]  ;;  %v8630_v61 = vld [vmem:[#allocation57_spill] sm:$0xff] }
 0x3bc   :  { %2936 = vmatprep.subr.bf16.mxu0 %v8620_v20  ;;  %2977 = vmatprep.subr.bf16.mxu1 %v8621_v2  ;;  %v8631_v20 = vld [vmem:[#allocation58_spill] sm:$0xff]  ;;  %v8632_v2 = vld [vmem:[#allocation59_spill] sm:$0xff] }
 0x3bf   :  { %2937 = vmatpush2.bf16.msra.mxu0 %v8622_v3  ;;  %2978 = vmatpush2.bf16.msra.mxu1 %v8623_v6  ;;  %v8633_v3 = vld [vmem:[#allocation60_spill] sm:$0xff]  ;;  %v8634_v6 = vld [vmem:[#allocation61_spill] sm:$0xff] }
 0x3c0   :  { %2938 = vmatprep.subr.bf16.mxu0 %v8624_v47  ;;  %2979 = vmatprep.subr.bf16.mxu1 %v8625_v10  ;;  %v8635_v47 = vld [vmem:[#allocation62_spill] sm:$0xff]  ;;  %v8636_v10 = vld [vmem:[#allocation63_spill] sm:$0xff] }
 0x3c3   :  { %2939 = vmatpush2.bf16.msra.mxu0 %v8626_v11  ;;  %2980 = vmatpush2.bf16.msra.mxu1 %v8627_v12  ;;  %v8637_v11 = vld [vmem:[#allocation64_spill] sm:$0xff]  ;;  %v8638_v12 = vld [vmem:[#allocation65_spill] sm:$0xff] }
 0x3c4   :  { %2940 = vmatprep.subr.bf16.mxu0 %v8628_v43  ;;  %2981 = vmatprep.subr.bf16.mxu1 %v8629_v60  ;;  %v8639_v43 = vld [vmem:[#allocation66_spill] sm:$0xff]  ;;  %v8640_v60 = vld [vmem:[#allocation67_spill] sm:$0xff] }
 0x3c7   :  { %2941 = vmatpush2.bf16.msra.mxu0 %v8630_v61  ;;  %2982 = vmatpush2.bf16.msra.mxu1 %v8631_v20  ;;  %v8641_v61 = vld [vmem:[#allocation68_spill] sm:$0xff] }
 0x3c8   :  { %2942 = vmatprep.subr.bf16.mxu0 %v8632_v2  ;;  %2983 = vmatprep.subr.bf16.mxu1 %v8633_v3 }
 0x3cb   :  { %2943 = vmatpush2.bf16.msra.mxu0 %v8634_v6  ;;  %2984 = vmatpush2.bf16.msra.mxu1 %v8635_v47 }
 0x3cc   :  { %2944 = vmatprep.subr.bf16.mxu0 %v8636_v10  ;;  %2985 = vmatprep.subr.bf16.mxu1 %v8637_v11 }
 0x3cf   :  { %2945 = vmatpush2.bf16.msra.mxu0 %v8638_v12  ;;  %2986 = vmatpush2.bf16.msra.mxu1 %v8639_v43  ;;  %v8645_v43 = vld [vmem:[#allocation133_spill] sm:$0xff] }
 0x3d0   :  { %2996 = vmatprep.subr.bf16.mxu0 %v8640_v60  ;;  %3037 = vmatprep.subr.bf16.mxu1 %v8641_v61 }
 0x412   :  { %v2717_v20 = vpop.f32.mrf.mxu0  ;;  %v2758_v2 = vpop.f32.mrf.mxu1 }
 0x413   :  { %v2847_v10 = vadd.f32 %v2717_v20, %v8642_v45  ;;  %v2849_v11 = vadd.f32 %v2758_v2, %v8643_v41  ;;  %v8646_v2 = vld [vmem:[#allocation158_spill] sm:$0xff] }
 0x414   :  { %v2719_v59 = vpop.f32.mrf.mxu0  ;;  %v2760_v3 = vpop.f32.mrf.mxu1 }
 0x415   :  { %v2848_v12 = vadd.f32 %v2719_v59, %v8644_v52  ;;  %v4786_v36 = vmul.f32 -1.442695, %v2847_v10  ;;  %v2850_v5 = vadd.f32 %v2760_v3, %v8645_v43  ;;  %v4788_v60 = vmul.f32 -1.442695, %v2849_v11  ;;  %v8647_v10 = vld [vmem:[#allocation159_spill] sm:$0xff] }
 0x416   :  { %v2721_v56 = vpop.f32.mrf.mxu0  ;;  %v2762_v6 = vpop.f32.mrf.mxu1 }
 0x417   :  { %v4787_v35 = vmul.f32 -1.442695, %v2848_v12  ;;  %4970 = vpow2.f32 %v4786_v36  ;;  %v4789_v61 = vmul.f32 -1.442695, %v2850_v5  ;;  %v8649_v12 = vld [vmem:[#allocation161_spill] sm:$0xff] }
 0x418   :  { %v2722_v46 = vpop.f32.mrf.mxu0  ;;  %v2763_v47 = vpop.f32.mrf.mxu1  ;;  %4972 = vpow2.f32 %v4788_v60 }
 0x419   :  { %4974 = vpow2.f32 %v4787_v35 }
 0x41a   :  { %4976 = vpow2.f32 %v4789_v61  ;;  %v8648_v61 = vld [vmem:[#allocation160_spill] sm:$0xff] }
 0x424   :  { %v4971_v56 = vpop.eup %4970 }
 0x425   :  { %v4973_v6 = vpop.eup %4972  ;;  %v2873_v47 = vadd.f32 1.0, %v4971_v56 }
 0x426   :  { %v4975_v46 = vpop.eup %4974  ;;  %v2875_v45 = vadd.f32 1.0, %v4973_v6 }
 0x427   :  { %v4977_v34 = vpop.eup %4976  ;;  %v2874_v20 = vadd.f32 1.0, %v4975_v46  ;;  %4978 = vrcp.f32 %v2873_v47 }
 0x428   :  { %v2876_v41 = vadd.f32 1.0, %v4977_v34  ;;  %4980 = vrcp.f32 %v2875_v45 }
 0x429   :  { %4982 = vrcp.f32 %v2874_v20 }
 0x434   :  { %v4979_v45 = vpop.eup %4978 }
 0x452   :  { %v2799_v52 = vpop.f32.mrf.mxu0  ;;  %v2840_v59 = vpop.f32.mrf.mxu1 }
 0x453   :  { %v2851_v3 = vadd.f32 %v2799_v52, %v8646_v2  ;;  %v2853_v36 = vadd.f32 %v2840_v59, %v8647_v10  ;;  %v4981_v52 = vpop.eup %4980 }
 0x454   :  { %v2801_v5 = vpop.f32.mrf.mxu0  ;;  %v2842_v35 = vpop.f32.mrf.mxu1 }
 0x455   :  { %v4790_v60 = vmul.f32 -1.442695, %v2851_v3  ;;  %4984 = vtanh.f32 %v2853_v36  ;;  %v2852_v11 = vadd.f32 %v2801_v5, %v8648_v61  ;;  %v2854_v43 = vadd.f32 %v2842_v35, %v8649_v12  ;;  %v4983_v20 = vpop.eup %4982 }
 0x456   :  { %4986 = vrcp.f32 %v2876_v41  ;;  %v2803_v56 = vpop.f32.mrf.mxu0  ;;  %v2844_v6 = vpop.f32.mrf.mxu1  ;;  %v2893_v3 = vmul.f32 %v4981_v52, %v7004_v39 }
 0x457   :  { %4988 = vpow2.f32 %v4790_v60  ;;  %v4791_v34 = vmul.f32 -1.442695, %v2852_v11 }
 0x458   :  { %4990 = vtanh.f32 %v2854_v43  ;;  %v2804_v46 = vpop.f32.mrf.mxu0  ;;  %v2845_v47 = vpop.f32.mrf.mxu1 }
 0x459   :  { %4992 = vpow2.f32 %v4791_v34 }
 0x462   :  { %v4985_v59 = vpop.eup %4984 }
 0x463   :  { %v4987_v2 = vpop.eup %4986  ;;  %v2895_v10 = vmul.f32 %v4985_v59, %v4979_v45  ;;  %v8652_v59 = vld [vmem:[#allocation89_spill] sm:$0xff] }
 0x464   :  { %v4989_v36 = vpop.eup %4988  ;;  %v2894_v60 = vmul.f32 %v4987_v2, %v7007_v48  ;;  %v8650_v48 = vld [vmem:[#allocation87_spill] sm:$0xff]  ;;  %v8653_v2 = vld [vmem:[#allocation90_spill] sm:$0xff] }
 0x465   :  { %v4991_v5 = vpop.eup %4990  ;;  %v2877_v35 = vadd.f32 1.0, %v4989_v36  ;;  %v7153_v41 = vadd.f32 %v2895_v10, %v2893_v3  ;;  %v8654_v3 = vld [vmem:[#allocation91_spill] sm:$0xff]  ;;  %v8655_v10 = vld [vmem:[#allocation92_spill] sm:$0xff]  ;;  %v8656_v36 = vld [vmem:[#allocation93_spill] sm:$0xff] }
 0x466   :  { %v4993_v61 = vpop.eup %4992  ;;  %v2896_v11 = vmul.f32 %v4991_v5, %v4983_v20  ;;  %v8651_v20 = vld [vmem:[#allocation88_spill] sm:$0xff]  ;;  %v8657_v5 = vld [vmem:[#allocation94_spill] sm:$0xff] }
 0x467   :  { %4994 = vrcp.f32 %v2877_v35  ;;  %v2878_v12 = vadd.f32 1.0, %v4993_v61  ;;  %v8658_v35 = vld [vmem:[#allocation95_spill] sm:$0xff]  ;;  %v8659_v61 = vld [vmem:[#allocation96_spill] sm:$0xff] }
 0x468   :  { %4996 = vtanh.f32 %v7153_v41  ;;  %v7157_v43 = vadd.f32 %v2896_v11, %v2894_v60  ;;  %v8660_v60 = vld [vmem:[#allocation97_spill] sm:$0xff]  ;;  %v8661_v11 = vld [vmem:[#allocation98_spill] sm:$0xff] }
 0x469   :  { %4998 = vrcp.f32 %v2878_v12  ;;  %v8662_v12 = vld [vmem:[#allocation99_spill] sm:$0xff] }
 0x46a   :  { %5000 = vtanh.f32 %v7157_v43 }
 0x474   :  { %v4995_v39 = vpop.eup %4994 }
 0x475   :  { %v4997_v56 = vpop.eup %4996 }
 0x476   :  { %v4999_v6 = vpop.eup %4998  ;;  %v2901_v46 = vmul.f32 %v4997_v56, %v4995_v39  ;;  %v8663_v39 = vld [vmem:[#allocation100_spill] sm:$0xff]  ;;  %v8664_v56 = vld [vmem:[#allocation101_spill] sm:$0xff] }
 0x477   :  { %v5001_v34 = vpop.eup %5000 }
 0x478   :  { %v2902_v47 = vmul.f32 %v5001_v34, %v4999_v6  ;;  %v7160_v52 = vpack.c.bf16 %v2901_v46, %v2901_v46  ;;  %v8665_v6 = vld [vmem:[#allocation102_spill] sm:$0xff]  ;;  %v8666_v34 = vld [vmem:[#allocation103_spill] sm:$0xff]  ;;  %v8667_v46 = vld [vmem:[#allocation104_spill] sm:$0xff] }
 0x47a   :  { %v2913_v45 = vpack.c.bf16 %v2902_v47, %v2902_v47  ;;  %v8668_v47 = vld [vmem:[#allocation105_spill] sm:$0xff] }
 0x47c   :  { %2946 = vmatprep.mubr.bf16.mxu0 %v2913_v45  ;;  %2987 = vmatprep.mubr.bf16.mxu1 %v2913_v45 }
 0x47d   :  { %2947 = vmatmul.mubr.bf16.vlgmr.msra.gmra.mxu0 %v7160_v52  ;;  %2988 = vmatmul.mubr.bf16.vlgmr.msra.gmra.mxu1 %v7160_v52 }
 0x47e   :  { %2997 = vmatpush1.bf16.msra.mxu0 %v6333_v16  ;;  %3038 = vmatpush1.bf16.msra.mxu1 %v8546_v63 }
 0x47f   :  { %3028 = vmatprep.mubr.bf16.mxu0 %v2913_v45  ;;  %3069 = vmatprep.mubr.bf16.mxu1 %v2913_v45  ;;  %v8669_v45 = vld [vmem:[#allocation106_spill] sm:$0xff] }
 0x480   :  { %2998 = vmatprep.subr.bf16.mxu0 %v8547_v24  ;;  %3039 = vmatprep.subr.bf16.mxu1 %v8548_v62 }
 0x482   :  { %2999 = vmatpush1.bf16.msra.mxu0 %v8549_v44  ;;  %3040 = vmatpush1.bf16.msra.mxu1 %v8550_v38 }
 0x483   :  { %3000 = vmatprep.subr.bf16.mxu0 %v8551_v55  ;;  %3041 = vmatprep.subr.bf16.mxu1 %v8552_v53 }
 0x486   :  { %3001 = vmatpush1.bf16.msra.mxu0 %v8553_v21  ;;  %3042 = vmatpush1.bf16.msra.mxu1 %v8554_v42 }
 0x487   :  { %3002 = vmatprep.subr.bf16.mxu0 %v8555_v54  ;;  %3043 = vmatprep.subr.bf16.mxu1 %v8556_v51 }
 0x48a   :  { %3003 = vmatpush1.bf16.msra.mxu0 %v8557_v28  ;;  %3044 = vmatpush1.bf16.msra.mxu1 %v8558_v40 }
 0x48b   :  { %3004 = vmatprep.subr.bf16.mxu0 %v8559_v14  ;;  %3045 = vmatprep.subr.bf16.mxu1 %v8560_v17 }
 0x48e   :  { %3005 = vmatpush1.bf16.msra.mxu0 %v8561_v31  ;;  %3046 = vmatpush1.bf16.msra.mxu1 %v8562_v15 }
 0x48f   :  { %3006 = vmatprep.subr.bf16.mxu0 %v8563_v58  ;;  %3047 = vmatprep.subr.bf16.mxu1 %v8650_v48 }
 0x492   :  { %3007 = vmatpush1.bf16.msra.mxu0 %v8651_v20  ;;  %3048 = vmatpush1.bf16.msra.mxu1 %v8652_v59 }
 0x493   :  { %3008 = vmatprep.subr.bf16.mxu0 %v8653_v2  ;;  %3049 = vmatprep.subr.bf16.mxu1 %v8654_v3 }
 0x496   :  { %3009 = vmatpush1.bf16.msra.mxu0 %v8655_v10  ;;  %3050 = vmatpush1.bf16.msra.mxu1 %v8656_v36 }
 0x497   :  { %3010 = vmatprep.subr.bf16.mxu0 %v8657_v5  ;;  %3051 = vmatprep.subr.bf16.mxu1 %v8658_v35 }
 0x49a   :  { %3011 = vmatpush1.bf16.msra.mxu0 %v8659_v61  ;;  %3052 = vmatpush1.bf16.msra.mxu1 %v8660_v60  ;;  %v8670_v61 = vld [vmem:[#allocation107_spill] sm:$0xff]  ;;  %v8671_v60 = vld [vmem:[#allocation108_spill] sm:$0xff] }
 0x49b   :  { %3012 = vmatprep.subr.bf16.mxu0 %v8661_v11  ;;  %3053 = vmatprep.subr.bf16.mxu1 %v8662_v12  ;;  %v8672_v11 = vld [vmem:[#allocation109_spill] sm:$0xff] }
 0x49e   :  { %3013 = vmatpush2.bf16.msra.mxu0 %v8663_v39  ;;  %3054 = vmatpush2.bf16.msra.mxu1 %v8664_v56 }
 0x49f   :  { %3014 = vmatprep.subr.bf16.mxu0 %v8665_v6  ;;  %3055 = vmatprep.subr.bf16.mxu1 %v8666_v34 }
 0x4a2   :  { %3015 = vmatpush2.bf16.msra.mxu0 %v8667_v46  ;;  %3056 = vmatpush2.bf16.msra.mxu1 %v8668_v47 }
 0x4a3   :  { %3016 = vmatprep.subr.bf16.mxu0 %v8669_v45  ;;  %3057 = vmatprep.subr.bf16.mxu1 %v8670_v61  ;;  %v8673_v45 = vld [vmem:[#allocation117_spill] sm:$0xff]  ;;  %v8674_v61 = vld [vmem:[#allocation118_spill] sm:$0xff] }
 0x4a6   :  { %3017 = vmatpush2.bf16.msra.mxu0 %v8671_v60  ;;  %3058 = vmatpush2.bf16.msra.mxu1 %v8672_v11  ;;  %v8675_v60 = vld [vmem:[#allocation119_spill] sm:$0xff]  ;;  %v8676_v11 = vld [vmem:[#allocation120_spill] sm:$0xff] }
 0x4a7   :  { %3018 = vmatprep.subr.bf16.mxu0 %v8587_v7  ;;  %3059 = vmatprep.subr.bf16.mxu1 %v8588_v49 }
 0x4aa   :  { %3019 = vmatpush2.bf16.msra.mxu0 %v8589_v13  ;;  %3060 = vmatpush2.bf16.msra.mxu1 %v8590_v4  ;;  %v8677_v13 = vld [vmem:[#allocation123_spill] sm:$0xff]  ;;  %v8678_v4 = vld [vmem:[#allocation124_spill] sm:$0xff] }
 0x4ab   :  { %3020 = vmatprep.subr.bf16.mxu0 %v8591_v18  ;;  %3061 = vmatprep.subr.bf16.mxu1 %v8592_v37  ;;  %v8679_v37 = vld [vmem:[#allocation126_spill] sm:$0xff] }
 0x4ae   :  { %3021 = vmatpush2.bf16.msra.mxu0 %v8593_v33  ;;  %3062 = vmatpush2.bf16.msra.mxu1 %v8673_v45  ;;  %v8680_v45 = vld [vmem:[#allocation128_spill] sm:$0xff] }
 0x4af   :  { %3022 = vmatprep.subr.bf16.mxu0 %v8674_v61  ;;  %3063 = vmatprep.subr.bf16.mxu1 %v8675_v60 }
 0x4b2   :  { %3023 = vmatpush2.bf16.msra.mxu0 %v8676_v11  ;;  %3064 = vmatpush2.bf16.msra.mxu1 %v6651_v23 }
 0x4b3   :  { %3024 = vmatprep.subr.bf16.mxu0 %v6655_v27  ;;  %3065 = vmatprep.subr.bf16.mxu1 %v8677_v13 }
 0x4b6   :  { %3025 = vmatpush2.bf16.msra.mxu0 %v8678_v4  ;;  %3066 = vmatpush2.bf16.msra.mxu1 %v6675_v50  ;;  %v8738_v50 = vld [vmem:[#allocation135_spill] sm:$0xff]  ;;  %v8739_v4 = vld [vmem:[#allocation136_spill] sm:$0xff] }
 0x4b7   :  { %3026 = vmatprep.subr.bf16.mxu0 %v8679_v37  ;;  %3067 = vmatprep.subr.bf16.mxu1 %v6681_v1  ;;  %v8737_v37 = vld [vmem:[#allocation134_spill] sm:$0xff] }
 0x4ba   :  { %3027 = vmatpush2.bf16.msra.mxu0 %v8680_v45  ;;  %3068 = vmatpush2.bf16.msra.mxu1 %v8599_v9 }
 0x4bb   :  { %3145 = vmatprep.subr.bf16.mxu0 %v8600_v0  ;;  %3186 = vmatprep.subr.bf16.mxu1 %v8601_v19  ;;  %v8681_v19 = vld [vmem:[#allocation13_spill] sm:$0xff]  ;;  %v8682_v0 = vld [vmem:[#allocation14_spill] sm:$0xff] }
 0x4bd   :  { %3029 = vmatmul.mubr.bf16.vlgmr.msra.gmra.mxu0 %v7160_v52  ;;  %3070 = vmatmul.mubr.bf16.vlgmr.msra.gmra.mxu1 %v7160_v52  ;;  %v8683_v52 = vld [vmem:[#allocation15_spill] sm:$0xff] }
 0x4be   :  { %3146 = vmatpush1.bf16.msra.mxu0 %v8602_v26  ;;  %3187 = vmatpush1.bf16.msra.mxu1 %v8603_v32  ;;  %v8684_v26 = vld [vmem:[#allocation16_spill] sm:$0xff]  ;;  %v8685_v32 = vld [vmem:[#allocation17_spill] sm:$0xff] }
 0x4bf   :  { %3147 = vmatprep.subr.bf16.mxu0 %v5929_v22  ;;  %3188 = vmatprep.subr.bf16.mxu1 %v8604_v8  ;;  %v8686_v22 = vld [vmem:[#allocation18_spill] sm:$0xff]  ;;  %v8687_v8 = vld [vmem:[#allocation19_spill] sm:$0xff] }
 0x4c2   :  { %3148 = vmatpush1.bf16.msra.mxu0 %v5951_v25  ;;  %3189 = vmatpush1.bf16.msra.mxu1 %v8605_v57  ;;  %v8688_v25 = vld [vmem:[#allocation20_spill] sm:$0xff]  ;;  %v8689_v57 = vld [vmem:[#allocation21_spill] sm:$0xff] }
 0x4c3   :  { %3149 = vmatprep.subr.bf16.mxu0 %v5957_v29  ;;  %3190 = vmatprep.subr.bf16.mxu1 %v5959_v30  ;;  %v8690_v29 = vld [vmem:[#allocation22_spill] sm:$0xff]  ;;  %v8691_v30 = vld [vmem:[#allocation23_spill] sm:$0xff] }
 0x4c6   :  { %3150 = vmatpush1.bf16.msra.mxu0 %v8681_v19  ;;  %3191 = vmatpush1.bf16.msra.mxu1 %v8682_v0  ;;  %v8692_v19 = vld [vmem:[#allocation24_spill] sm:$0xff]  ;;  %v8693_v0 = vld [vmem:[#allocation25_spill] sm:$0xff] }
 0x4c7   :  { %3151 = vmatprep.subr.bf16.mxu0 %v8683_v52  ;;  %3192 = vmatprep.subr.bf16.mxu1 %v8684_v26  ;;  %v8694_v52 = vld [vmem:[#allocation26_spill] sm:$0xff]  ;;  %v8695_v26 = vld [vmem:[#allocation27_spill] sm:$0xff] }
 0x4ca   :  { %3152 = vmatpush1.bf16.msra.mxu0 %v8685_v32  ;;  %3193 = vmatpush1.bf16.msra.mxu1 %v8686_v22  ;;  %v8696_v32 = vld [vmem:[#allocation28_spill] sm:$0xff]  ;;  %v8697_v22 = vld [vmem:[#allocation29_spill] sm:$0xff] }
 0x4cb   :  { %3153 = vmatprep.subr.bf16.mxu0 %v8687_v8  ;;  %3194 = vmatprep.subr.bf16.mxu1 %v8688_v25  ;;  %v8698_v8 = vld [vmem:[#allocation30_spill] sm:$0xff]  ;;  %v8699_v25 = vld [vmem:[#allocation31_spill] sm:$0xff] }
 0x4ce   :  { %3154 = vmatpush1.bf16.msra.mxu0 %v8689_v57  ;;  %3195 = vmatpush1.bf16.msra.mxu1 %v8690_v29  ;;  %v8700_v57 = vld [vmem:[#allocation32_spill] sm:$0xff]  ;;  %v8701_v29 = vld [vmem:[#allocation33_spill] sm:$0xff] }
 0x4cf   :  { %3155 = vmatprep.subr.bf16.mxu0 %v8691_v30  ;;  %3196 = vmatprep.subr.bf16.mxu1 %v8692_v19  ;;  %v8702_v30 = vld [vmem:[#allocation34_spill] sm:$0xff]  ;;  %v8703_v19 = vld [vmem:[#allocation35_spill] sm:$0xff] }
 0x4d2   :  { %3156 = vmatpush1.bf16.msra.mxu0 %v8693_v0  ;;  %3197 = vmatpush1.bf16.msra.mxu1 %v8694_v52  ;;  %v8704_v0 = vld [vmem:[#allocation36_spill] sm:$0xff]  ;;  %v8705_v52 = vld [vmem:[#allocation37_spill] sm:$0xff] }
 0x4d3   :  { %3157 = vmatprep.subr.bf16.mxu0 %v8695_v26  ;;  %3198 = vmatprep.subr.bf16.mxu1 %v8696_v32  ;;  %v8706_v26 = vld [vmem:[#allocation38_spill] sm:$0xff]  ;;  %v8707_v32 = vld [vmem:[#allocation39_spill] sm:$0xff] }
 0x4d6   :  { %3158 = vmatpush1.bf16.msra.mxu0 %v8697_v22  ;;  %3199 = vmatpush1.bf16.msra.mxu1 %v8698_v8  ;;  %v8708_v22 = vld [vmem:[#allocation40_spill] sm:$0xff]  ;;  %v8709_v8 = vld [vmem:[#allocation41_spill] sm:$0xff] }
 0x4d7   :  { %3159 = vmatprep.subr.bf16.mxu0 %v8699_v25  ;;  %3200 = vmatprep.subr.bf16.mxu1 %v8700_v57  ;;  %v8710_v25 = vld [vmem:[#allocation42_spill] sm:$0xff]  ;;  %v8711_v57 = vld [vmem:[#allocation43_spill] sm:$0xff] }
 0x4da   :  { %3160 = vmatpush1.bf16.msra.mxu0 %v8701_v29  ;;  %3201 = vmatpush1.bf16.msra.mxu1 %v8702_v30  ;;  %v8712_v29 = vld [vmem:[#allocation44_spill] sm:$0xff]  ;;  %v8713_v30 = vld [vmem:[#allocation45_spill] sm:$0xff] }
 0x4db   :  { %3161 = vmatprep.subr.bf16.mxu0 %v8703_v19  ;;  %3202 = vmatprep.subr.bf16.mxu1 %v8704_v0  ;;  %v8714_v19 = vld [vmem:[#allocation46_spill] sm:$0xff]  ;;  %v8715_v0 = vld [vmem:[#allocation47_spill] sm:$0xff] }
 0x4de   :  { %3162 = vmatpush2.bf16.msra.mxu0 %v8705_v52  ;;  %3203 = vmatpush2.bf16.msra.mxu1 %v8706_v26  ;;  %v8716_v52 = vld [vmem:[#allocation48_spill] sm:$0xff]  ;;  %v8717_v26 = vld [vmem:[#allocation49_spill] sm:$0xff] }
 0x4df   :  { %3163 = vmatprep.subr.bf16.mxu0 %v8707_v32  ;;  %3204 = vmatprep.subr.bf16.mxu1 %v8708_v22  ;;  %v8718_v32 = vld [vmem:[#allocation50_spill] sm:$0xff]  ;;  %v8719_v22 = vld [vmem:[#allocation51_spill] sm:$0xff] }
 0x4e2   :  { %3164 = vmatpush2.bf16.msra.mxu0 %v8709_v8  ;;  %3205 = vmatpush2.bf16.msra.mxu1 %v8710_v25  ;;  %v8720_v8 = vld [vmem:[#allocation52_spill] sm:$0xff]  ;;  %v8721_v25 = vld [vmem:[#allocation53_spill] sm:$0xff] }
 0x4e3   :  { %3165 = vmatprep.subr.bf16.mxu0 %v8711_v57  ;;  %3206 = vmatprep.subr.bf16.mxu1 %v8712_v29  ;;  %v8722_v57 = vld [vmem:[#allocation54_spill] sm:$0xff]  ;;  %v8723_v29 = vld [vmem:[#allocation55_spill] sm:$0xff] }
 0x4e6   :  { %3166 = vmatpush2.bf16.msra.mxu0 %v8713_v30  ;;  %3207 = vmatpush2.bf16.msra.mxu1 %v8714_v19  ;;  %v8724_v30 = vld [vmem:[#allocation56_spill] sm:$0xff]  ;;  %v8725_v19 = vld [vmem:[#allocation57_spill] sm:$0xff] }
 0x4e7   :  { %3167 = vmatprep.subr.bf16.mxu0 %v8715_v0  ;;  %3208 = vmatprep.subr.bf16.mxu1 %v8716_v52  ;;  %v8726_v0 = vld [vmem:[#allocation58_spill] sm:$0xff]  ;;  %v8727_v52 = vld [vmem:[#allocation59_spill] sm:$0xff] }
 0x4ea   :  { %3168 = vmatpush2.bf16.msra.mxu0 %v8717_v26  ;;  %3209 = vmatpush2.bf16.msra.mxu1 %v8718_v32  ;;  %v8728_v26 = vld [vmem:[#allocation60_spill] sm:$0xff]  ;;  %v8729_v32 = vld [vmem:[#allocation61_spill] sm:$0xff] }
 0x4eb   :  { %3169 = vmatprep.subr.bf16.mxu0 %v8719_v22  ;;  %3210 = vmatprep.subr.bf16.mxu1 %v8720_v8  ;;  %v8730_v22 = vld [vmem:[#allocation62_spill] sm:$0xff]  ;;  %v8731_v8 = vld [vmem:[#allocation63_spill] sm:$0xff] }
 0x4ee   :  { %3170 = vmatpush2.bf16.msra.mxu0 %v8721_v25  ;;  %3211 = vmatpush2.bf16.msra.mxu1 %v8722_v57  ;;  %v8732_v25 = vld [vmem:[#allocation64_spill] sm:$0xff]  ;;  %v8733_v57 = vld [vmem:[#allocation65_spill] sm:$0xff] }
 0x4ef   :  { %3171 = vmatprep.subr.bf16.mxu0 %v8723_v29  ;;  %3212 = vmatprep.subr.bf16.mxu1 %v8724_v30  ;;  %v8734_v29 = vld [vmem:[#allocation66_spill] sm:$0xff]  ;;  %v8735_v30 = vld [vmem:[#allocation67_spill] sm:$0xff] }
 0x4f2   :  { %3172 = vmatpush2.bf16.msra.mxu0 %v8725_v19  ;;  %3213 = vmatpush2.bf16.msra.mxu1 %v8726_v0  ;;  %v8736_v19 = vld [vmem:[#allocation68_spill] sm:$0xff] }
 0x4f3   :  { %3173 = vmatprep.subr.bf16.mxu0 %v8727_v52  ;;  %3214 = vmatprep.subr.bf16.mxu1 %v8728_v26 }
 0x4f6   :  { %3174 = vmatpush2.bf16.msra.mxu0 %v8729_v32  ;;  %3215 = vmatpush2.bf16.msra.mxu1 %v8730_v22 }
 0x4f7   :  { %3175 = vmatprep.subr.bf16.mxu0 %v8731_v8  ;;  %3216 = vmatprep.subr.bf16.mxu1 %v8732_v25 }
 0x4fa   :  { %3176 = vmatpush2.bf16.msra.mxu0 %v8733_v57  ;;  %3217 = vmatpush2.bf16.msra.mxu1 %v8734_v29  ;;  %v8740_v29 = vld [vmem:[#allocation137_spill] sm:$0xff] }
 0x4fb   :  { %3227 = vmatprep.subr.bf16.mxu0 %v8735_v30  ;;  %3268 = vmatprep.subr.bf16.mxu1 %v8736_v19 }
 0x53d   :  { %v2948_v0 = vpop.f32.mrf.mxu0  ;;  %v2989_v52 = vpop.f32.mrf.mxu1 }
 0x53e   :  { %v3078_v8 = vadd.f32 %v2948_v0, %v8737_v37  ;;  %v3080_v25 = vadd.f32 %v2989_v52, %v8738_v50 }
 0x53f   :  { %v2950_v9 = vpop.f32.mrf.mxu0  ;;  %v2991_v26 = vpop.f32.mrf.mxu1 }
 0x540   :  { %v3079_v57 = vadd.f32 %v2950_v9, %v8739_v4  ;;  %v4792_v13 = vmul.f32 -1.442695, %v3078_v8  ;;  %v3081_v27 = vadd.f32 %v2991_v26, %v8740_v29  ;;  %v4794_v30 = vmul.f32 -1.442695, %v3080_v25  ;;  %v8741_v29 = vld [vmem:[#allocation162_spill] sm:$0xff]  ;;  %v8742_v26 = vld [vmem:[#allocation163_spill] sm:$0xff] }
 0x541   :  { %v2952_v45 = vpop.f32.mrf.mxu0  ;;  %v2993_v32 = vpop.f32.mrf.mxu1  ;;  %v8744_v9 = vld [vmem:[#allocation165_spill] sm:$0xff] }
 0x542   :  { %v4793_v23 = vmul.f32 -1.442695, %v3079_v57  ;;  %5002 = vpow2.f32 %v4792_v13  ;;  %v4795_v19 = vmul.f32 -1.442695, %v3081_v27 }
 0x543   :  { %v2953_v1 = vpop.f32.mrf.mxu0  ;;  %v2994_v22 = vpop.f32.mrf.mxu1  ;;  %5004 = vpow2.f32 %v4794_v30 }
 0x544   :  { %5006 = vpow2.f32 %v4793_v23 }
 0x545   :  { %5008 = vpow2.f32 %v4795_v19  ;;  %v8743_v19 = vld [vmem:[#allocation164_spill] sm:$0xff] }
 0x54f   :  { %v5003_v45 = vpop.eup %5002 }
 0x550   :  { %v5005_v32 = vpop.eup %5004  ;;  %v3104_v22 = vadd.f32 1.0, %v5003_v45 }
 0x551   :  { %v5007_v1 = vpop.eup %5006  ;;  %v3106_v37 = vadd.f32 1.0, %v5005_v32 }
 0x552   :  { %v5009_v11 = vpop.eup %5008  ;;  %v3105_v0 = vadd.f32 1.0, %v5007_v1  ;;  %5010 = vrcp.f32 %v3104_v22 }
 0x553   :  { %v3107_v50 = vadd.f32 1.0, %v5009_v11  ;;  %5012 = vrcp.f32 %v3106_v37 }
 0x554   :  { %5014 = vrcp.f32 %v3105_v0 }
 0x55f   :  { %v5011_v37 = vpop.eup %5010 }
 0x57d   :  { %v3030_v4 = vpop.f32.mrf.mxu0  ;;  %v3071_v8 = vpop.f32.mrf.mxu1 }
 0x57e   :  { %v3082_v25 = vadd.f32 %v3030_v4, %v8741_v29  ;;  %v3084_v13 = vadd.f32 %v3071_v8, %v8742_v26  ;;  %v5013_v4 = vpop.eup %5012 }
 0x57f   :  { %v3032_v30 = vpop.f32.mrf.mxu0  ;;  %v3073_v27 = vpop.f32.mrf.mxu1 }
 0x580   :  { %v4796_v23 = vmul.f32 -1.442695, %v3082_v25  ;;  %5016 = vtanh.f32 %v3084_v13  ;;  %v3083_v57 = vadd.f32 %v3032_v30, %v8743_v19  ;;  %v3085_v52 = vadd.f32 %v3073_v27, %v8744_v9  ;;  %v5015_v0 = vpop.eup %5014 }
 0x581   :  { %5018 = vrcp.f32 %v3107_v50  ;;  %v3034_v45 = vpop.f32.mrf.mxu0  ;;  %v3075_v32 = vpop.f32.mrf.mxu1  ;;  %v3124_v25 = vmul.f32 %v5013_v4, %v7153_v41 }
 0x582   :  { %5020 = vpow2.f32 %v4796_v23  ;;  %v4797_v11 = vmul.f32 -1.442695, %v3083_v57 }
 0x583   :  { %5022 = vtanh.f32 %v3085_v52  ;;  %v3035_v1 = vpop.f32.mrf.mxu0  ;;  %v3076_v22 = vpop.f32.mrf.mxu1 }
 0x584   :  { %5024 = vpow2.f32 %v4797_v11 }
 0x58d   :  { %v5017_v8 = vpop.eup %5016 }
 0x58e   :  { %v5019_v29 = vpop.eup %5018  ;;  %v3126_v26 = vmul.f32 %v5017_v8, %v5011_v37  ;;  %v8747_v8 = vld [vmem:[#allocation98_spill] sm:$0xff] }
 0x58f   :  { %v5021_v13 = vpop.eup %5020  ;;  %v3125_v23 = vmul.f32 %v5019_v29, %v7157_v43  ;;  %v8745_v43 = vld [vmem:[#allocation96_spill] sm:$0xff]  ;;  %v8748_v29 = vld [vmem:[#allocation106_spill] sm:$0xff] }
 0x590   :  { %v5023_v30 = vpop.eup %5022  ;;  %v3108_v27 = vadd.f32 1.0, %v5021_v13  ;;  %v7303_v50 = vadd.f32 %v3126_v26, %v3124_v25  ;;  %v8749_v25 = vld [vmem:[#allocation107_spill] sm:$0xff]  ;;  %v8750_v26 = vld [vmem:[#allocation108_spill] sm:$0xff]  ;;  %v8751_v13 = vld [vmem:[#allocation109_spill] sm:$0xff] }
 0x591   :  { %v5025_v19 = vpop.eup %5024  ;;  %v3127_v57 = vmul.f32 %v5023_v30, %v5015_v0  ;;  %v8746_v0 = vld [vmem:[#allocation97_spill] sm:$0xff]  ;;  %v8752_v30 = vld [vmem:[#allocation112_spill] sm:$0xff] }
 0x592   :  { %5026 = vrcp.f32 %v3108_v27  ;;  %v3109_v9 = vadd.f32 1.0, %v5025_v19  ;;  %v8753_v27 = vld [vmem:[#allocation113_spill] sm:$0xff]  ;;  %v8754_v19 = vld [vmem:[#allocation115_spill] sm:$0xff] }
 0x593   :  { %5028 = vtanh.f32 %v7303_v50  ;;  %v7307_v52 = vadd.f32 %v3127_v57, %v3125_v23  ;;  %v8755_v23 = vld [vmem:[#allocation117_spill] sm:$0xff]  ;;  %v8756_v57 = vld [vmem:[#allocation120_spill] sm:$0xff] }
 0x594   :  { %5030 = vrcp.f32 %v3109_v9  ;;  %v8757_v9 = vld [vmem:[#allocation121_spill] sm:$0xff] }
 0x595   :  { %5032 = vtanh.f32 %v7307_v52 }
 0x59f   :  { %v5027_v41 = vpop.eup %5026 }
 0x5a0   :  { %v5029_v45 = vpop.eup %5028 }
 0x5a1   :  { %v5031_v32 = vpop.eup %5030  ;;  %v3132_v1 = vmul.f32 %v5029_v45, %v5027_v41  ;;  %v8758_v41 = vld [vmem:[#allocation122_spill] sm:$0xff]  ;;  %v8759_v45 = vld [vmem:[#allocation123_spill] sm:$0xff] }
 0x5a2   :  { %v5033_v11 = vpop.eup %5032 }
 0x5a3   :  { %v3133_v22 = vmul.f32 %v5033_v11, %v5031_v32  ;;  %v7310_v4 = vpack.c.bf16 %v3132_v1, %v3132_v1  ;;  %v8760_v32 = vld [vmem:[#allocation124_spill] sm:$0xff]  ;;  %v8761_v11 = vld [vmem:[#allocation125_spill] sm:$0xff]  ;;  %v8762_v1 = vld [vmem:[#allocation126_spill] sm:$0xff] }
 0x5a5   :  { %v3144_v37 = vpack.c.bf16 %v3133_v22, %v3133_v22  ;;  %v8763_v22 = vld [vmem:[#allocation127_spill] sm:$0xff] }
 0x5a7   :  { %3177 = vmatprep.mubr.bf16.mxu0 %v3144_v37  ;;  %3218 = vmatprep.mubr.bf16.mxu1 %v3144_v37 }
 0x5a8   :  { %3178 = vmatmul.mubr.bf16.vlgmr.msra.gmra.mxu0 %v7310_v4  ;;  %3219 = vmatmul.mubr.bf16.vlgmr.msra.gmra.mxu1 %v7310_v4 }
 0x5a9   :  { %3228 = vmatpush1.bf16.msra.mxu0 %v6333_v16  ;;  %3269 = vmatpush1.bf16.msra.mxu1 %v8546_v63 }
 0x5aa   :  { %3259 = vmatprep.mubr.bf16.mxu0 %v3144_v37  ;;  %3300 = vmatprep.mubr.bf16.mxu1 %v3144_v37  ;;  %v8764_v37 = vld [vmem:[#allocation128_spill] sm:$0xff] }
 0x5ab   :  { %3229 = vmatprep.subr.bf16.mxu0 %v8547_v24  ;;  %3270 = vmatprep.subr.bf16.mxu1 %v8548_v62 }
 0x5ad   :  { %3230 = vmatpush1.bf16.msra.mxu0 %v8549_v44  ;;  %3271 = vmatpush1.bf16.msra.mxu1 %v8550_v38 }
 0x5ae   :  { %3231 = vmatprep.subr.bf16.mxu0 %v8551_v55  ;;  %3272 = vmatprep.subr.bf16.mxu1 %v8552_v53 }
 0x5b1   :  { %3232 = vmatpush1.bf16.msra.mxu0 %v8553_v21  ;;  %3273 = vmatpush1.bf16.msra.mxu1 %v8554_v42 }
 0x5b2   :  { %3233 = vmatprep.subr.bf16.mxu0 %v8555_v54  ;;  %3274 = vmatprep.subr.bf16.mxu1 %v8556_v51 }
 0x5b5   :  { %3234 = vmatpush1.bf16.msra.mxu0 %v8557_v28  ;;  %3275 = vmatpush1.bf16.msra.mxu1 %v8558_v40 }
 0x5b6   :  { %3235 = vmatprep.subr.bf16.mxu0 %v8559_v14  ;;  %3276 = vmatprep.subr.bf16.mxu1 %v8560_v17 }
 0x5b9   :  { %3236 = vmatpush1.bf16.msra.mxu0 %v8561_v31  ;;  %3277 = vmatpush1.bf16.msra.mxu1 %v8562_v15 }
 0x5ba   :  { %3237 = vmatprep.subr.bf16.mxu0 %v8563_v58  ;;  %3278 = vmatprep.subr.bf16.mxu1 %v8650_v48 }
 0x5bd   :  { %3238 = vmatpush1.bf16.msra.mxu0 %v8651_v20  ;;  %3279 = vmatpush1.bf16.msra.mxu1 %v8652_v59 }
 0x5be   :  { %3239 = vmatprep.subr.bf16.mxu0 %v8653_v2  ;;  %3280 = vmatprep.subr.bf16.mxu1 %v8654_v3 }
 0x5c1   :  { %3240 = vmatpush1.bf16.msra.mxu0 %v8655_v10  ;;  %3281 = vmatpush1.bf16.msra.mxu1 %v8656_v36 }
 0x5c2   :  { %3241 = vmatprep.subr.bf16.mxu0 %v8657_v5  ;;  %3282 = vmatprep.subr.bf16.mxu1 %v8658_v35 }
 0x5c5   :  { %3242 = vmatpush1.bf16.msra.mxu0 %v8745_v43  ;;  %3283 = vmatpush1.bf16.msra.mxu1 %v8746_v0 }
 0x5c6   :  { %3243 = vmatprep.subr.bf16.mxu0 %v8747_v8  ;;  %3284 = vmatprep.subr.bf16.mxu1 %v8662_v12 }
 0x5c9   :  { %3244 = vmatpush2.bf16.msra.mxu0 %v8663_v39  ;;  %3285 = vmatpush2.bf16.msra.mxu1 %v8664_v56 }
 0x5ca   :  { %3245 = vmatprep.subr.bf16.mxu0 %v8665_v6  ;;  %3286 = vmatprep.subr.bf16.mxu1 %v8666_v34 }
 0x5cd   :  { %3246 = vmatpush2.bf16.msra.mxu0 %v8667_v46  ;;  %3287 = vmatpush2.bf16.msra.mxu1 %v8668_v47 }
 0x5ce   :  { %3247 = vmatprep.subr.bf16.mxu0 %v8748_v29  ;;  %3288 = vmatprep.subr.bf16.mxu1 %v8749_v25 }
 0x5d1   :  { %3248 = vmatpush2.bf16.msra.mxu0 %v8750_v26  ;;  %3289 = vmatpush2.bf16.msra.mxu1 %v8751_v13 }
 0x5d2   :  { %3249 = vmatprep.subr.bf16.mxu0 %v8587_v7  ;;  %3290 = vmatprep.subr.bf16.mxu1 %v8588_v49 }
 0x5d5   :  { %3250 = vmatpush2.bf16.msra.mxu0 %v8752_v30  ;;  %3291 = vmatpush2.bf16.msra.mxu1 %v8753_v27  ;;  %v8834_v27 = vld [vmem:[#allocation140_spill] sm:$0xff] }
 0x5d6   :  { %3251 = vmatprep.subr.bf16.mxu0 %v8591_v18  ;;  %3292 = vmatprep.subr.bf16.mxu1 %v8754_v19  ;;  %v8832_v19 = vld [vmem:[#allocation138_spill] sm:$0xff]  ;;  %v8833_v18 = vld [vmem:[#allocation139_spill] sm:$0xff] }
 0x5d9   :  { %3252 = vmatpush2.bf16.msra.mxu0 %v8593_v33  ;;  %3293 = vmatpush2.bf16.msra.mxu1 %v8755_v23 }
 0x5da   :  { %3253 = vmatprep.subr.bf16.mxu0 %v8674_v61  ;;  %3294 = vmatprep.subr.bf16.mxu1 %v8675_v60  ;;  %v8765_v61 = vld [vmem:[#allocation129_spill] sm:$0xff]  ;;  %v8766_v60 = vld [vmem:[#allocation3_spill] sm:$0xff] }
 0x5dd   :  { %3254 = vmatpush2.bf16.msra.mxu0 %v8756_v57  ;;  %3295 = vmatpush2.bf16.msra.mxu1 %v8757_v9  ;;  %v8767_v57 = vld [vmem:[#allocation4_spill] sm:$0xff] }
 0x5de   :  { %3255 = vmatprep.subr.bf16.mxu0 %v8758_v41  ;;  %3296 = vmatprep.subr.bf16.mxu1 %v8759_v45  ;;  %v8768_v45 = vld [vmem:[#allocation5_spill] sm:$0xff]  ;;  %v8777_v41 = vld [vmem:[#allocation14_spill] sm:$0xff] }
 0x5e1   :  { %3256 = vmatpush2.bf16.msra.mxu0 %v8760_v32  ;;  %3297 = vmatpush2.bf16.msra.mxu1 %v8761_v11  ;;  %v8769_v32 = vld [vmem:[#allocation6_spill] sm:$0xff]  ;;  %v8770_v11 = vld [vmem:[#allocation7_spill] sm:$0xff] }
 0x5e2   :  { %3257 = vmatprep.subr.bf16.mxu0 %v8762_v1  ;;  %3298 = vmatprep.subr.bf16.mxu1 %v8763_v22  ;;  %v8771_v1 = vld [vmem:[#allocation8_spill] sm:$0xff]  ;;  %v8772_v22 = vld [vmem:[#allocation9_spill] sm:$0xff] }
 0x5e5   :  { %3258 = vmatpush2.bf16.msra.mxu0 %v8764_v37  ;;  %3299 = vmatpush2.bf16.msra.mxu1 %v8765_v61  ;;  %v8773_v37 = vld [vmem:[#allocation10_spill] sm:$0xff]  ;;  %v8774_v61 = vld [vmem:[#allocation11_spill] sm:$0xff] }
 0x5e6   :  { %3376 = vmatprep.subr.bf16.mxu0 %v8766_v60  ;;  %3417 = vmatprep.subr.bf16.mxu1 %v8767_v57  ;;  %v8775_v60 = vld [vmem:[#allocation12_spill] sm:$0xff]  ;;  %v8776_v57 = vld [vmem:[#allocation13_spill] sm:$0xff] }
 0x5e8   :  { %3260 = vmatmul.mubr.bf16.vlgmr.msra.gmra.mxu0 %v7310_v4  ;;  %3301 = vmatmul.mubr.bf16.vlgmr.msra.gmra.mxu1 %v7310_v4  ;;  %v8778_v4 = vld [vmem:[#allocation15_spill] sm:$0xff] }
 0x5e9   :  { %3377 = vmatpush1.bf16.msra.mxu0 %v8768_v45  ;;  %3418 = vmatpush1.bf16.msra.mxu1 %v8769_v32  ;;  %v8779_v45 = vld [vmem:[#allocation16_spill] sm:$0xff]  ;;  %v8780_v32 = vld [vmem:[#allocation17_spill] sm:$0xff] }
 0x5ea   :  { %3378 = vmatprep.subr.bf16.mxu0 %v8770_v11  ;;  %3419 = vmatprep.subr.bf16.mxu1 %v8771_v1  ;;  %v8781_v11 = vld [vmem:[#allocation18_spill] sm:$0xff]  ;;  %v8782_v1 = vld [vmem:[#allocation19_spill] sm:$0xff] }
 0x5ed   :  { %3379 = vmatpush1.bf16.msra.mxu0 %v8772_v22  ;;  %3420 = vmatpush1.bf16.msra.mxu1 %v8773_v37  ;;  %v8783_v22 = vld [vmem:[#allocation20_spill] sm:$0xff]  ;;  %v8784_v37 = vld [vmem:[#allocation21_spill] sm:$0xff] }
 0x5ee   :  { %3380 = vmatprep.subr.bf16.mxu0 %v8774_v61  ;;  %3421 = vmatprep.subr.bf16.mxu1 %v8775_v60  ;;  %v8785_v61 = vld [vmem:[#allocation22_spill] sm:$0xff]  ;;  %v8786_v60 = vld [vmem:[#allocation23_spill] sm:$0xff] }
 0x5f1   :  { %3381 = vmatpush1.bf16.msra.mxu0 %v8776_v57  ;;  %3422 = vmatpush1.bf16.msra.mxu1 %v8777_v41  ;;  %v8787_v57 = vld [vmem:[#allocation24_spill] sm:$0xff]  ;;  %v8788_v41 = vld [vmem:[#allocation25_spill] sm:$0xff] }
 0x5f2   :  { %3382 = vmatprep.subr.bf16.mxu0 %v8778_v4  ;;  %3423 = vmatprep.subr.bf16.mxu1 %v8779_v45  ;;  %v8789_v4 = vld [vmem:[#allocation26_spill] sm:$0xff]  ;;  %v8790_v45 = vld [vmem:[#allocation27_spill] sm:$0xff] }
 0x5f5   :  { %3383 = vmatpush1.bf16.msra.mxu0 %v8780_v32  ;;  %3424 = vmatpush1.bf16.msra.mxu1 %v8781_v11  ;;  %v8791_v32 = vld [vmem:[#allocation28_spill] sm:$0xff]  ;;  %v8792_v11 = vld [vmem:[#allocation29_spill] sm:$0xff] }
 0x5f6   :  { %3384 = vmatprep.subr.bf16.mxu0 %v8782_v1  ;;  %3425 = vmatprep.subr.bf16.mxu1 %v8783_v22  ;;  %v8793_v1 = vld [vmem:[#allocation30_spill] sm:$0xff]  ;;  %v8794_v22 = vld [vmem:[#allocation31_spill] sm:$0xff] }
 0x5f9   :  { %3385 = vmatpush1.bf16.msra.mxu0 %v8784_v37  ;;  %3426 = vmatpush1.bf16.msra.mxu1 %v8785_v61  ;;  %v8795_v37 = vld [vmem:[#allocation32_spill] sm:$0xff]  ;;  %v8796_v61 = vld [vmem:[#allocation33_spill] sm:$0xff] }
 0x5fa   :  { %3386 = vmatprep.subr.bf16.mxu0 %v8786_v60  ;;  %3427 = vmatprep.subr.bf16.mxu1 %v8787_v57  ;;  %v8797_v60 = vld [vmem:[#allocation34_spill] sm:$0xff]  ;;  %v8798_v57 = vld [vmem:[#allocation35_spill] sm:$0xff] }
 0x5fd   :  { %3387 = vmatpush1.bf16.msra.mxu0 %v8788_v41  ;;  %3428 = vmatpush1.bf16.msra.mxu1 %v8789_v4  ;;  %v8799_v41 = vld [vmem:[#allocation36_spill] sm:$0xff]  ;;  %v8800_v4 = vld [vmem:[#allocation37_spill] sm:$0xff] }
 0x5fe   :  { %3388 = vmatprep.subr.bf16.mxu0 %v8790_v45  ;;  %3429 = vmatprep.subr.bf16.mxu1 %v8791_v32  ;;  %v8801_v45 = vld [vmem:[#allocation38_spill] sm:$0xff]  ;;  %v8802_v32 = vld [vmem:[#allocation39_spill] sm:$0xff] }
 0x601   :  { %3389 = vmatpush1.bf16.msra.mxu0 %v8792_v11  ;;  %3430 = vmatpush1.bf16.msra.mxu1 %v8793_v1  ;;  %v8803_v11 = vld [vmem:[#allocation40_spill] sm:$0xff]  ;;  %v8804_v1 = vld [vmem:[#allocation41_spill] sm:$0xff] }
 0x602   :  { %3390 = vmatprep.subr.bf16.mxu0 %v8794_v22  ;;  %3431 = vmatprep.subr.bf16.mxu1 %v8795_v37  ;;  %v8805_v22 = vld [vmem:[#allocation42_spill] sm:$0xff]  ;;  %v8806_v37 = vld [vmem:[#allocation43_spill] sm:$0xff] }
 0x605   :  { %3391 = vmatpush1.bf16.msra.mxu0 %v8796_v61  ;;  %3432 = vmatpush1.bf16.msra.mxu1 %v8797_v60  ;;  %v8807_v61 = vld [vmem:[#allocation44_spill] sm:$0xff]  ;;  %v8808_v60 = vld [vmem:[#allocation45_spill] sm:$0xff] }
 0x606   :  { %3392 = vmatprep.subr.bf16.mxu0 %v8798_v57  ;;  %3433 = vmatprep.subr.bf16.mxu1 %v8799_v41  ;;  %v8809_v57 = vld [vmem:[#allocation46_spill] sm:$0xff]  ;;  %v8810_v41 = vld [vmem:[#allocation47_spill] sm:$0xff] }
 0x609   :  { %3393 = vmatpush2.bf16.msra.mxu0 %v8800_v4  ;;  %3434 = vmatpush2.bf16.msra.mxu1 %v8801_v45  ;;  %v8811_v4 = vld [vmem:[#allocation48_spill] sm:$0xff]  ;;  %v8812_v45 = vld [vmem:[#allocation49_spill] sm:$0xff] }
 0x60a   :  { %3394 = vmatprep.subr.bf16.mxu0 %v8802_v32  ;;  %3435 = vmatprep.subr.bf16.mxu1 %v8803_v11  ;;  %v8813_v32 = vld [vmem:[#allocation50_spill] sm:$0xff]  ;;  %v8814_v11 = vld [vmem:[#allocation51_spill] sm:$0xff] }
 0x60d   :  { %3395 = vmatpush2.bf16.msra.mxu0 %v8804_v1  ;;  %3436 = vmatpush2.bf16.msra.mxu1 %v8805_v22  ;;  %v8815_v1 = vld [vmem:[#allocation52_spill] sm:$0xff]  ;;  %v8816_v22 = vld [vmem:[#allocation53_spill] sm:$0xff] }
 0x60e   :  { %3396 = vmatprep.subr.bf16.mxu0 %v8806_v37  ;;  %3437 = vmatprep.subr.bf16.mxu1 %v8807_v61  ;;  %v8817_v37 = vld [vmem:[#allocation54_spill] sm:$0xff]  ;;  %v8818_v61 = vld [vmem:[#allocation55_spill] sm:$0xff] }
 0x611   :  { %3397 = vmatpush2.bf16.msra.mxu0 %v8808_v60  ;;  %3438 = vmatpush2.bf16.msra.mxu1 %v8809_v57  ;;  %v8819_v60 = vld [vmem:[#allocation56_spill] sm:$0xff]  ;;  %v8820_v57 = vld [vmem:[#allocation57_spill] sm:$0xff] }
 0x612   :  { %3398 = vmatprep.subr.bf16.mxu0 %v8810_v41  ;;  %3439 = vmatprep.subr.bf16.mxu1 %v8811_v4  ;;  %v8821_v41 = vld [vmem:[#allocation58_spill] sm:$0xff]  ;;  %v8822_v4 = vld [vmem:[#allocation59_spill] sm:$0xff] }
 0x615   :  { %3399 = vmatpush2.bf16.msra.mxu0 %v8812_v45  ;;  %3440 = vmatpush2.bf16.msra.mxu1 %v8813_v32  ;;  %v8823_v45 = vld [vmem:[#allocation60_spill] sm:$0xff]  ;;  %v8824_v32 = vld [vmem:[#allocation61_spill] sm:$0xff] }
 0x616   :  { %3400 = vmatprep.subr.bf16.mxu0 %v8814_v11  ;;  %3441 = vmatprep.subr.bf16.mxu1 %v8815_v1  ;;  %v8825_v11 = vld [vmem:[#allocation62_spill] sm:$0xff]  ;;  %v8826_v1 = vld [vmem:[#allocation63_spill] sm:$0xff] }
 0x619   :  { %3401 = vmatpush2.bf16.msra.mxu0 %v8816_v22  ;;  %3442 = vmatpush2.bf16.msra.mxu1 %v8817_v37  ;;  %v8827_v22 = vld [vmem:[#allocation64_spill] sm:$0xff]  ;;  %v8828_v37 = vld [vmem:[#allocation65_spill] sm:$0xff] }
 0x61a   :  { %3402 = vmatprep.subr.bf16.mxu0 %v8818_v61  ;;  %3443 = vmatprep.subr.bf16.mxu1 %v8819_v60  ;;  %v8829_v61 = vld [vmem:[#allocation66_spill] sm:$0xff]  ;;  %v8830_v60 = vld [vmem:[#allocation67_spill] sm:$0xff] }
 0x61d   :  { %3403 = vmatpush2.bf16.msra.mxu0 %v8820_v57  ;;  %3444 = vmatpush2.bf16.msra.mxu1 %v8821_v41  ;;  %v8831_v57 = vld [vmem:[#allocation68_spill] sm:$0xff] }
 0x61e   :  { %3404 = vmatprep.subr.bf16.mxu0 %v8822_v4  ;;  %3445 = vmatprep.subr.bf16.mxu1 %v8823_v45 }
 0x621   :  { %3405 = vmatpush2.bf16.msra.mxu0 %v8824_v32  ;;  %3446 = vmatpush2.bf16.msra.mxu1 %v8825_v11 }
 0x622   :  { %3406 = vmatprep.subr.bf16.mxu0 %v8826_v1  ;;  %3447 = vmatprep.subr.bf16.mxu1 %v8827_v22 }
 0x625   :  { %3407 = vmatpush2.bf16.msra.mxu0 %v8828_v37  ;;  %3448 = vmatpush2.bf16.msra.mxu1 %v8829_v61  ;;  %v8835_v61 = vld [vmem:[#allocation141_spill] sm:$0xff] }
 0x626   :  { %3458 = vmatprep.subr.bf16.mxu0 %v8830_v60  ;;  %3499 = vmatprep.subr.bf16.mxu1 %v8831_v57 }
 0x668   :  { %v3179_v41 = vpop.f32.mrf.mxu0  ;;  %v3220_v4 = vpop.f32.mrf.mxu1 }
 0x669   :  { %v3309_v1 = vadd.f32 %v3179_v41, %v8832_v19  ;;  %v3311_v22 = vadd.f32 %v3220_v4, %v8833_v18 }
 0x66a   :  { %v3181_v9 = vpop.f32.mrf.mxu0  ;;  %v3222_v45 = vpop.f32.mrf.mxu1 }
 0x66b   :  { %v3310_v37 = vadd.f32 %v3181_v9, %v8834_v27  ;;  %v4798_v30 = vmul.f32 -1.442695, %v3309_v1  ;;  %v3312_v49 = vadd.f32 %v3222_v45, %v8835_v61  ;;  %v4800_v60 = vmul.f32 -1.442695, %v3311_v22  ;;  %v8836_v61 = vld [vmem:[#allocation166_spill] sm:$0xff]  ;;  %v8837_v1 = vld [vmem:[#allocation167_spill] sm:$0xff] }
 0x66c   :  { %v3183_v23 = vpop.f32.mrf.mxu0  ;;  %v3224_v32 = vpop.f32.mrf.mxu1 }
 0x66d   :  { %v4799_v7 = vmul.f32 -1.442695, %v3310_v37  ;;  %5034 = vpow2.f32 %v4798_v30  ;;  %v4801_v57 = vmul.f32 -1.442695, %v3312_v49  ;;  %v8839_v37 = vld [vmem:[#allocation169_spill] sm:$0xff] }
 0x66e   :  { %v3184_v33 = vpop.f32.mrf.mxu0  ;;  %v3225_v11 = vpop.f32.mrf.mxu1  ;;  %5036 = vpow2.f32 %v4800_v60 }
 0x66f   :  { %5038 = vpow2.f32 %v4799_v7 }
 0x670   :  { %5040 = vpow2.f32 %v4801_v57  ;;  %v8838_v57 = vld [vmem:[#allocation168_spill] sm:$0xff] }
 0x67a   :  { %v5035_v23 = vpop.eup %5034 }
 0x67b   :  { %v5037_v32 = vpop.eup %5036  ;;  %v3335_v11 = vadd.f32 1.0, %v5035_v23 }
 0x67c   :  { %v5039_v33 = vpop.eup %5038  ;;  %v3337_v19 = vadd.f32 1.0, %v5037_v32 }
 0x67d   :  { %v5041_v13 = vpop.eup %5040  ;;  %v3336_v41 = vadd.f32 1.0, %v5039_v33  ;;  %5042 = vrcp.f32 %v3335_v11 }
 0x67e   :  { %v3338_v18 = vadd.f32 1.0, %v5041_v13  ;;  %5044 = vrcp.f32 %v3337_v19 }
 0x67f   :  { %5046 = vrcp.f32 %v3336_v41 }
 0x68a   :  { %v5043_v19 = vpop.eup %5042 }
 0x6a8   :  { %v3261_v27 = vpop.f32.mrf.mxu0  ;;  %v3302_v9 = vpop.f32.mrf.mxu1 }
 0x6a9   :  { %v3313_v45 = vadd.f32 %v3261_v27, %v8836_v61  ;;  %v3315_v30 = vadd.f32 %v3302_v9, %v8837_v1  ;;  %v5045_v27 = vpop.eup %5044 }
 0x6aa   :  { %v3263_v49 = vpop.f32.mrf.mxu0  ;;  %v3304_v7 = vpop.f32.mrf.mxu1 }
 0x6ab   :  { %v4802_v60 = vmul.f32 -1.442695, %v3313_v45  ;;  %5048 = vtanh.f32 %v3315_v30  ;;  %v3314_v22 = vadd.f32 %v3263_v49, %v8838_v57  ;;  %v3316_v4 = vadd.f32 %v3304_v7, %v8839_v37  ;;  %v5047_v41 = vpop.eup %5046 }
 0x6ac   :  { %5050 = vrcp.f32 %v3338_v18  ;;  %v3265_v23 = vpop.f32.mrf.mxu0  ;;  %v3306_v32 = vpop.f32.mrf.mxu1  ;;  %v3355_v45 = vmul.f32 %v5045_v27, %v7303_v50 }
 0x6ad   :  { %5052 = vpow2.f32 %v4802_v60  ;;  %v4803_v13 = vmul.f32 -1.442695, %v3314_v22 }
 0x6ae   :  { %5054 = vtanh.f32 %v3316_v4  ;;  %v3266_v33 = vpop.f32.mrf.mxu0  ;;  %v3307_v11 = vpop.f32.mrf.mxu1 }
 0x6af   :  { %5056 = vpow2.f32 %v4803_v13 }
 0x6b8   :  { %v5049_v9 = vpop.eup %5048 }
 0x6b9   :  { %v5051_v61 = vpop.eup %5050  ;;  %v3357_v1 = vmul.f32 %v5049_v9, %v5043_v19  ;;  %v8842_v9 = vld [vmem:[#allocation111_spill] sm:$0xff] }
 0x6ba   :  { %v5053_v30 = vpop.eup %5052  ;;  %v3356_v60 = vmul.f32 %v5051_v61, %v7307_v52  ;;  %v8840_v52 = vld [vmem:[#allocation109_spill] sm:$0xff]  ;;  %v8843_v61 = vld [vmem:[#allocation112_spill] sm:$0xff] }
 0x6bb   :  { %v5055_v49 = vpop.eup %5054  ;;  %v3339_v7 = vadd.f32 1.0, %v5053_v30  ;;  %v7453_v18 = vadd.f32 %v3357_v1, %v3355_v45  ;;  %v8844_v45 = vld [vmem:[#allocation113_spill] sm:$0xff]  ;;  %v8845_v1 = vld [vmem:[#allocation114_spill] sm:$0xff]  ;;  %v8846_v30 = vld [vmem:[#allocation115_spill] sm:$0xff] }
 0x6bc   :  { %v5057_v57 = vpop.eup %5056  ;;  %v3358_v22 = vmul.f32 %v5055_v49, %v5047_v41  ;;  %v8841_v41 = vld [vmem:[#allocation110_spill] sm:$0xff]  ;;  %v8847_v49 = vld [vmem:[#allocation116_spill] sm:$0xff] }
 0x6bd   :  { %5058 = vrcp.f32 %v3339_v7  ;;  %v3340_v37 = vadd.f32 1.0, %v5057_v57  ;;  %v8848_v7 = vld [vmem:[#allocation117_spill] sm:$0xff]  ;;  %v8849_v57 = vld [vmem:[#allocation118_spill] sm:$0xff] }
 0x6be   :  { %5060 = vtanh.f32 %v7453_v18  ;;  %v7457_v4 = vadd.f32 %v3358_v22, %v3356_v60  ;;  %v8850_v60 = vld [vmem:[#allocation119_spill] sm:$0xff]  ;;  %v8851_v22 = vld [vmem:[#allocation120_spill] sm:$0xff] }
 0x6bf   :  { %5062 = vrcp.f32 %v3340_v37  ;;  %v8852_v37 = vld [vmem:[#allocation121_spill] sm:$0xff] }
 0x6c0   :  { %5064 = vtanh.f32 %v7457_v4 }
 0x6ca   :  { %v5059_v50 = vpop.eup %5058 }
 0x6cb   :  { %v5061_v23 = vpop.eup %5060 }
 0x6cc   :  { %v5063_v32 = vpop.eup %5062  ;;  %v3363_v33 = vmul.f32 %v5061_v23, %v5059_v50  ;;  %v8853_v50 = vld [vmem:[#allocation122_spill] sm:$0xff]  ;;  %v8854_v23 = vld [vmem:[#allocation123_spill] sm:$0xff] }
 0x6cd   :  { %v5065_v13 = vpop.eup %5064 }
 0x6ce   :  { %v3364_v11 = vmul.f32 %v5065_v13, %v5063_v32  ;;  %v7460_v27 = vpack.c.bf16 %v3363_v33, %v3363_v33  ;;  %v8855_v32 = vld [vmem:[#allocation124_spill] sm:$0xff]  ;;  %v8856_v13 = vld [vmem:[#allocation125_spill] sm:$0xff]  ;;  %v8857_v33 = vld [vmem:[#allocation126_spill] sm:$0xff] }
 0x6d0   :  { %v3375_v19 = vpack.c.bf16 %v3364_v11, %v3364_v11  ;;  %v8858_v11 = vld [vmem:[#allocation127_spill] sm:$0xff] }
 0x6d2   :  { %3408 = vmatprep.mubr.bf16.mxu0 %v3375_v19  ;;  %3449 = vmatprep.mubr.bf16.mxu1 %v3375_v19 }
 0x6d3   :  { %3409 = vmatmul.mubr.bf16.vlgmr.msra.gmra.mxu0 %v7460_v27  ;;  %3450 = vmatmul.mubr.bf16.vlgmr.msra.gmra.mxu1 %v7460_v27 }
 0x6d4   :  { %3459 = vmatpush1.bf16.msra.mxu0 %v6333_v16  ;;  %3500 = vmatpush1.bf16.msra.mxu1 %v8546_v63 }
 0x6d5   :  { %3490 = vmatprep.mubr.bf16.mxu0 %v3375_v19  ;;  %3531 = vmatprep.mubr.bf16.mxu1 %v3375_v19  ;;  %v8859_v19 = vld [vmem:[#allocation128_spill] sm:$0xff] }
 0x6d6   :  { %3460 = vmatprep.subr.bf16.mxu0 %v8547_v24  ;;  %3501 = vmatprep.subr.bf16.mxu1 %v8548_v62 }
 0x6d8   :  { %3461 = vmatpush1.bf16.msra.mxu0 %v8549_v44  ;;  %3502 = vmatpush1.bf16.msra.mxu1 %v8550_v38 }
 0x6d9   :  { %3462 = vmatprep.subr.bf16.mxu0 %v8551_v55  ;;  %3503 = vmatprep.subr.bf16.mxu1 %v8552_v53 }
 0x6dc   :  { %3463 = vmatpush1.bf16.msra.mxu0 %v8553_v21  ;;  %3504 = vmatpush1.bf16.msra.mxu1 %v8554_v42 }
 0x6dd   :  { %3464 = vmatprep.subr.bf16.mxu0 %v8555_v54  ;;  %3505 = vmatprep.subr.bf16.mxu1 %v8556_v51 }
 0x6e0   :  { %3465 = vmatpush1.bf16.msra.mxu0 %v8557_v28  ;;  %3506 = vmatpush1.bf16.msra.mxu1 %v8558_v40 }
 0x6e1   :  { %3466 = vmatprep.subr.bf16.mxu0 %v8559_v14  ;;  %3507 = vmatprep.subr.bf16.mxu1 %v8560_v17 }
 0x6e4   :  { %3467 = vmatpush1.bf16.msra.mxu0 %v8561_v31  ;;  %3508 = vmatpush1.bf16.msra.mxu1 %v8562_v15 }
 0x6e5   :  { %3468 = vmatprep.subr.bf16.mxu0 %v8563_v58  ;;  %3509 = vmatprep.subr.bf16.mxu1 %v8650_v48 }
 0x6e8   :  { %3469 = vmatpush1.bf16.msra.mxu0 %v8651_v20  ;;  %3510 = vmatpush1.bf16.msra.mxu1 %v8652_v59 }
 0x6e9   :  { %3470 = vmatprep.subr.bf16.mxu0 %v8653_v2  ;;  %3511 = vmatprep.subr.bf16.mxu1 %v8654_v3 }
 0x6ec   :  { %3471 = vmatpush1.bf16.msra.mxu0 %v8655_v10  ;;  %3512 = vmatpush1.bf16.msra.mxu1 %v8656_v36 }
 0x6ed   :  { %3472 = vmatprep.subr.bf16.mxu0 %v8657_v5  ;;  %3513 = vmatprep.subr.bf16.mxu1 %v8658_v35 }
 0x6f0   :  { %3473 = vmatpush1.bf16.msra.mxu0 %v8745_v43  ;;  %3514 = vmatpush1.bf16.msra.mxu1 %v8746_v0 }
 0x6f1   :  { %3474 = vmatprep.subr.bf16.mxu0 %v8747_v8  ;;  %3515 = vmatprep.subr.bf16.mxu1 %v8662_v12 }
 0x6f4   :  { %3475 = vmatpush2.bf16.msra.mxu0 %v8663_v39  ;;  %3516 = vmatpush2.bf16.msra.mxu1 %v8664_v56 }
 0x6f5   :  { %3476 = vmatprep.subr.bf16.mxu0 %v8665_v6  ;;  %3517 = vmatprep.subr.bf16.mxu1 %v8666_v34 }
 0x6f8   :  { %3477 = vmatpush2.bf16.msra.mxu0 %v8667_v46  ;;  %3518 = vmatpush2.bf16.msra.mxu1 %v8668_v47 }
 0x6f9   :  { %3478 = vmatprep.subr.bf16.mxu0 %v8748_v29  ;;  %3519 = vmatprep.subr.bf16.mxu1 %v8749_v25 }
 0x6fc   :  { %3479 = vmatpush2.bf16.msra.mxu0 %v8750_v26  ;;  %3520 = vmatpush2.bf16.msra.mxu1 %v8840_v52 }
 0x6fd   :  { %3480 = vmatprep.subr.bf16.mxu0 %v8841_v41  ;;  %3521 = vmatprep.subr.bf16.mxu1 %v8842_v9 }
 0x700   :  { %3481 = vmatpush2.bf16.msra.mxu0 %v8843_v61  ;;  %3522 = vmatpush2.bf16.msra.mxu1 %v8844_v45  ;;  %v8929_v45 = vld [vmem:[#allocation144_spill] sm:$0xff] }
 0x701   :  { %3482 = vmatprep.subr.bf16.mxu0 %v8845_v1  ;;  %3523 = vmatprep.subr.bf16.mxu1 %v8846_v30  ;;  %v8927_v30 = vld [vmem:[#allocation142_spill] sm:$0xff]  ;;  %v8928_v1 = vld [vmem:[#allocation143_spill] sm:$0xff] }
 0x704   :  { %3483 = vmatpush2.bf16.msra.mxu0 %v8847_v49  ;;  %3524 = vmatpush2.bf16.msra.mxu1 %v8848_v7 }
 0x705   :  { %3484 = vmatprep.subr.bf16.mxu0 %v8849_v57  ;;  %3525 = vmatprep.subr.bf16.mxu1 %v8850_v60  ;;  %v8860_v57 = vld [vmem:[#allocation129_spill] sm:$0xff]  ;;  %v8861_v60 = vld [vmem:[#allocation3_spill] sm:$0xff] }
 0x708   :  { %3485 = vmatpush2.bf16.msra.mxu0 %v8851_v22  ;;  %3526 = vmatpush2.bf16.msra.mxu1 %v8852_v37  ;;  %v8862_v22 = vld [vmem:[#allocation4_spill] sm:$0xff] }
 0x709   :  { %3486 = vmatprep.subr.bf16.mxu0 %v8853_v50  ;;  %3527 = vmatprep.subr.bf16.mxu1 %v8854_v23  ;;  %v8863_v23 = vld [vmem:[#allocation5_spill] sm:$0xff]  ;;  %v8872_v50 = vld [vmem:[#allocation14_spill] sm:$0xff] }
 0x70c   :  { %3487 = vmatpush2.bf16.msra.mxu0 %v8855_v32  ;;  %3528 = vmatpush2.bf16.msra.mxu1 %v8856_v13  ;;  %v8864_v32 = vld [vmem:[#allocation6_spill] sm:$0xff]  ;;  %v8865_v13 = vld [vmem:[#allocation7_spill] sm:$0xff] }
 0x70d   :  { %3488 = vmatprep.subr.bf16.mxu0 %v8857_v33  ;;  %3529 = vmatprep.subr.bf16.mxu1 %v8858_v11  ;;  %v8866_v33 = vld [vmem:[#allocation8_spill] sm:$0xff]  ;;  %v8867_v11 = vld [vmem:[#allocation9_spill] sm:$0xff] }
 0x710   :  { %3489 = vmatpush2.bf16.msra.mxu0 %v8859_v19  ;;  %3530 = vmatpush2.bf16.msra.mxu1 %v8860_v57  ;;  %v8868_v19 = vld [vmem:[#allocation10_spill] sm:$0xff]  ;;  %v8869_v57 = vld [vmem:[#allocation11_spill] sm:$0xff] }
 0x711   :  { %3607 = vmatprep.subr.bf16.mxu0 %v8861_v60  ;;  %3648 = vmatprep.subr.bf16.mxu1 %v8862_v22  ;;  %v8870_v60 = vld [vmem:[#allocation12_spill] sm:$0xff]  ;;  %v8871_v22 = vld [vmem:[#allocation13_spill] sm:$0xff] }
 0x713   :  { %3491 = vmatmul.mubr.bf16.vlgmr.msra.gmra.mxu0 %v7460_v27  ;;  %3532 = vmatmul.mubr.bf16.vlgmr.msra.gmra.mxu1 %v7460_v27  ;;  %v8873_v27 = vld [vmem:[#allocation15_spill] sm:$0xff] }
 0x714   :  { %3608 = vmatpush1.bf16.msra.mxu0 %v8863_v23  ;;  %3649 = vmatpush1.bf16.msra.mxu1 %v8864_v32  ;;  %v8874_v23 = vld [vmem:[#allocation16_spill] sm:$0xff]  ;;  %v8875_v32 = vld [vmem:[#allocation17_spill] sm:$0xff] }
 0x715   :  { %3609 = vmatprep.subr.bf16.mxu0 %v8865_v13  ;;  %3650 = vmatprep.subr.bf16.mxu1 %v8866_v33  ;;  %v8876_v13 = vld [vmem:[#allocation18_spill] sm:$0xff]  ;;  %v8877_v33 = vld [vmem:[#allocation19_spill] sm:$0xff] }
 0x718   :  { %3610 = vmatpush1.bf16.msra.mxu0 %v8867_v11  ;;  %3651 = vmatpush1.bf16.msra.mxu1 %v8868_v19  ;;  %v8878_v11 = vld [vmem:[#allocation20_spill] sm:$0xff]  ;;  %v8879_v19 = vld [vmem:[#allocation21_spill] sm:$0xff] }
 0x719   :  { %3611 = vmatprep.subr.bf16.mxu0 %v8869_v57  ;;  %3652 = vmatprep.subr.bf16.mxu1 %v8870_v60  ;;  %v8880_v57 = vld [vmem:[#allocation22_spill] sm:$0xff]  ;;  %v8881_v60 = vld [vmem:[#allocation23_spill] sm:$0xff] }
 0x71c   :  { %3612 = vmatpush1.bf16.msra.mxu0 %v8871_v22  ;;  %3653 = vmatpush1.bf16.msra.mxu1 %v8872_v50  ;;  %v8882_v22 = vld [vmem:[#allocation24_spill] sm:$0xff]  ;;  %v8883_v50 = vld [vmem:[#allocation25_spill] sm:$0xff] }
 0x71d   :  { %3613 = vmatprep.subr.bf16.mxu0 %v8873_v27  ;;  %3654 = vmatprep.subr.bf16.mxu1 %v8874_v23  ;;  %v8884_v27 = vld [vmem:[#allocation26_spill] sm:$0xff]  ;;  %v8885_v23 = vld [vmem:[#allocation27_spill] sm:$0xff] }
 0x720   :  { %3614 = vmatpush1.bf16.msra.mxu0 %v8875_v32  ;;  %3655 = vmatpush1.bf16.msra.mxu1 %v8876_v13  ;;  %v8886_v32 = vld [vmem:[#allocation28_spill] sm:$0xff]  ;;  %v8887_v13 = vld [vmem:[#allocation29_spill] sm:$0xff] }
 0x721   :  { %3615 = vmatprep.subr.bf16.mxu0 %v8877_v33  ;;  %3656 = vmatprep.subr.bf16.mxu1 %v8878_v11  ;;  %v8888_v33 = vld [vmem:[#allocation30_spill] sm:$0xff]  ;;  %v8889_v11 = vld [vmem:[#allocation31_spill] sm:$0xff] }
 0x724   :  { %3616 = vmatpush1.bf16.msra.mxu0 %v8879_v19  ;;  %3657 = vmatpush1.bf16.msra.mxu1 %v8880_v57  ;;  %v8890_v19 = vld [vmem:[#allocation32_spill] sm:$0xff]  ;;  %v8891_v57 = vld [vmem:[#allocation33_spill] sm:$0xff] }
 0x725   :  { %3617 = vmatprep.subr.bf16.mxu0 %v8881_v60  ;;  %3658 = vmatprep.subr.bf16.mxu1 %v8882_v22  ;;  %v8892_v60 = vld [vmem:[#allocation34_spill] sm:$0xff]  ;;  %v8893_v22 = vld [vmem:[#allocation35_spill] sm:$0xff] }
 0x728   :  { %3618 = vmatpush1.bf16.msra.mxu0 %v8883_v50  ;;  %3659 = vmatpush1.bf16.msra.mxu1 %v8884_v27  ;;  %v8894_v50 = vld [vmem:[#allocation36_spill] sm:$0xff]  ;;  %v8895_v27 = vld [vmem:[#allocation37_spill] sm:$0xff] }
 0x729   :  { %3619 = vmatprep.subr.bf16.mxu0 %v8885_v23  ;;  %3660 = vmatprep.subr.bf16.mxu1 %v8886_v32  ;;  %v8896_v23 = vld [vmem:[#allocation38_spill] sm:$0xff]  ;;  %v8897_v32 = vld [vmem:[#allocation39_spill] sm:$0xff] }
 0x72c   :  { %3620 = vmatpush1.bf16.msra.mxu0 %v8887_v13  ;;  %3661 = vmatpush1.bf16.msra.mxu1 %v8888_v33  ;;  %v8898_v13 = vld [vmem:[#allocation40_spill] sm:$0xff]  ;;  %v8899_v33 = vld [vmem:[#allocation41_spill] sm:$0xff] }
 0x72d   :  { %3621 = vmatprep.subr.bf16.mxu0 %v8889_v11  ;;  %3662 = vmatprep.subr.bf16.mxu1 %v8890_v19  ;;  %v8900_v11 = vld [vmem:[#allocation42_spill] sm:$0xff]  ;;  %v8901_v19 = vld [vmem:[#allocation43_spill] sm:$0xff] }
 0x730   :  { %3622 = vmatpush1.bf16.msra.mxu0 %v8891_v57  ;;  %3663 = vmatpush1.bf16.msra.mxu1 %v8892_v60  ;;  %v8902_v57 = vld [vmem:[#allocation44_spill] sm:$0xff]  ;;  %v8903_v60 = vld [vmem:[#allocation45_spill] sm:$0xff] }
 0x731   :  { %3623 = vmatprep.subr.bf16.mxu0 %v8893_v22  ;;  %3664 = vmatprep.subr.bf16.mxu1 %v8894_v50  ;;  %v8904_v22 = vld [vmem:[#allocation46_spill] sm:$0xff]  ;;  %v8905_v50 = vld [vmem:[#allocation47_spill] sm:$0xff] }
 0x734   :  { %3624 = vmatpush2.bf16.msra.mxu0 %v8895_v27  ;;  %3665 = vmatpush2.bf16.msra.mxu1 %v8896_v23  ;;  %v8906_v27 = vld [vmem:[#allocation48_spill] sm:$0xff]  ;;  %v8907_v23 = vld [vmem:[#allocation49_spill] sm:$0xff] }
 0x735   :  { %3625 = vmatprep.subr.bf16.mxu0 %v8897_v32  ;;  %3666 = vmatprep.subr.bf16.mxu1 %v8898_v13  ;;  %v8908_v32 = vld [vmem:[#allocation50_spill] sm:$0xff]  ;;  %v8909_v13 = vld [vmem:[#allocation51_spill] sm:$0xff] }
 0x738   :  { %3626 = vmatpush2.bf16.msra.mxu0 %v8899_v33  ;;  %3667 = vmatpush2.bf16.msra.mxu1 %v8900_v11  ;;  %v8910_v33 = vld [vmem:[#allocation52_spill] sm:$0xff]  ;;  %v8911_v11 = vld [vmem:[#allocation53_spill] sm:$0xff] }
 0x739   :  { %3627 = vmatprep.subr.bf16.mxu0 %v8901_v19  ;;  %3668 = vmatprep.subr.bf16.mxu1 %v8902_v57  ;;  %v8912_v19 = vld [vmem:[#allocation54_spill] sm:$0xff]  ;;  %v8913_v57 = vld [vmem:[#allocation55_spill] sm:$0xff] }
 0x73c   :  { %3628 = vmatpush2.bf16.msra.mxu0 %v8903_v60  ;;  %3669 = vmatpush2.bf16.msra.mxu1 %v8904_v22  ;;  %v8914_v60 = vld [vmem:[#allocation56_spill] sm:$0xff]  ;;  %v8915_v22 = vld [vmem:[#allocation57_spill] sm:$0xff] }
 0x73d   :  { %3629 = vmatprep.subr.bf16.mxu0 %v8905_v50  ;;  %3670 = vmatprep.subr.bf16.mxu1 %v8906_v27  ;;  %v8916_v50 = vld [vmem:[#allocation58_spill] sm:$0xff]  ;;  %v8917_v27 = vld [vmem:[#allocation59_spill] sm:$0xff] }
 0x740   :  { %3630 = vmatpush2.bf16.msra.mxu0 %v8907_v23  ;;  %3671 = vmatpush2.bf16.msra.mxu1 %v8908_v32  ;;  %v8918_v23 = vld [vmem:[#allocation60_spill] sm:$0xff]  ;;  %v8919_v32 = vld [vmem:[#allocation61_spill] sm:$0xff] }
 0x741   :  { %3631 = vmatprep.subr.bf16.mxu0 %v8909_v13  ;;  %3672 = vmatprep.subr.bf16.mxu1 %v8910_v33  ;;  %v8920_v13 = vld [vmem:[#allocation62_spill] sm:$0xff]  ;;  %v8921_v33 = vld [vmem:[#allocation63_spill] sm:$0xff] }
 0x744   :  { %3632 = vmatpush2.bf16.msra.mxu0 %v8911_v11  ;;  %3673 = vmatpush2.bf16.msra.mxu1 %v8912_v19  ;;  %v8922_v11 = vld [vmem:[#allocation64_spill] sm:$0xff]  ;;  %v8923_v19 = vld [vmem:[#allocation65_spill] sm:$0xff] }
 0x745   :  { %3633 = vmatprep.subr.bf16.mxu0 %v8913_v57  ;;  %3674 = vmatprep.subr.bf16.mxu1 %v8914_v60  ;;  %v8924_v57 = vld [vmem:[#allocation66_spill] sm:$0xff]  ;;  %v8925_v60 = vld [vmem:[#allocation67_spill] sm:$0xff] }
 0x748   :  { %3634 = vmatpush2.bf16.msra.mxu0 %v8915_v22  ;;  %3675 = vmatpush2.bf16.msra.mxu1 %v8916_v50  ;;  %v8926_v22 = vld [vmem:[#allocation68_spill] sm:$0xff] }
 0x749   :  { %3635 = vmatprep.subr.bf16.mxu0 %v8917_v27  ;;  %3676 = vmatprep.subr.bf16.mxu1 %v8918_v23 }
 0x74c   :  { %3636 = vmatpush2.bf16.msra.mxu0 %v8919_v32  ;;  %3677 = vmatpush2.bf16.msra.mxu1 %v8920_v13 }
 0x74d   :  { %3637 = vmatprep.subr.bf16.mxu0 %v8921_v33  ;;  %3678 = vmatprep.subr.bf16.mxu1 %v8922_v11 }
 0x750   :  { %3638 = vmatpush2.bf16.msra.mxu0 %v8923_v19  ;;  %3679 = vmatpush2.bf16.msra.mxu1 %v8924_v57  ;;  %v8930_v57 = vld [vmem:[#allocation145_spill] sm:$0xff] }
 0x751   :  { %3689 = vmatprep.subr.bf16.mxu0 %v8925_v60  ;;  %3730 = vmatprep.subr.bf16.mxu1 %v8926_v22 }
 0x793   :  { %v3410_v50 = vpop.f32.mrf.mxu0  ;;  %v3451_v27 = vpop.f32.mrf.mxu1 }
 0x794   :  { %v3540_v33 = vadd.f32 %v3410_v50, %v8927_v30  ;;  %v3542_v11 = vadd.f32 %v3451_v27, %v8928_v1 }
 0x795   :  { %v3412_v37 = vpop.f32.mrf.mxu0  ;;  %v3453_v23 = vpop.f32.mrf.mxu1 }
 0x796   :  { %v3541_v19 = vadd.f32 %v3412_v37, %v8929_v45  ;;  %v4804_v61 = vmul.f32 -1.442695, %v3540_v33  ;;  %v3543_v9 = vadd.f32 %v3453_v23, %v8930_v57  ;;  %v4806_v60 = vmul.f32 -1.442695, %v3542_v11  ;;  %v8931_v57 = vld [vmem:[#allocation170_spill] sm:$0xff]  ;;  %v8932_v33 = vld [vmem:[#allocation171_spill] sm:$0xff] }
 0x797   :  { %v3414_v7 = vpop.f32.mrf.mxu0  ;;  %v3455_v32 = vpop.f32.mrf.mxu1 }
 0x798   :  { %v4805_v41 = vmul.f32 -1.442695, %v3541_v19  ;;  %5066 = vpow2.f32 %v4804_v61  ;;  %v4807_v22 = vmul.f32 -1.442695, %v3543_v9  ;;  %v8934_v19 = vld [vmem:[#allocation173_spill] sm:$0xff] }
 0x799   :  { %v3415_v49 = vpop.f32.mrf.mxu0  ;;  %v3456_v13 = vpop.f32.mrf.mxu1  ;;  %5068 = vpow2.f32 %v4806_v60 }
 0x79a   :  { %5070 = vpow2.f32 %v4805_v41 }
 0x79b   :  { %5072 = vpow2.f32 %v4807_v22  ;;  %v8933_v22 = vld [vmem:[#allocation172_spill] sm:$0xff] }
 0x7a5   :  { %v5067_v7 = vpop.eup %5066 }
 0x7a6   :  { %v5069_v32 = vpop.eup %5068  ;;  %v3566_v13 = vadd.f32 1.0, %v5067_v7 }
 0x7a7   :  { %v5071_v49 = vpop.eup %5070  ;;  %v3568_v30 = vadd.f32 1.0, %v5069_v32 }
 0x7a8   :  { %v5073_v52 = vpop.eup %5072  ;;  %v3567_v50 = vadd.f32 1.0, %v5071_v49  ;;  %5074 = vrcp.f32 %v3566_v13 }
 0x7a9   :  { %v3569_v1 = vadd.f32 1.0, %v5073_v52  ;;  %5076 = vrcp.f32 %v3568_v30 }
 0x7aa   :  { %5078 = vrcp.f32 %v3567_v50 }
 0x7b5   :  { %v5075_v30 = vpop.eup %5074 }
 0x7d3   :  { %v3492_v45 = vpop.f32.mrf.mxu0  ;;  %v3533_v37 = vpop.f32.mrf.mxu1 }
 0x7d4   :  { %v3544_v23 = vadd.f32 %v3492_v45, %v8931_v57  ;;  %v3546_v61 = vadd.f32 %v3533_v37, %v8932_v33  ;;  %v5077_v45 = vpop.eup %5076 }
 0x7d5   :  { %v3494_v9 = vpop.f32.mrf.mxu0  ;;  %v3535_v41 = vpop.f32.mrf.mxu1 }
 0x7d6   :  { %v4808_v60 = vmul.f32 -1.442695, %v3544_v23  ;;  %5080 = vtanh.f32 %v3546_v61  ;;  %v3545_v11 = vadd.f32 %v3494_v9, %v8933_v22  ;;  %v3547_v27 = vadd.f32 %v3535_v41, %v8934_v19  ;;  %v5079_v50 = vpop.eup %5078 }
 0x7d7   :  { %5082 = vrcp.f32 %v3569_v1  ;;  %v3496_v7 = vpop.f32.mrf.mxu0  ;;  %v3537_v32 = vpop.f32.mrf.mxu1  ;;  %v3586_v23 = vmul.f32 %v5077_v45, %v7453_v18 }
 0x7d8   :  { %5084 = vpow2.f32 %v4808_v60  ;;  %v4809_v52 = vmul.f32 -1.442695, %v3545_v11 }
 0x7d9   :  { %5086 = vtanh.f32 %v3547_v27  ;;  %v3497_v49 = vpop.f32.mrf.mxu0  ;;  %v3538_v13 = vpop.f32.mrf.mxu1 }
 0x7da   :  { %5088 = vpow2.f32 %v4809_v52 }
 0x7e3   :  { %v5081_v37 = vpop.eup %5080 }
 0x7e4   :  { %v5083_v57 = vpop.eup %5082  ;;  %v3588_v33 = vmul.f32 %v5081_v37, %v5075_v30  ;;  %v8937_v37 = vld [vmem:[#allocation111_spill] sm:$0xff] }
 0x7e5   :  { %v5085_v61 = vpop.eup %5084  ;;  %v3587_v60 = vmul.f32 %v5083_v57, %v7457_v4  ;;  %v8935_v4 = vld [vmem:[#allocation109_spill] sm:$0xff]  ;;  %v8938_v57 = vld [vmem:[#allocation112_spill] sm:$0xff] }
 0x7e6   :  { %v5087_v9 = vpop.eup %5086  ;;  %v3570_v41 = vadd.f32 1.0, %v5085_v61  ;;  %v7603_v1 = vadd.f32 %v3588_v33, %v3586_v23  ;;  %v8939_v23 = vld [vmem:[#allocation113_spill] sm:$0xff]  ;;  %v8940_v33 = vld [vmem:[#allocation114_spill] sm:$0xff]  ;;  %v8941_v61 = vld [vmem:[#allocation115_spill] sm:$0xff] }
 0x7e7   :  { %v5089_v22 = vpop.eup %5088  ;;  %v3589_v11 = vmul.f32 %v5087_v9, %v5079_v50  ;;  %v8936_v50 = vld [vmem:[#allocation110_spill] sm:$0xff]  ;;  %v8942_v9 = vld [vmem:[#allocation116_spill] sm:$0xff] }
 0x7e8   :  { %5090 = vrcp.f32 %v3570_v41  ;;  %v3571_v19 = vadd.f32 1.0, %v5089_v22  ;;  %v8943_v41 = vld [vmem:[#allocation117_spill] sm:$0xff]  ;;  %v8944_v22 = vld [vmem:[#allocation118_spill] sm:$0xff] }
 0x7e9   :  { %5092 = vtanh.f32 %v7603_v1  ;;  %v7607_v27 = vadd.f32 %v3589_v11, %v3587_v60  ;;  %v8945_v60 = vld [vmem:[#allocation119_spill] sm:$0xff]  ;;  %v8946_v11 = vld [vmem:[#allocation120_spill] sm:$0xff] }
 0x7ea   :  { %5094 = vrcp.f32 %v3571_v19  ;;  %v8947_v19 = vld [vmem:[#allocation121_spill] sm:$0xff] }
 0x7eb   :  { %5096 = vtanh.f32 %v7607_v27 }
 0x7f5   :  { %v5091_v18 = vpop.eup %5090 }
 0x7f6   :  { %v5093_v7 = vpop.eup %5092 }
 0x7f7   :  { %v5095_v32 = vpop.eup %5094  ;;  %v3594_v49 = vmul.f32 %v5093_v7, %v5091_v18  ;;  %v8948_v18 = vld [vmem:[#allocation122_spill] sm:$0xff]  ;;  %v8949_v7 = vld [vmem:[#allocation123_spill] sm:$0xff] }
 0x7f8   :  { %v5097_v52 = vpop.eup %5096 }
 0x7f9   :  { %v3595_v13 = vmul.f32 %v5097_v52, %v5095_v32  ;;  %v7610_v45 = vpack.c.bf16 %v3594_v49, %v3594_v49  ;;  %v8950_v32 = vld [vmem:[#allocation124_spill] sm:$0xff]  ;;  %v8951_v52 = vld [vmem:[#allocation125_spill] sm:$0xff]  ;;  %v8952_v49 = vld [vmem:[#allocation126_spill] sm:$0xff] }
 0x7fb   :  { %v3606_v30 = vpack.c.bf16 %v3595_v13, %v3595_v13  ;;  %v8953_v13 = vld [vmem:[#allocation127_spill] sm:$0xff] }
 0x7fd   :  { %3639 = vmatprep.mubr.bf16.mxu0 %v3606_v30  ;;  %3680 = vmatprep.mubr.bf16.mxu1 %v3606_v30 }
 0x7fe   :  { %3640 = vmatmul.mubr.bf16.vlgmr.msra.gmra.mxu0 %v7610_v45  ;;  %3681 = vmatmul.mubr.bf16.vlgmr.msra.gmra.mxu1 %v7610_v45 }
 0x7ff   :  { %3690 = vmatpush1.bf16.msra.mxu0 %v6333_v16  ;;  %3731 = vmatpush1.bf16.msra.mxu1 %v8546_v63 }
 0x800   :  { %3721 = vmatprep.mubr.bf16.mxu0 %v3606_v30  ;;  %3762 = vmatprep.mubr.bf16.mxu1 %v3606_v30  ;;  %v8954_v30 = vld [vmem:[#allocation128_spill] sm:$0xff] }
 0x801   :  { %3691 = vmatprep.subr.bf16.mxu0 %v8547_v24  ;;  %3732 = vmatprep.subr.bf16.mxu1 %v8548_v62 }
 0x803   :  { %3692 = vmatpush1.bf16.msra.mxu0 %v8549_v44  ;;  %3733 = vmatpush1.bf16.msra.mxu1 %v8550_v38 }
 0x804   :  { %3693 = vmatprep.subr.bf16.mxu0 %v8551_v55  ;;  %3734 = vmatprep.subr.bf16.mxu1 %v8552_v53 }
 0x807   :  { %3694 = vmatpush1.bf16.msra.mxu0 %v8553_v21  ;;  %3735 = vmatpush1.bf16.msra.mxu1 %v8554_v42 }
 0x808   :  { %3695 = vmatprep.subr.bf16.mxu0 %v8555_v54  ;;  %3736 = vmatprep.subr.bf16.mxu1 %v8556_v51 }
 0x80b   :  { %3696 = vmatpush1.bf16.msra.mxu0 %v8557_v28  ;;  %3737 = vmatpush1.bf16.msra.mxu1 %v8558_v40 }
 0x80c   :  { %3697 = vmatprep.subr.bf16.mxu0 %v8559_v14  ;;  %3738 = vmatprep.subr.bf16.mxu1 %v8560_v17 }
 0x80f   :  { %3698 = vmatpush1.bf16.msra.mxu0 %v8561_v31  ;;  %3739 = vmatpush1.bf16.msra.mxu1 %v8562_v15 }
 0x810   :  { %3699 = vmatprep.subr.bf16.mxu0 %v8563_v58  ;;  %3740 = vmatprep.subr.bf16.mxu1 %v8650_v48 }
 0x813   :  { %3700 = vmatpush1.bf16.msra.mxu0 %v8651_v20  ;;  %3741 = vmatpush1.bf16.msra.mxu1 %v8652_v59 }
 0x814   :  { %3701 = vmatprep.subr.bf16.mxu0 %v8653_v2  ;;  %3742 = vmatprep.subr.bf16.mxu1 %v8654_v3 }
 0x817   :  { %3702 = vmatpush1.bf16.msra.mxu0 %v8655_v10  ;;  %3743 = vmatpush1.bf16.msra.mxu1 %v8656_v36 }
 0x818   :  { %3703 = vmatprep.subr.bf16.mxu0 %v8657_v5  ;;  %3744 = vmatprep.subr.bf16.mxu1 %v8658_v35 }
 0x81b   :  { %3704 = vmatpush1.bf16.msra.mxu0 %v8745_v43  ;;  %3745 = vmatpush1.bf16.msra.mxu1 %v8746_v0 }
 0x81c   :  { %3705 = vmatprep.subr.bf16.mxu0 %v8747_v8  ;;  %3746 = vmatprep.subr.bf16.mxu1 %v8662_v12 }
 0x81f   :  { %3706 = vmatpush2.bf16.msra.mxu0 %v8663_v39  ;;  %3747 = vmatpush2.bf16.msra.mxu1 %v8664_v56 }
 0x820   :  { %3707 = vmatprep.subr.bf16.mxu0 %v8665_v6  ;;  %3748 = vmatprep.subr.bf16.mxu1 %v8666_v34 }
 0x823   :  { %3708 = vmatpush2.bf16.msra.mxu0 %v8667_v46  ;;  %3749 = vmatpush2.bf16.msra.mxu1 %v8668_v47 }
 0x824   :  { %3709 = vmatprep.subr.bf16.mxu0 %v8748_v29  ;;  %3750 = vmatprep.subr.bf16.mxu1 %v8749_v25 }
 0x827   :  { %3710 = vmatpush2.bf16.msra.mxu0 %v8750_v26  ;;  %3751 = vmatpush2.bf16.msra.mxu1 %v8935_v4 }
 0x828   :  { %3711 = vmatprep.subr.bf16.mxu0 %v8936_v50  ;;  %3752 = vmatprep.subr.bf16.mxu1 %v8937_v37 }
 0x82b   :  { %3712 = vmatpush2.bf16.msra.mxu0 %v8938_v57  ;;  %3753 = vmatpush2.bf16.msra.mxu1 %v8939_v23  ;;  %v9024_v23 = vld [vmem:[#allocation148_spill] sm:$0xff] }
 0x82c   :  { %3713 = vmatprep.subr.bf16.mxu0 %v8940_v33  ;;  %3754 = vmatprep.subr.bf16.mxu1 %v8941_v61  ;;  %v9022_v61 = vld [vmem:[#allocation146_spill] sm:$0xff]  ;;  %v9023_v33 = vld [vmem:[#allocation147_spill] sm:$0xff] }
 0x82f   :  { %3714 = vmatpush2.bf16.msra.mxu0 %v8942_v9  ;;  %3755 = vmatpush2.bf16.msra.mxu1 %v8943_v41 }
 0x830   :  { %3715 = vmatprep.subr.bf16.mxu0 %v8944_v22  ;;  %3756 = vmatprep.subr.bf16.mxu1 %v8945_v60  ;;  %v8955_v22 = vld [vmem:[#allocation129_spill] sm:$0xff]  ;;  %v8956_v60 = vld [vmem:[#allocation3_spill] sm:$0xff] }
 0x833   :  { %3716 = vmatpush2.bf16.msra.mxu0 %v8946_v11  ;;  %3757 = vmatpush2.bf16.msra.mxu1 %v8947_v19  ;;  %v8957_v11 = vld [vmem:[#allocation4_spill] sm:$0xff] }
 0x834   :  { %3717 = vmatprep.subr.bf16.mxu0 %v8948_v18  ;;  %3758 = vmatprep.subr.bf16.mxu1 %v8949_v7  ;;  %v8958_v7 = vld [vmem:[#allocation5_spill] sm:$0xff]  ;;  %v8967_v18 = vld [vmem:[#allocation14_spill] sm:$0xff] }
 0x837   :  { %3718 = vmatpush2.bf16.msra.mxu0 %v8950_v32  ;;  %3759 = vmatpush2.bf16.msra.mxu1 %v8951_v52  ;;  %v8959_v32 = vld [vmem:[#allocation6_spill] sm:$0xff]  ;;  %v8960_v52 = vld [vmem:[#allocation7_spill] sm:$0xff] }
 0x838   :  { %3719 = vmatprep.subr.bf16.mxu0 %v8952_v49  ;;  %3760 = vmatprep.subr.bf16.mxu1 %v8953_v13  ;;  %v8961_v49 = vld [vmem:[#allocation8_spill] sm:$0xff]  ;;  %v8962_v13 = vld [vmem:[#allocation9_spill] sm:$0xff] }
 0x83b   :  { %3720 = vmatpush2.bf16.msra.mxu0 %v8954_v30  ;;  %3761 = vmatpush2.bf16.msra.mxu1 %v8955_v22  ;;  %v8963_v30 = vld [vmem:[#allocation10_spill] sm:$0xff]  ;;  %v8964_v22 = vld [vmem:[#allocation11_spill] sm:$0xff] }
 0x83c   :  { %3838 = vmatprep.subr.bf16.mxu0 %v8956_v60  ;;  %3879 = vmatprep.subr.bf16.mxu1 %v8957_v11  ;;  %v8965_v60 = vld [vmem:[#allocation12_spill] sm:$0xff]  ;;  %v8966_v11 = vld [vmem:[#allocation13_spill] sm:$0xff] }
 0x83e   :  { %3722 = vmatmul.mubr.bf16.vlgmr.msra.gmra.mxu0 %v7610_v45  ;;  %3763 = vmatmul.mubr.bf16.vlgmr.msra.gmra.mxu1 %v7610_v45  ;;  %v8968_v45 = vld [vmem:[#allocation15_spill] sm:$0xff] }
 0x83f   :  { %3839 = vmatpush1.bf16.msra.mxu0 %v8958_v7  ;;  %3880 = vmatpush1.bf16.msra.mxu1 %v8959_v32  ;;  %v8969_v7 = vld [vmem:[#allocation16_spill] sm:$0xff]  ;;  %v8970_v32 = vld [vmem:[#allocation17_spill] sm:$0xff] }
 0x840   :  { %3840 = vmatprep.subr.bf16.mxu0 %v8960_v52  ;;  %3881 = vmatprep.subr.bf16.mxu1 %v8961_v49  ;;  %v8971_v52 = vld [vmem:[#allocation18_spill] sm:$0xff]  ;;  %v8972_v49 = vld [vmem:[#allocation19_spill] sm:$0xff] }
 0x843   :  { %3841 = vmatpush1.bf16.msra.mxu0 %v8962_v13  ;;  %3882 = vmatpush1.bf16.msra.mxu1 %v8963_v30  ;;  %v8973_v13 = vld [vmem:[#allocation20_spill] sm:$0xff]  ;;  %v8974_v30 = vld [vmem:[#allocation21_spill] sm:$0xff] }
 0x844   :  { %3842 = vmatprep.subr.bf16.mxu0 %v8964_v22  ;;  %3883 = vmatprep.subr.bf16.mxu1 %v8965_v60  ;;  %v8975_v22 = vld [vmem:[#allocation22_spill] sm:$0xff]  ;;  %v8976_v60 = vld [vmem:[#allocation23_spill] sm:$0xff] }
 0x847   :  { %3843 = vmatpush1.bf16.msra.mxu0 %v8966_v11  ;;  %3884 = vmatpush1.bf16.msra.mxu1 %v8967_v18  ;;  %v8977_v11 = vld [vmem:[#allocation24_spill] sm:$0xff]  ;;  %v8978_v18 = vld [vmem:[#allocation25_spill] sm:$0xff] }
 0x848   :  { %3844 = vmatprep.subr.bf16.mxu0 %v8968_v45  ;;  %3885 = vmatprep.subr.bf16.mxu1 %v8969_v7  ;;  %v8979_v45 = vld [vmem:[#allocation26_spill] sm:$0xff]  ;;  %v8980_v7 = vld [vmem:[#allocation27_spill] sm:$0xff] }
 0x84b   :  { %3845 = vmatpush1.bf16.msra.mxu0 %v8970_v32  ;;  %3886 = vmatpush1.bf16.msra.mxu1 %v8971_v52  ;;  %v8981_v32 = vld [vmem:[#allocation28_spill] sm:$0xff]  ;;  %v8982_v52 = vld [vmem:[#allocation29_spill] sm:$0xff] }
 0x84c   :  { %3846 = vmatprep.subr.bf16.mxu0 %v8972_v49  ;;  %3887 = vmatprep.subr.bf16.mxu1 %v8973_v13  ;;  %v8983_v49 = vld [vmem:[#allocation30_spill] sm:$0xff]  ;;  %v8984_v13 = vld [vmem:[#allocation31_spill] sm:$0xff] }
 0x84f   :  { %3847 = vmatpush1.bf16.msra.mxu0 %v8974_v30  ;;  %3888 = vmatpush1.bf16.msra.mxu1 %v8975_v22  ;;  %v8985_v30 = vld [vmem:[#allocation32_spill] sm:$0xff]  ;;  %v8986_v22 = vld [vmem:[#allocation33_spill] sm:$0xff] }
 0x850   :  { %3848 = vmatprep.subr.bf16.mxu0 %v8976_v60  ;;  %3889 = vmatprep.subr.bf16.mxu1 %v8977_v11  ;;  %v8987_v60 = vld [vmem:[#allocation34_spill] sm:$0xff]  ;;  %v8988_v11 = vld [vmem:[#allocation35_spill] sm:$0xff] }
 0x853   :  { %3849 = vmatpush1.bf16.msra.mxu0 %v8978_v18  ;;  %3890 = vmatpush1.bf16.msra.mxu1 %v8979_v45  ;;  %v8989_v18 = vld [vmem:[#allocation36_spill] sm:$0xff]  ;;  %v8990_v45 = vld [vmem:[#allocation37_spill] sm:$0xff] }
 0x854   :  { %3850 = vmatprep.subr.bf16.mxu0 %v8980_v7  ;;  %3891 = vmatprep.subr.bf16.mxu1 %v8981_v32  ;;  %v8991_v7 = vld [vmem:[#allocation38_spill] sm:$0xff]  ;;  %v8992_v32 = vld [vmem:[#allocation39_spill] sm:$0xff] }
 0x857   :  { %3851 = vmatpush1.bf16.msra.mxu0 %v8982_v52  ;;  %3892 = vmatpush1.bf16.msra.mxu1 %v8983_v49  ;;  %v8993_v52 = vld [vmem:[#allocation40_spill] sm:$0xff]  ;;  %v8994_v49 = vld [vmem:[#allocation41_spill] sm:$0xff] }
 0x858   :  { %3852 = vmatprep.subr.bf16.mxu0 %v8984_v13  ;;  %3893 = vmatprep.subr.bf16.mxu1 %v8985_v30  ;;  %v8995_v13 = vld [vmem:[#allocation42_spill] sm:$0xff]  ;;  %v8996_v30 = vld [vmem:[#allocation43_spill] sm:$0xff] }
 0x85b   :  { %3853 = vmatpush1.bf16.msra.mxu0 %v8986_v22  ;;  %3894 = vmatpush1.bf16.msra.mxu1 %v8987_v60  ;;  %v8997_v22 = vld [vmem:[#allocation44_spill] sm:$0xff]  ;;  %v8998_v60 = vld [vmem:[#allocation45_spill] sm:$0xff] }
 0x85c   :  { %3854 = vmatprep.subr.bf16.mxu0 %v8988_v11  ;;  %3895 = vmatprep.subr.bf16.mxu1 %v8989_v18  ;;  %v8999_v11 = vld [vmem:[#allocation46_spill] sm:$0xff]  ;;  %v9000_v18 = vld [vmem:[#allocation47_spill] sm:$0xff] }
 0x85f   :  { %3855 = vmatpush2.bf16.msra.mxu0 %v8990_v45  ;;  %3896 = vmatpush2.bf16.msra.mxu1 %v8991_v7  ;;  %v9001_v45 = vld [vmem:[#allocation48_spill] sm:$0xff]  ;;  %v9002_v7 = vld [vmem:[#allocation49_spill] sm:$0xff] }
 0x860   :  { %3856 = vmatprep.subr.bf16.mxu0 %v8992_v32  ;;  %3897 = vmatprep.subr.bf16.mxu1 %v8993_v52  ;;  %v9003_v32 = vld [vmem:[#allocation50_spill] sm:$0xff]  ;;  %v9004_v52 = vld [vmem:[#allocation51_spill] sm:$0xff] }
 0x863   :  { %3857 = vmatpush2.bf16.msra.mxu0 %v8994_v49  ;;  %3898 = vmatpush2.bf16.msra.mxu1 %v8995_v13  ;;  %v9005_v49 = vld [vmem:[#allocation52_spill] sm:$0xff]  ;;  %v9006_v13 = vld [vmem:[#allocation53_spill] sm:$0xff] }
 0x864   :  { %3858 = vmatprep.subr.bf16.mxu0 %v8996_v30  ;;  %3899 = vmatprep.subr.bf16.mxu1 %v8997_v22  ;;  %v9007_v30 = vld [vmem:[#allocation54_spill] sm:$0xff]  ;;  %v9008_v22 = vld [vmem:[#allocation55_spill] sm:$0xff] }
 0x867   :  { %3859 = vmatpush2.bf16.msra.mxu0 %v8998_v60  ;;  %3900 = vmatpush2.bf16.msra.mxu1 %v8999_v11  ;;  %v9009_v60 = vld [vmem:[#allocation56_spill] sm:$0xff]  ;;  %v9010_v11 = vld [vmem:[#allocation57_spill] sm:$0xff] }
 0x868   :  { %3860 = vmatprep.subr.bf16.mxu0 %v9000_v18  ;;  %3901 = vmatprep.subr.bf16.mxu1 %v9001_v45  ;;  %v9011_v18 = vld [vmem:[#allocation58_spill] sm:$0xff]  ;;  %v9012_v45 = vld [vmem:[#allocation59_spill] sm:$0xff] }
 0x86b   :  { %3861 = vmatpush2.bf16.msra.mxu0 %v9002_v7  ;;  %3902 = vmatpush2.bf16.msra.mxu1 %v9003_v32  ;;  %v9013_v7 = vld [vmem:[#allocation60_spill] sm:$0xff]  ;;  %v9014_v32 = vld [vmem:[#allocation61_spill] sm:$0xff] }
 0x86c   :  { %3862 = vmatprep.subr.bf16.mxu0 %v9004_v52  ;;  %3903 = vmatprep.subr.bf16.mxu1 %v9005_v49  ;;  %v9015_v52 = vld [vmem:[#allocation62_spill] sm:$0xff]  ;;  %v9016_v49 = vld [vmem:[#allocation63_spill] sm:$0xff] }
 0x86f   :  { %3863 = vmatpush2.bf16.msra.mxu0 %v9006_v13  ;;  %3904 = vmatpush2.bf16.msra.mxu1 %v9007_v30  ;;  %v9017_v13 = vld [vmem:[#allocation64_spill] sm:$0xff]  ;;  %v9018_v30 = vld [vmem:[#allocation65_spill] sm:$0xff] }
 0x870   :  { %3864 = vmatprep.subr.bf16.mxu0 %v9008_v22  ;;  %3905 = vmatprep.subr.bf16.mxu1 %v9009_v60  ;;  %v9019_v22 = vld [vmem:[#allocation66_spill] sm:$0xff]  ;;  %v9020_v60 = vld [vmem:[#allocation67_spill] sm:$0xff] }
 0x873   :  { %3865 = vmatpush2.bf16.msra.mxu0 %v9010_v11  ;;  %3906 = vmatpush2.bf16.msra.mxu1 %v9011_v18  ;;  %v9021_v11 = vld [vmem:[#allocation68_spill] sm:$0xff] }
 0x874   :  { %3866 = vmatprep.subr.bf16.mxu0 %v9012_v45  ;;  %3907 = vmatprep.subr.bf16.mxu1 %v9013_v7 }
 0x877   :  { %3867 = vmatpush2.bf16.msra.mxu0 %v9014_v32  ;;  %3908 = vmatpush2.bf16.msra.mxu1 %v9015_v52 }
 0x878   :  { %3868 = vmatprep.subr.bf16.mxu0 %v9016_v49  ;;  %3909 = vmatprep.subr.bf16.mxu1 %v9017_v13 }
 0x87b   :  { %3869 = vmatpush2.bf16.msra.mxu0 %v9018_v30  ;;  %3910 = vmatpush2.bf16.msra.mxu1 %v9019_v22  ;;  %v9025_v22 = vld [vmem:[#allocation149_spill] sm:$0xff] }
 0x87c   :  { %3920 = vmatprep.subr.bf16.mxu0 %v9020_v60  ;;  %3961 = vmatprep.subr.bf16.mxu1 %v9021_v11 }
 0x8be   :  { %v3641_v18 = vpop.f32.mrf.mxu0  ;;  %v3682_v45 = vpop.f32.mrf.mxu1 }
 0x8bf   :  { %v3771_v49 = vadd.f32 %v3641_v18, %v9022_v61  ;;  %v3773_v13 = vadd.f32 %v3682_v45, %v9023_v33 }
 0x8c0   :  { %v3643_v19 = vpop.f32.mrf.mxu0  ;;  %v3684_v7 = vpop.f32.mrf.mxu1 }
 0x8c1   :  { %v3772_v30 = vadd.f32 %v3643_v19, %v9024_v23  ;;  %v4810_v57 = vmul.f32 -1.442695, %v3771_v49  ;;  %v3774_v37 = vadd.f32 %v3684_v7, %v9025_v22  ;;  %v4812_v60 = vmul.f32 -1.442695, %v3773_v13  ;;  %v9026_v22 = vld [vmem:[#allocation174_spill] sm:$0xff]  ;;  %v9027_v49 = vld [vmem:[#allocation175_spill] sm:$0xff] }
 0x8c2   :  { %v3645_v41 = vpop.f32.mrf.mxu0  ;;  %v3686_v32 = vpop.f32.mrf.mxu1 }
 0x8c3   :  { %v4811_v50 = vmul.f32 -1.442695, %v3772_v30  ;;  %5098 = vpow2.f32 %v4810_v57  ;;  %v4813_v11 = vmul.f32 -1.442695, %v3774_v37  ;;  %v9029_v30 = vld [vmem:[#allocation177_spill] sm:$0xff] }
 0x8c4   :  { %v3646_v9 = vpop.f32.mrf.mxu0  ;;  %v3687_v52 = vpop.f32.mrf.mxu1  ;;  %5100 = vpow2.f32 %v4812_v60 }
 0x8c5   :  { %5102 = vpow2.f32 %v4811_v50 }
 0x8c6   :  { %5104 = vpow2.f32 %v4813_v11  ;;  %v9028_v11 = vld [vmem:[#allocation176_spill] sm:$0xff] }
 0x8d0   :  { %v5099_v41 = vpop.eup %5098 }
 0x8d1   :  { %v5101_v32 = vpop.eup %5100  ;;  %v3797_v52 = vadd.f32 1.0, %v5099_v41 }
 0x8d2   :  { %v5103_v9 = vpop.eup %5102  ;;  %v3799_v61 = vadd.f32 1.0, %v5101_v32 }
 0x8d3   :  { %v5105_v4 = vpop.eup %5104  ;;  %v3798_v18 = vadd.f32 1.0, %v5103_v9  ;;  %5106 = vrcp.f32 %v3797_v52 }
 0x8d4   :  { %v3800_v33 = vadd.f32 1.0, %v5105_v4  ;;  %5108 = vrcp.f32 %v3799_v61 }
 0x8d5   :  { %5110 = vrcp.f32 %v3798_v18 }
 0x8e0   :  { %v5107_v61 = vpop.eup %5106 }
 0x8fe   :  { %v3723_v23 = vpop.f32.mrf.mxu0  ;;  %v3764_v19 = vpop.f32.mrf.mxu1 }
 0x8ff   :  { %v3775_v7 = vadd.f32 %v3723_v23, %v9026_v22  ;;  %v3777_v57 = vadd.f32 %v3764_v19, %v9027_v49  ;;  %v5109_v23 = vpop.eup %5108 }
 0x900   :  { %v3725_v37 = vpop.f32.mrf.mxu0  ;;  %v3766_v50 = vpop.f32.mrf.mxu1 }
 0x901   :  { %v4814_v60 = vmul.f32 -1.442695, %v3775_v7  ;;  %5112 = vtanh.f32 %v3777_v57  ;;  %v3776_v13 = vadd.f32 %v3725_v37, %v9028_v11  ;;  %v3778_v45 = vadd.f32 %v3766_v50, %v9029_v30  ;;  %v5111_v18 = vpop.eup %5110 }
 0x902   :  { %5114 = vrcp.f32 %v3800_v33  ;;  %v3727_v41 = vpop.f32.mrf.mxu0  ;;  %v3768_v32 = vpop.f32.mrf.mxu1  ;;  %v3817_v7 = vmul.f32 %v5109_v23, %v7603_v1 }
 0x903   :  { %5116 = vpow2.f32 %v4814_v60  ;;  %v4815_v4 = vmul.f32 -1.442695, %v3776_v13 }
 0x904   :  { %5118 = vtanh.f32 %v3778_v45  ;;  %v3728_v9 = vpop.f32.mrf.mxu0  ;;  %v3769_v52 = vpop.f32.mrf.mxu1 }
 0x905   :  { %5120 = vpow2.f32 %v4815_v4 }
 0x90e   :  { %v5113_v19 = vpop.eup %5112 }
 0x90f   :  { %v5115_v22 = vpop.eup %5114  ;;  %v3819_v49 = vmul.f32 %v5113_v19, %v5107_v61  ;;  %v9032_v19 = vld [vmem:[#allocation111_spill] sm:$0xff] }
 0x910   :  { %v5117_v57 = vpop.eup %5116  ;;  %v3818_v60 = vmul.f32 %v5115_v22, %v7607_v27  ;;  %v9030_v27 = vld [vmem:[#allocation109_spill] sm:$0xff]  ;;  %v9033_v22 = vld [vmem:[#allocation112_spill] sm:$0xff] }
 0x911   :  { %v5119_v37 = vpop.eup %5118  ;;  %v3801_v50 = vadd.f32 1.0, %v5117_v57  ;;  %v7753_v33 = vadd.f32 %v3819_v49, %v3817_v7  ;;  %v9034_v7 = vld [vmem:[#allocation113_spill] sm:$0xff]  ;;  %v9035_v49 = vld [vmem:[#allocation114_spill] sm:$0xff]  ;;  %v9036_v57 = vld [vmem:[#allocation115_spill] sm:$0xff] }
 0x912   :  { %v5121_v11 = vpop.eup %5120  ;;  %v3820_v13 = vmul.f32 %v5119_v37, %v5111_v18  ;;  %v9031_v18 = vld [vmem:[#allocation110_spill] sm:$0xff]  ;;  %v9037_v37 = vld [vmem:[#allocation116_spill] sm:$0xff] }
 0x913   :  { %5122 = vrcp.f32 %v3801_v50  ;;  %v3802_v30 = vadd.f32 1.0, %v5121_v11  ;;  %v9038_v50 = vld [vmem:[#allocation117_spill] sm:$0xff]  ;;  %v9039_v11 = vld [vmem:[#allocation118_spill] sm:$0xff] }
 0x914   :  { %5124 = vtanh.f32 %v7753_v33  ;;  %v7757_v45 = vadd.f32 %v3820_v13, %v3818_v60  ;;  %v9040_v60 = vld [vmem:[#allocation119_spill] sm:$0xff]  ;;  %v9041_v13 = vld [vmem:[#allocation120_spill] sm:$0xff] }
 0x915   :  { %5126 = vrcp.f32 %v3802_v30  ;;  %v9042_v30 = vld [vmem:[#allocation121_spill] sm:$0xff] }
 0x916   :  { %5128 = vtanh.f32 %v7757_v45 }
 0x920   :  { %v5123_v1 = vpop.eup %5122 }
 0x921   :  { %v5125_v41 = vpop.eup %5124 }
 0x922   :  { %v5127_v32 = vpop.eup %5126  ;;  %v3825_v9 = vmul.f32 %v5125_v41, %v5123_v1  ;;  %v9043_v1 = vld [vmem:[#allocation122_spill] sm:$0xff]  ;;  %v9044_v41 = vld [vmem:[#allocation123_spill] sm:$0xff] }
 0x923   :  { %v5129_v4 = vpop.eup %5128 }
 0x924   :  { %v3826_v52 = vmul.f32 %v5129_v4, %v5127_v32  ;;  %v7760_v23 = vpack.c.bf16 %v3825_v9, %v3825_v9  ;;  %v9045_v32 = vld [vmem:[#allocation124_spill] sm:$0xff]  ;;  %v9046_v4 = vld [vmem:[#allocation125_spill] sm:$0xff]  ;;  %v9047_v9 = vld [vmem:[#allocation126_spill] sm:$0xff] }
 0x926   :  { %v3837_v61 = vpack.c.bf16 %v3826_v52, %v3826_v52  ;;  %v9048_v52 = vld [vmem:[#allocation127_spill] sm:$0xff] }
 0x928   :  { %3870 = vmatprep.mubr.bf16.mxu0 %v3837_v61  ;;  %3911 = vmatprep.mubr.bf16.mxu1 %v3837_v61 }
 0x929   :  { %3871 = vmatmul.mubr.bf16.vlgmr.msra.gmra.mxu0 %v7760_v23  ;;  %3912 = vmatmul.mubr.bf16.vlgmr.msra.gmra.mxu1 %v7760_v23 }
 0x92a   :  { %3921 = vmatpush1.bf16.msra.mxu0 %v6333_v16  ;;  %3962 = vmatpush1.bf16.msra.mxu1 %v8546_v63 }
 0x92b   :  { %3952 = vmatprep.mubr.bf16.mxu0 %v3837_v61  ;;  %3993 = vmatprep.mubr.bf16.mxu1 %v3837_v61  ;;  %v9049_v61 = vld [vmem:[#allocation128_spill] sm:$0xff] }
 0x92c   :  { %3922 = vmatprep.subr.bf16.mxu0 %v8547_v24  ;;  %3963 = vmatprep.subr.bf16.mxu1 %v8548_v62 }
 0x92e   :  { %3923 = vmatpush1.bf16.msra.mxu0 %v8549_v44  ;;  %3964 = vmatpush1.bf16.msra.mxu1 %v8550_v38 }
 0x92f   :  { %3924 = vmatprep.subr.bf16.mxu0 %v8551_v55  ;;  %3965 = vmatprep.subr.bf16.mxu1 %v8552_v53 }
 0x932   :  { %3925 = vmatpush1.bf16.msra.mxu0 %v8553_v21  ;;  %3966 = vmatpush1.bf16.msra.mxu1 %v8554_v42 }
 0x933   :  { %3926 = vmatprep.subr.bf16.mxu0 %v8555_v54  ;;  %3967 = vmatprep.subr.bf16.mxu1 %v8556_v51 }
 0x936   :  { %3927 = vmatpush1.bf16.msra.mxu0 %v8557_v28  ;;  %3968 = vmatpush1.bf16.msra.mxu1 %v8558_v40 }
 0x937   :  { %3928 = vmatprep.subr.bf16.mxu0 %v8559_v14  ;;  %3969 = vmatprep.subr.bf16.mxu1 %v8560_v17 }
 0x93a   :  { %3929 = vmatpush1.bf16.msra.mxu0 %v8561_v31  ;;  %3970 = vmatpush1.bf16.msra.mxu1 %v8562_v15 }
 0x93b   :  { %3930 = vmatprep.subr.bf16.mxu0 %v8563_v58  ;;  %3971 = vmatprep.subr.bf16.mxu1 %v8650_v48 }
 0x93e   :  { %3931 = vmatpush1.bf16.msra.mxu0 %v8651_v20  ;;  %3972 = vmatpush1.bf16.msra.mxu1 %v8652_v59 }
 0x93f   :  { %3932 = vmatprep.subr.bf16.mxu0 %v8653_v2  ;;  %3973 = vmatprep.subr.bf16.mxu1 %v8654_v3 }
 0x942   :  { %3933 = vmatpush1.bf16.msra.mxu0 %v8655_v10  ;;  %3974 = vmatpush1.bf16.msra.mxu1 %v8656_v36 }
 0x943   :  { %3934 = vmatprep.subr.bf16.mxu0 %v8657_v5  ;;  %3975 = vmatprep.subr.bf16.mxu1 %v8658_v35 }
 0x946   :  { %3935 = vmatpush1.bf16.msra.mxu0 %v8745_v43  ;;  %3976 = vmatpush1.bf16.msra.mxu1 %v8746_v0 }
 0x947   :  { %3936 = vmatprep.subr.bf16.mxu0 %v8747_v8  ;;  %3977 = vmatprep.subr.bf16.mxu1 %v8662_v12 }
 0x94a   :  { %3937 = vmatpush2.bf16.msra.mxu0 %v8663_v39  ;;  %3978 = vmatpush2.bf16.msra.mxu1 %v8664_v56 }
 0x94b   :  { %3938 = vmatprep.subr.bf16.mxu0 %v8665_v6  ;;  %3979 = vmatprep.subr.bf16.mxu1 %v8666_v34 }
 0x94e   :  { %3939 = vmatpush2.bf16.msra.mxu0 %v8667_v46  ;;  %3980 = vmatpush2.bf16.msra.mxu1 %v8668_v47 }
 0x94f   :  { %3940 = vmatprep.subr.bf16.mxu0 %v8748_v29  ;;  %3981 = vmatprep.subr.bf16.mxu1 %v8749_v25 }
 0x952   :  { %3941 = vmatpush2.bf16.msra.mxu0 %v8750_v26  ;;  %3982 = vmatpush2.bf16.msra.mxu1 %v9030_v27 }
 0x953   :  { %3942 = vmatprep.subr.bf16.mxu0 %v9031_v18  ;;  %3983 = vmatprep.subr.bf16.mxu1 %v9032_v19 }
 0x956   :  { %3943 = vmatpush2.bf16.msra.mxu0 %v9033_v22  ;;  %3984 = vmatpush2.bf16.msra.mxu1 %v9034_v7  ;;  %v9119_v7 = vld [vmem:[#allocation152_spill] sm:$0xff] }
 0x957   :  { %3944 = vmatprep.subr.bf16.mxu0 %v9035_v49  ;;  %3985 = vmatprep.subr.bf16.mxu1 %v9036_v57  ;;  %v9117_v57 = vld [vmem:[#allocation150_spill] sm:$0xff]  ;;  %v9118_v49 = vld [vmem:[#allocation151_spill] sm:$0xff] }
 0x95a   :  { %3945 = vmatpush2.bf16.msra.mxu0 %v9037_v37  ;;  %3986 = vmatpush2.bf16.msra.mxu1 %v9038_v50 }
 0x95b   :  { %3946 = vmatprep.subr.bf16.mxu0 %v9039_v11  ;;  %3987 = vmatprep.subr.bf16.mxu1 %v9040_v60  ;;  %v9050_v11 = vld [vmem:[#allocation129_spill] sm:$0xff]  ;;  %v9051_v60 = vld [vmem:[#allocation3_spill] sm:$0xff] }
 0x95e   :  { %3947 = vmatpush2.bf16.msra.mxu0 %v9041_v13  ;;  %3988 = vmatpush2.bf16.msra.mxu1 %v9042_v30  ;;  %v9052_v13 = vld [vmem:[#allocation4_spill] sm:$0xff] }
 0x95f   :  { %3948 = vmatprep.subr.bf16.mxu0 %v9043_v1  ;;  %3989 = vmatprep.subr.bf16.mxu1 %v9044_v41  ;;  %v9053_v41 = vld [vmem:[#allocation5_spill] sm:$0xff]  ;;  %v9062_v1 = vld [vmem:[#allocation14_spill] sm:$0xff] }
 0x962   :  { %3949 = vmatpush2.bf16.msra.mxu0 %v9045_v32  ;;  %3990 = vmatpush2.bf16.msra.mxu1 %v9046_v4  ;;  %v9054_v32 = vld [vmem:[#allocation6_spill] sm:$0xff]  ;;  %v9055_v4 = vld [vmem:[#allocation7_spill] sm:$0xff] }
 0x963   :  { %3950 = vmatprep.subr.bf16.mxu0 %v9047_v9  ;;  %3991 = vmatprep.subr.bf16.mxu1 %v9048_v52  ;;  %v9056_v9 = vld [vmem:[#allocation8_spill] sm:$0xff]  ;;  %v9057_v52 = vld [vmem:[#allocation9_spill] sm:$0xff] }
 0x966   :  { %3951 = vmatpush2.bf16.msra.mxu0 %v9049_v61  ;;  %3992 = vmatpush2.bf16.msra.mxu1 %v9050_v11  ;;  %v9058_v61 = vld [vmem:[#allocation10_spill] sm:$0xff]  ;;  %v9059_v11 = vld [vmem:[#allocation11_spill] sm:$0xff] }
 0x967   :  { %4069 = vmatprep.subr.bf16.mxu0 %v9051_v60  ;;  %4110 = vmatprep.subr.bf16.mxu1 %v9052_v13  ;;  %v9060_v60 = vld [vmem:[#allocation12_spill] sm:$0xff]  ;;  %v9061_v13 = vld [vmem:[#allocation13_spill] sm:$0xff] }
 0x969   :  { %3953 = vmatmul.mubr.bf16.vlgmr.msra.gmra.mxu0 %v7760_v23  ;;  %3994 = vmatmul.mubr.bf16.vlgmr.msra.gmra.mxu1 %v7760_v23  ;;  %v9063_v23 = vld [vmem:[#allocation15_spill] sm:$0xff] }
 0x96a   :  { %4070 = vmatpush1.bf16.msra.mxu0 %v9053_v41  ;;  %4111 = vmatpush1.bf16.msra.mxu1 %v9054_v32  ;;  %v9064_v41 = vld [vmem:[#allocation16_spill] sm:$0xff]  ;;  %v9065_v32 = vld [vmem:[#allocation17_spill] sm:$0xff] }
 0x96b   :  { %4071 = vmatprep.subr.bf16.mxu0 %v9055_v4  ;;  %4112 = vmatprep.subr.bf16.mxu1 %v9056_v9  ;;  %v9066_v4 = vld [vmem:[#allocation18_spill] sm:$0xff]  ;;  %v9067_v9 = vld [vmem:[#allocation19_spill] sm:$0xff] }
 0x96e   :  { %4072 = vmatpush1.bf16.msra.mxu0 %v9057_v52  ;;  %4113 = vmatpush1.bf16.msra.mxu1 %v9058_v61  ;;  %v9068_v52 = vld [vmem:[#allocation20_spill] sm:$0xff]  ;;  %v9069_v61 = vld [vmem:[#allocation21_spill] sm:$0xff] }
 0x96f   :  { %4073 = vmatprep.subr.bf16.mxu0 %v9059_v11  ;;  %4114 = vmatprep.subr.bf16.mxu1 %v9060_v60  ;;  %v9070_v11 = vld [vmem:[#allocation22_spill] sm:$0xff]  ;;  %v9071_v60 = vld [vmem:[#allocation23_spill] sm:$0xff] }
 0x972   :  { %4074 = vmatpush1.bf16.msra.mxu0 %v9061_v13  ;;  %4115 = vmatpush1.bf16.msra.mxu1 %v9062_v1  ;;  %v9072_v13 = vld [vmem:[#allocation24_spill] sm:$0xff]  ;;  %v9073_v1 = vld [vmem:[#allocation25_spill] sm:$0xff] }
 0x973   :  { %4075 = vmatprep.subr.bf16.mxu0 %v9063_v23  ;;  %4116 = vmatprep.subr.bf16.mxu1 %v9064_v41  ;;  %v9074_v23 = vld [vmem:[#allocation26_spill] sm:$0xff]  ;;  %v9075_v41 = vld [vmem:[#allocation27_spill] sm:$0xff] }
 0x976   :  { %4076 = vmatpush1.bf16.msra.mxu0 %v9065_v32  ;;  %4117 = vmatpush1.bf16.msra.mxu1 %v9066_v4  ;;  %v9076_v32 = vld [vmem:[#allocation28_spill] sm:$0xff]  ;;  %v9077_v4 = vld [vmem:[#allocation29_spill] sm:$0xff] }
 0x977   :  { %4077 = vmatprep.subr.bf16.mxu0 %v9067_v9  ;;  %4118 = vmatprep.subr.bf16.mxu1 %v9068_v52  ;;  %v9078_v9 = vld [vmem:[#allocation30_spill] sm:$0xff]  ;;  %v9079_v52 = vld [vmem:[#allocation31_spill] sm:$0xff] }
 0x97a   :  { %4078 = vmatpush1.bf16.msra.mxu0 %v9069_v61  ;;  %4119 = vmatpush1.bf16.msra.mxu1 %v9070_v11  ;;  %v9080_v61 = vld [vmem:[#allocation32_spill] sm:$0xff]  ;;  %v9081_v11 = vld [vmem:[#allocation33_spill] sm:$0xff] }
 0x97b   :  { %4079 = vmatprep.subr.bf16.mxu0 %v9071_v60  ;;  %4120 = vmatprep.subr.bf16.mxu1 %v9072_v13  ;;  %v9082_v60 = vld [vmem:[#allocation34_spill] sm:$0xff]  ;;  %v9083_v13 = vld [vmem:[#allocation35_spill] sm:$0xff] }
 0x97e   :  { %4080 = vmatpush1.bf16.msra.mxu0 %v9073_v1  ;;  %4121 = vmatpush1.bf16.msra.mxu1 %v9074_v23  ;;  %v9084_v1 = vld [vmem:[#allocation36_spill] sm:$0xff]  ;;  %v9085_v23 = vld [vmem:[#allocation37_spill] sm:$0xff] }
 0x97f   :  { %4081 = vmatprep.subr.bf16.mxu0 %v9075_v41  ;;  %4122 = vmatprep.subr.bf16.mxu1 %v9076_v32  ;;  %v9086_v41 = vld [vmem:[#allocation38_spill] sm:$0xff]  ;;  %v9087_v32 = vld [vmem:[#allocation39_spill] sm:$0xff] }
 0x982   :  { %4082 = vmatpush1.bf16.msra.mxu0 %v9077_v4  ;;  %4123 = vmatpush1.bf16.msra.mxu1 %v9078_v9  ;;  %v9088_v4 = vld [vmem:[#allocation40_spill] sm:$0xff]  ;;  %v9089_v9 = vld [vmem:[#allocation41_spill] sm:$0xff] }
 0x983   :  { %4083 = vmatprep.subr.bf16.mxu0 %v9079_v52  ;;  %4124 = vmatprep.subr.bf16.mxu1 %v9080_v61  ;;  %v9090_v52 = vld [vmem:[#allocation42_spill] sm:$0xff]  ;;  %v9091_v61 = vld [vmem:[#allocation43_spill] sm:$0xff] }
 0x986   :  { %4084 = vmatpush1.bf16.msra.mxu0 %v9081_v11  ;;  %4125 = vmatpush1.bf16.msra.mxu1 %v9082_v60  ;;  %v9092_v11 = vld [vmem:[#allocation44_spill] sm:$0xff]  ;;  %v9093_v60 = vld [vmem:[#allocation45_spill] sm:$0xff] }
 0x987   :  { %4085 = vmatprep.subr.bf16.mxu0 %v9083_v13  ;;  %4126 = vmatprep.subr.bf16.mxu1 %v9084_v1  ;;  %v9094_v13 = vld [vmem:[#allocation46_spill] sm:$0xff]  ;;  %v9095_v1 = vld [vmem:[#allocation47_spill] sm:$0xff] }
 0x98a   :  { %4086 = vmatpush2.bf16.msra.mxu0 %v9085_v23  ;;  %4127 = vmatpush2.bf16.msra.mxu1 %v9086_v41  ;;  %v9096_v23 = vld [vmem:[#allocation48_spill] sm:$0xff]  ;;  %v9097_v41 = vld [vmem:[#allocation49_spill] sm:$0xff] }
 0x98b   :  { %4087 = vmatprep.subr.bf16.mxu0 %v9087_v32  ;;  %4128 = vmatprep.subr.bf16.mxu1 %v9088_v4  ;;  %v9098_v32 = vld [vmem:[#allocation50_spill] sm:$0xff]  ;;  %v9099_v4 = vld [vmem:[#allocation51_spill] sm:$0xff] }
 0x98e   :  { %4088 = vmatpush2.bf16.msra.mxu0 %v9089_v9  ;;  %4129 = vmatpush2.bf16.msra.mxu1 %v9090_v52  ;;  %v9100_v9 = vld [vmem:[#allocation52_spill] sm:$0xff]  ;;  %v9101_v52 = vld [vmem:[#allocation53_spill] sm:$0xff] }
 0x98f   :  { %4089 = vmatprep.subr.bf16.mxu0 %v9091_v61  ;;  %4130 = vmatprep.subr.bf16.mxu1 %v9092_v11  ;;  %v9102_v61 = vld [vmem:[#allocation54_spill] sm:$0xff]  ;;  %v9103_v11 = vld [vmem:[#allocation55_spill] sm:$0xff] }
 0x992   :  { %4090 = vmatpush2.bf16.msra.mxu0 %v9093_v60  ;;  %4131 = vmatpush2.bf16.msra.mxu1 %v9094_v13  ;;  %v9104_v60 = vld [vmem:[#allocation56_spill] sm:$0xff]  ;;  %v9105_v13 = vld [vmem:[#allocation57_spill] sm:$0xff] }
 0x993   :  { %4091 = vmatprep.subr.bf16.mxu0 %v9095_v1  ;;  %4132 = vmatprep.subr.bf16.mxu1 %v9096_v23  ;;  %v9106_v1 = vld [vmem:[#allocation58_spill] sm:$0xff]  ;;  %v9107_v23 = vld [vmem:[#allocation59_spill] sm:$0xff] }
 0x996   :  { %4092 = vmatpush2.bf16.msra.mxu0 %v9097_v41  ;;  %4133 = vmatpush2.bf16.msra.mxu1 %v9098_v32  ;;  %v9108_v41 = vld [vmem:[#allocation60_spill] sm:$0xff]  ;;  %v9109_v32 = vld [vmem:[#allocation61_spill] sm:$0xff] }
 0x997   :  { %4093 = vmatprep.subr.bf16.mxu0 %v9099_v4  ;;  %4134 = vmatprep.subr.bf16.mxu1 %v9100_v9  ;;  %v9110_v4 = vld [vmem:[#allocation62_spill] sm:$0xff]  ;;  %v9111_v9 = vld [vmem:[#allocation63_spill] sm:$0xff] }
 0x99a   :  { %4094 = vmatpush2.bf16.msra.mxu0 %v9101_v52  ;;  %4135 = vmatpush2.bf16.msra.mxu1 %v9102_v61  ;;  %v9112_v52 = vld [vmem:[#allocation64_spill] sm:$0xff]  ;;  %v9113_v61 = vld [vmem:[#allocation65_spill] sm:$0xff] }
 0x99b   :  { %4095 = vmatprep.subr.bf16.mxu0 %v9103_v11  ;;  %4136 = vmatprep.subr.bf16.mxu1 %v9104_v60  ;;  %v9114_v11 = vld [vmem:[#allocation66_spill] sm:$0xff]  ;;  %v9115_v60 = vld [vmem:[#allocation67_spill] sm:$0xff] }
 0x99e   :  { %4096 = vmatpush2.bf16.msra.mxu0 %v9105_v13  ;;  %4137 = vmatpush2.bf16.msra.mxu1 %v9106_v1  ;;  %v9116_v13 = vld [vmem:[#allocation68_spill] sm:$0xff] }
 0x99f   :  { %4097 = vmatprep.subr.bf16.mxu0 %v9107_v23  ;;  %4138 = vmatprep.subr.bf16.mxu1 %v9108_v41 }
 0x9a2   :  { %4098 = vmatpush2.bf16.msra.mxu0 %v9109_v32  ;;  %4139 = vmatpush2.bf16.msra.mxu1 %v9110_v4 }
 0x9a3   :  { %4099 = vmatprep.subr.bf16.mxu0 %v9111_v9  ;;  %4140 = vmatprep.subr.bf16.mxu1 %v9112_v52 }
 0x9a6   :  { %4100 = vmatpush2.bf16.msra.mxu0 %v9113_v61  ;;  %4141 = vmatpush2.bf16.msra.mxu1 %v9114_v11  ;;  %v9120_v11 = vld [vmem:[#allocation153_spill] sm:$0xff] }
 0x9a7   :  { %4151 = vmatprep.subr.bf16.mxu0 %v9115_v60  ;;  %4192 = vmatprep.subr.bf16.mxu1 %v9116_v13 }
 0x9e9   :  { %v3872_v1 = vpop.f32.mrf.mxu0  ;;  %v3913_v23 = vpop.f32.mrf.mxu1 }
 0x9ea   :  { %v4002_v9 = vadd.f32 %v3872_v1, %v9117_v57  ;;  %v4004_v52 = vadd.f32 %v3913_v23, %v9118_v49  ;;  %v9121_v23 = vld [vmem:[#allocation178_spill] sm:$0xff] }
 0x9eb   :  { %v3874_v30 = vpop.f32.mrf.mxu0  ;;  %v3915_v41 = vpop.f32.mrf.mxu1 }
 0x9ec   :  { %v4003_v61 = vadd.f32 %v3874_v30, %v9119_v7  ;;  %v4816_v22 = vmul.f32 -1.442695, %v4002_v9  ;;  %v4005_v19 = vadd.f32 %v3915_v41, %v9120_v11  ;;  %v4818_v60 = vmul.f32 -1.442695, %v4004_v52  ;;  %v9122_v9 = vld [vmem:[#allocation179_spill] sm:$0xff] }
 0x9ed   :  { %v3876_v50 = vpop.f32.mrf.mxu0  ;;  %v3917_v32 = vpop.f32.mrf.mxu1 }
 0x9ee   :  { %v4817_v18 = vmul.f32 -1.442695, %v4003_v61  ;;  %5130 = vpow2.f32 %v4816_v22  ;;  %v4819_v13 = vmul.f32 -1.442695, %v4005_v19  ;;  %v9123_v61 = vld [vmem:[#allocation180_spill] sm:$0xff] }
 0x9ef   :  { %v3877_v37 = vpop.f32.mrf.mxu0  ;;  %v3918_v4 = vpop.f32.mrf.mxu1  ;;  %5132 = vpow2.f32 %v4818_v60  ;;  %v9124_v60 = vld [vmem:[#allocation181_spill] sm:$0xff] }
 0x9f0   :  { %5134 = vpow2.f32 %v4817_v18 }
 0x9f1   :  { %5136 = vpow2.f32 %v4819_v13 }
 0x9fb   :  { %v5131_v50 = vpop.eup %5130 }
 0x9fc   :  { %v5133_v32 = vpop.eup %5132  ;;  %v4028_v4 = vadd.f32 1.0, %v5131_v50 }
 0x9fd   :  { %v5135_v37 = vpop.eup %5134  ;;  %v4030_v57 = vadd.f32 1.0, %v5133_v32 }
 0x9fe   :  { %v5137_v27 = vpop.eup %5136  ;;  %v4029_v1 = vadd.f32 1.0, %v5135_v37  ;;  %5138 = vrcp.f32 %v4028_v4 }
 0x9ff   :  { %v4031_v49 = vadd.f32 1.0, %v5137_v27  ;;  %5140 = vrcp.f32 %v4030_v57 }
 0xa00   :  { %5142 = vrcp.f32 %v4029_v1 }
 0xa0b   :  { %v5139_v57 = vpop.eup %5138 }
 0xa29   :  { %v3954_v7 = vpop.f32.mrf.mxu0  ;;  %v3995_v30 = vpop.f32.mrf.mxu1 }
 0xa2a   :  { %v4006_v41 = vadd.f32 %v3954_v7, %v9121_v23  ;;  %v4008_v22 = vadd.f32 %v3995_v30, %v9122_v9  ;;  %v5141_v7 = vpop.eup %5140 }
 0xa2b   :  { %v3956_v19 = vpop.f32.mrf.mxu0  ;;  %v3997_v18 = vpop.f32.mrf.mxu1 }
 0xa2c   :  { %v4820_v52 = vmul.f32 -1.442695, %v4006_v41  ;;  %5144 = vtanh.f32 %v4008_v22  ;;  %v4007_v11 = vadd.f32 %v3956_v19, %v9123_v61  ;;  %v4009_v13 = vadd.f32 %v3997_v18, %v9124_v60  ;;  %v5143_v1 = vpop.eup %5142 }
 0xa2d   :  { %5146 = vrcp.f32 %v4031_v49  ;;  %v3958_v50 = vpop.f32.mrf.mxu0  ;;  %v3999_v32 = vpop.f32.mrf.mxu1  ;;  %v4048_v41 = vmul.f32 %v5141_v7, %v7753_v33 }
 0xa2e   :  { %5148 = vpow2.f32 %v4820_v52  ;;  %v4821_v27 = vmul.f32 -1.442695, %v4007_v11 }
 0xa2f   :  { %5150 = vtanh.f32 %v4009_v13  ;;  %v3959_v37 = vpop.f32.mrf.mxu0  ;;  %v4000_v4 = vpop.f32.mrf.mxu1 }
 0xa30   :  { %5152 = vpow2.f32 %v4821_v27 }
 0xa39   :  { %v5145_v30 = vpop.eup %5144 }
 0xa3a   :  { %v5147_v23 = vpop.eup %5146  ;;  %v4050_v9 = vmul.f32 %v5145_v30, %v5139_v57 }
 0xa3b   :  { %v5149_v22 = vpop.eup %5148  ;;  %v4049_v52 = vmul.f32 %v5147_v23, %v7757_v45 }
 0xa3c   :  { %v5151_v19 = vpop.eup %5150  ;;  %v4032_v18 = vadd.f32 1.0, %v5149_v22  ;;  %v7903_v49 = vadd.f32 %v4050_v9, %v4048_v41  ;;  %v9146_v41 = vld [vmem:[#allocation154_spill] sm:$0xff]  ;;  %v9147_v22 = vld [vmem:[#allocation155_spill] sm:$0xff] }
 0xa3d   :  { %v5153_v61 = vpop.eup %5152  ;;  %v4051_v11 = vmul.f32 %v5151_v19, %v5143_v1 }
 0xa3e   :  { %5154 = vrcp.f32 %v4032_v18  ;;  %v4033_v60 = vadd.f32 1.0, %v5153_v61  ;;  %v9148_v18 = vld [vmem:[#allocation156_spill] sm:$0xff] }
 0xa3f   :  { %5156 = vtanh.f32 %v7903_v49  ;;  %v7907_v13 = vadd.f32 %v4051_v11, %v4049_v52  ;;  %v9149_v11 = vld [vmem:[#allocation157_spill] sm:$0xff] }
 0xa40   :  { %5158 = vrcp.f32 %v4033_v60 }
 0xa41   :  { %5160 = vtanh.f32 %v7907_v13 }
 0xa4b   :  { %v5155_v33 = vpop.eup %5154 }
 0xa4c   :  { %v5157_v50 = vpop.eup %5156 }
 0xa4d   :  { %v5159_v32 = vpop.eup %5158  ;;  %v4056_v37 = vmul.f32 %v5157_v50, %v5155_v33 }
 0xa4e   :  { %v5161_v27 = vpop.eup %5160 }
 0xa4f   :  { %v4057_v4 = vmul.f32 %v5161_v27, %v5159_v32  ;;  %v7910_v7 = vpack.c.bf16 %v4056_v37, %v4056_v37 }
 0xa51   :  { %v4068_v57 = vpack.c.bf16 %v4057_v4, %v4057_v4 }
 0xa53   :  { %4101 = vmatprep.mubr.bf16.mxu0 %v4068_v57  ;;  %4142 = vmatprep.mubr.bf16.mxu1 %v4068_v57 }
 0xa54   :  { %4102 = vmatmul.mubr.bf16.vlgmr.msra.gmra.mxu0 %v7910_v7  ;;  %4143 = vmatmul.mubr.bf16.vlgmr.msra.gmra.mxu1 %v7910_v7 }
 0xa55   :  { %4152 = vmatpush1.bf16.msra.mxu0 %v6333_v16  ;;  %4193 = vmatpush1.bf16.msra.mxu1 %v8546_v63  ;;  %v9125_v16 = vld [vmem:[#allocation109_spill] sm:$0xff]  ;;  %v9126_v63 = vld [vmem:[#allocation110_spill] sm:$0xff] }
 0xa56   :  { %4183 = vmatprep.mubr.bf16.mxu0 %v4068_v57  ;;  %4224 = vmatprep.mubr.bf16.mxu1 %v4068_v57 }
 0xa57   :  { %4153 = vmatprep.subr.bf16.mxu0 %v8547_v24  ;;  %4194 = vmatprep.subr.bf16.mxu1 %v8548_v62  ;;  %v9127_v24 = vld [vmem:[#allocation111_spill] sm:$0xff]  ;;  %v9128_v62 = vld [vmem:[#allocation112_spill] sm:$0xff] }
 0xa59   :  { %4154 = vmatpush1.bf16.msra.mxu0 %v8549_v44  ;;  %4195 = vmatpush1.bf16.msra.mxu1 %v8550_v38  ;;  %v9129_v44 = vld [vmem:[#allocation113_spill] sm:$0xff]  ;;  %v9130_v38 = vld [vmem:[#allocation114_spill] sm:$0xff] }
 0xa5a   :  { %4155 = vmatprep.subr.bf16.mxu0 %v8551_v55  ;;  %4196 = vmatprep.subr.bf16.mxu1 %v8552_v53  ;;  %v9131_v55 = vld [vmem:[#allocation115_spill] sm:$0xff]  ;;  %v9132_v53 = vld [vmem:[#allocation116_spill] sm:$0xff] }
 0xa5d   :  { %4156 = vmatpush1.bf16.msra.mxu0 %v8553_v21  ;;  %4197 = vmatpush1.bf16.msra.mxu1 %v8554_v42  ;;  %v9133_v21 = vld [vmem:[#allocation117_spill] sm:$0xff]  ;;  %v9134_v42 = vld [vmem:[#allocation118_spill] sm:$0xff] }
 0xa5e   :  { %4157 = vmatprep.subr.bf16.mxu0 %v8555_v54  ;;  %4198 = vmatprep.subr.bf16.mxu1 %v8556_v51  ;;  %v9135_v54 = vld [vmem:[#allocation119_spill] sm:$0xff]  ;;  %v9136_v51 = vld [vmem:[#allocation120_spill] sm:$0xff] }
 0xa61   :  { %4158 = vmatpush1.bf16.msra.mxu0 %v8557_v28  ;;  %4199 = vmatpush1.bf16.msra.mxu1 %v8558_v40  ;;  %v9137_v28 = vld [vmem:[#allocation121_spill] sm:$0xff]  ;;  %v9138_v40 = vld [vmem:[#allocation122_spill] sm:$0xff] }
 0xa62   :  { %4159 = vmatprep.subr.bf16.mxu0 %v8559_v14  ;;  %4200 = vmatprep.subr.bf16.mxu1 %v8560_v17  ;;  %v9139_v14 = vld [vmem:[#allocation123_spill] sm:$0xff]  ;;  %v9140_v17 = vld [vmem:[#allocation124_spill] sm:$0xff] }
 0xa65   :  { %4160 = vmatpush1.bf16.msra.mxu0 %v8561_v31  ;;  %4201 = vmatpush1.bf16.msra.mxu1 %v8562_v15  ;;  %v9141_v31 = vld [vmem:[#allocation125_spill] sm:$0xff]  ;;  %v9142_v15 = vld [vmem:[#allocation126_spill] sm:$0xff] }
 0xa66   :  { %4161 = vmatprep.subr.bf16.mxu0 %v8563_v58  ;;  %4202 = vmatprep.subr.bf16.mxu1 %v8650_v48  ;;  %v9143_v58 = vld [vmem:[#allocation127_spill] sm:$0xff]  ;;  %v9144_v48 = vld [vmem:[#allocation128_spill] sm:$0xff] }
 0xa69   :  { %4162 = vmatpush1.bf16.msra.mxu0 %v8651_v20  ;;  %4203 = vmatpush1.bf16.msra.mxu1 %v8652_v59  ;;  %v9145_v20 = vld [vmem:[#allocation129_spill] sm:$0xff]  ;;  %v4922_v59 = vld [vmem:[%s8064_s10 + $0x78] sm:$0xff]  }
 0xa6a   :  { %4163 = vmatprep.subr.bf16.mxu0 %v8653_v2  ;;  %4204 = vmatprep.subr.bf16.mxu1 %v8654_v3  ;;  %v4923_v2 = vld [vmem:[%s8064_s10 + $0x38] sm:$0xff]   ;;  %v4924_v3 = vld [vmem:[%s8064_s10 + $0x70] sm:$0xff]  }
 0xa6d   :  { %4164 = vmatpush1.bf16.msra.mxu0 %v8655_v10  ;;  %4205 = vmatpush1.bf16.msra.mxu1 %v8656_v36  ;;  %v4925_v10 = vld [vmem:[%s8064_s10 + $0x30] sm:$0xff]   ;;  %v4926_v36 = vld [vmem:[%s8064_s10 + $0x68] sm:$0xff]  }
 0xa6e   :  { %4165 = vmatprep.subr.bf16.mxu0 %v8657_v5  ;;  %4206 = vmatprep.subr.bf16.mxu1 %v8658_v35  ;;  %v4927_v5 = vld [vmem:[%s8064_s10 + $0x28] sm:$0xff]   ;;  %v4928_v35 = vld [vmem:[%s8064_s10 + $0x60] sm:$0xff]  }
 0xa71   :  { %4166 = vmatpush1.bf16.msra.mxu0 %v8745_v43  ;;  %4207 = vmatpush1.bf16.msra.mxu1 %v8746_v0  ;;  %v4936_v43 = vld [vmem:[%s8064_s10 + $0x40] sm:$0xff]  }
 0xa72   :  { %4167 = vmatprep.subr.bf16.mxu0 %v8747_v8  ;;  %4208 = vmatprep.subr.bf16.mxu1 %v8662_v12  ;;  %v4929_v12 = vld [vmem:[%s8064_s10 + $0x20] sm:$0xff]  }
 0xa73   :  { %v4937_v0 = vld [vmem:[%s8064_s10] sm:$0xff]  }
 0xa75   :  { %4168 = vmatpush2.bf16.msra.mxu0 %v8663_v39  ;;  %4209 = vmatpush2.bf16.msra.mxu1 %v8664_v56  ;;  %v4930_v39 = vld [vmem:[%s8064_s10 + $0x58] sm:$0xff]  }
 0xa76   :  { %4169 = vmatprep.subr.bf16.mxu0 %v8665_v6  ;;  %4210 = vmatprep.subr.bf16.mxu1 %v8666_v34  ;;  %v4931_v56 = vld [vmem:[%s8064_s10 + $0x18] sm:$0xff]   ;;  %v4932_v6 = vld [vmem:[%s8064_s10 + $0x50] sm:$0xff]  }
 0xa77   :  { %v4933_v34 = vld [vmem:[%s8064_s10 + $0x10] sm:$0xff]  }
 0xa79   :  { %4170 = vmatpush2.bf16.msra.mxu0 %v8667_v46  ;;  %4211 = vmatpush2.bf16.msra.mxu1 %v8668_v47  ;;  %v4934_v46 = vld [vmem:[%s8064_s10 + $0x48] sm:$0xff]  }
 0xa7a   :  { %4171 = vmatprep.subr.bf16.mxu0 %v8748_v29  ;;  %4212 = vmatprep.subr.bf16.mxu1 %v8749_v25  ;;  %v4935_v47 = vld [vmem:[%s8064_s10 + $0x8] sm:$0xff]  }
 0xa7d   :  { %4172 = vmatpush2.bf16.msra.mxu0 %v8750_v26  ;;  %4213 = vmatpush2.bf16.msra.mxu1 %v9125_v16 }
 0xa7e   :  { %4173 = vmatprep.subr.bf16.mxu0 %v9126_v63  ;;  %4214 = vmatprep.subr.bf16.mxu1 %v9127_v24 }
 0xa81   :  { %4174 = vmatpush2.bf16.msra.mxu0 %v9128_v62  ;;  %4215 = vmatpush2.bf16.msra.mxu1 %v9129_v44 }
 0xa82   :  { %4175 = vmatprep.subr.bf16.mxu0 %v9130_v38  ;;  %4216 = vmatprep.subr.bf16.mxu1 %v9131_v55  ;;  %v9150_v38 = vld [vmem:[#allocation182_spill] sm:$0xff] }
 0xa85   :  { %4176 = vmatpush2.bf16.msra.mxu0 %v9132_v53  ;;  %4217 = vmatpush2.bf16.msra.mxu1 %v9133_v21  ;;  %v9151_v53 = vld [vmem:[#allocation183_spill] sm:$0xff] }
 0xa86   :  { %4177 = vmatprep.subr.bf16.mxu0 %v9134_v42  ;;  %4218 = vmatprep.subr.bf16.mxu1 %v9135_v54 }
 0xa89   :  { %4178 = vmatpush2.bf16.msra.mxu0 %v9136_v51  ;;  %4219 = vmatpush2.bf16.msra.mxu1 %v9137_v28  ;;  %v9152_v28 = vld [vmem:[#allocation184_spill] sm:$0xff] }
 0xa8a   :  { %4179 = vmatprep.subr.bf16.mxu0 %v9138_v40  ;;  %4220 = vmatprep.subr.bf16.mxu1 %v9139_v14  ;;  %v9153_v14 = vld [vmem:[#allocation185_spill] sm:$0xff] }
 0xa8d   :  { %4180 = vmatpush2.bf16.msra.mxu0 %v9140_v17  ;;  %4221 = vmatpush2.bf16.msra.mxu1 %v9141_v31 }
 0xa8e   :  { %4181 = vmatprep.subr.bf16.mxu0 %v9142_v15  ;;  %4222 = vmatprep.subr.bf16.mxu1 %v9143_v58 }
 0xa91   :  { %4182 = vmatpush2.bf16.msra.mxu0 %v9144_v48  ;;  %4223 = vmatpush2.bf16.msra.mxu1 %v9145_v20 }
 0xa92   :  { %4845 = vmatprep.subr.bf16.mxu0 %v4922_v59 }
 0xa94   :  { %4184 = vmatmul.mubr.bf16.vlgmr.msra.gmra.mxu0 %v7910_v7  ;;  %4225 = vmatmul.mubr.bf16.vlgmr.msra.gmra.mxu1 %v7910_v7 }
 0xa95   :  { %4846 = vmatpush3.bf16.msra.mxu0 %v4923_v2 }
 0xa96   :  { %4847 = vmatprep.subr.bf16.mxu0 %v4924_v3 }
 0xa99   :  { %4848 = vmatpush3.bf16.msra.mxu0 %v4925_v10 }
 0xa9a   :  { %4849 = vmatprep.subr.bf16.mxu0 %v4926_v36 }
 0xa9d   :  { %4850 = vmatpush3.bf16.msra.mxu0 %v4927_v5 }
 0xa9e   :  { %4851 = vmatprep.subr.bf16.mxu0 %v4928_v35 }
 0xaa1   :  { %4852 = vmatpush3.bf16.msra.mxu0 %v4929_v12 }
 0xaa2   :  { %4853 = vmatprep.subr.bf16.mxu0 %v4930_v39 }
 0xaa5   :  { %4854 = vmatpush3.bf16.msra.mxu0 %v4931_v56 }
 0xaa6   :  { %4855 = vmatprep.subr.bf16.mxu0 %v4932_v6 }
 0xaa9   :  { %4856 = vmatpush3.bf16.msra.mxu0 %v4933_v34 }
 0xaaa   :  { %4857 = vmatprep.subr.bf16.mxu0 %v4934_v46 }
 0xaad   :  { %4858 = vmatpush3.bf16.msra.mxu0 %v4935_v47 }
 0xaae   :  { %4859 = vmatprep.subr.bf16.mxu0 %v4936_v43 }
 0xab1   :  { %4860 = vmatpush3.bf16.msra.mxu0 %v4937_v0 }
 0xb14   :  { %v4103_v8 = vpop.f32.mrf.mxu0  ;;  %v4144_v29 = vpop.f32.mrf.mxu1 }
 0xb15   :  { %v4233_v9 = vadd.f32 %v4103_v8, %v9146_v41  ;;  %v4235_v19 = vadd.f32 %v4144_v29, %v9147_v22 }
 0xb16   :  { %v4105_v25 = vpop.f32.mrf.mxu0  ;;  %v4146_v26 = vpop.f32.mrf.mxu1 }
 0xb17   :  { %v4234_v61 = vadd.f32 %v4105_v25, %v9148_v18  ;;  %v4822_v52 = vmul.f32 -1.442695, %v4233_v9  ;;  %v4236_v60 = vadd.f32 %v4146_v26, %v9149_v11  ;;  %v4824_v33 = vmul.f32 -1.442695, %v4235_v19 }
 0xb18   :  { %v4107_v45 = vpop.f32.mrf.mxu0  ;;  %v4148_v1 = vpop.f32.mrf.mxu1 }
 0xb19   :  { %v4823_v50 = vmul.f32 -1.442695, %v4234_v61  ;;  %5162 = vpow2.f32 %v4822_v52  ;;  %v4825_v32 = vmul.f32 -1.442695, %v4236_v60 }
 0xb1a   :  { %v4108_v30 = vpop.f32.mrf.mxu0  ;;  %v4149_v23 = vpop.f32.mrf.mxu1  ;;  %5164 = vpow2.f32 %v4824_v33 }
 0xb1b   :  { %5166 = vpow2.f32 %v4823_v50  ;;  %v4828_v23 = vld [vmem:[%s8067_s11] ss:$0 sm:$0xff] }
 0xb1c   :  { %5168 = vpow2.f32 %v4825_v32 }
 0xb26   :  { %v5163_v27 = vpop.eup %5162 }
 0xb27   :  { %v5165_v37 = vpop.eup %5164  ;;  %v4259_v57 = vadd.f32 1.0, %v5163_v27 }
 0xb28   :  { %v5167_v4 = vpop.eup %5166  ;;  %v4261_v16 = vadd.f32 1.0, %v5165_v37 }
 0xb29   :  { %v5169_v7 = vpop.eup %5168  ;;  %v4260_v63 = vadd.f32 1.0, %v5167_v4  ;;  %5170 = vrcp.f32 %v4259_v57 }
 0xb2a   :  { %v4262_v24 = vadd.f32 1.0, %v5169_v7  ;;  %5172 = vrcp.f32 %v4261_v16 }
 0xb2b   :  { %5174 = vrcp.f32 %v4260_v63 }
 0xb36   :  { %v5171_v59 = vpop.eup %5170 }
 0xb37   :  { %v5173_v2 = vpop.eup %5172 }
 0xb38   :  { %v5175_v3 = vpop.eup %5174  ;;  %v4279_v5 = vmul.f32 %v5173_v2, %v7903_v49 }
 0xb54   :  { %v4185_v62 = vpop.f32.mrf.mxu0  ;;  %v4226_v44 = vpop.f32.mrf.mxu1 }
 0xb55   :  { %v4237_v55 = vadd.f32 %v4185_v62, %v9150_v38  ;;  %v4239_v21 = vadd.f32 %v4226_v44, %v9151_v53 }
 0xb56   :  { %v4187_v42 = vpop.f32.mrf.mxu0  ;;  %v4228_v54 = vpop.f32.mrf.mxu1 }
 0xb57   :  { %v4826_v51 = vmul.f32 -1.442695, %v4237_v55  ;;  %5176 = vtanh.f32 %v4239_v21  ;;  %v4238_v40 = vadd.f32 %v4187_v42, %v9152_v28  ;;  %v4240_v17 = vadd.f32 %v4228_v54, %v9153_v14 }
 0xb58   :  { %5178 = vrcp.f32 %v4262_v24  ;;  %v4189_v31 = vpop.f32.mrf.mxu0  ;;  %v4230_v15 = vpop.f32.mrf.mxu1 }
 0xb59   :  { %5180 = vpow2.f32 %v4826_v51  ;;  %v4827_v58 = vmul.f32 -1.442695, %v4238_v40 }
 0xb5a   :  { %5182 = vtanh.f32 %v4240_v17  ;;  %v4190_v48 = vpop.f32.mrf.mxu0  ;;  %v4231_v20 = vpop.f32.mrf.mxu1 }
 0xb5b   :  { %5184 = vpow2.f32 %v4827_v58 }
 0xb64   :  { %v5177_v10 = vpop.eup %5176 }
 0xb65   :  { %v5179_v36 = vpop.eup %5178  ;;  %v4281_v35 = vmul.f32 %v5177_v10, %v5171_v59 }
 0xb66   :  { %v5181_v12 = vpop.eup %5180  ;;  %v4280_v46 = vmul.f32 %v5179_v36, %v7907_v13 }
 0xb67   :  { %v5183_v39 = vpop.eup %5182  ;;  %v4263_v56 = vadd.f32 1.0, %v5181_v12  ;;  %v4283_v6 = vadd.f32 %v4281_v35, %v4279_v5 }
 0xb68   :  { %v5185_v34 = vpop.eup %5184  ;;  %v4282_v47 = vmul.f32 %v5183_v39, %v5175_v3 }
 0xb69   :  { %5186 = vrcp.f32 %v4263_v56  ;;  %4291 = vst [vmem:[%s8065_s14] sm:$0xff] %v4283_v6  ;;  %v4264_v43 = vadd.f32 1.0, %v5185_v34 }
 0xb6a   :  { %5188 = vtanh.f32 %v4283_v6  ;;  %v4284_v0 = vadd.f32 %v4282_v47, %v4280_v46 }
 0xb6b   :  { %5190 = vrcp.f32 %v4264_v43 }
 0xb6c   :  { %5192 = vtanh.f32 %v4284_v0  ;;  %4292 = vst [vmem:[%s8065_s14 + $0x8] sm:$0xff] %v4284_v0 }
 0xb76   :  { %v5187_v49 = vpop.eup %5186 }
 0xb77   :  { %v5189_v8 = vpop.eup %5188 }
 0xb78   :  { %v5191_v29 = vpop.eup %5190  ;;  %v4287_v25 = vmul.f32 %v5189_v8, %v5187_v49 }
 0xb79   :  { %v5193_v13 = vpop.eup %5192 }
 0xb7a   :  { %v4288_v26 = vmul.f32 %v5193_v13, %v5191_v29  ;;  %4289 = vst [vmem:[%s8066_s13] sm:$0xff] %v4287_v25  ;;  %v4293_v1 = vpack.c.bf16 %v4287_v25, %v4287_v25 }
 0xb7c   :  { %4290 = vst [vmem:[%s8066_s13 + $0x8] sm:$0xff] %v4288_v26  ;;  %v4294_v45 = vpack.c.bf16 %v4288_v26, %v4288_v26 }
 0xb7e   :  { %4462 = vmatprep.mubr.bf16.mxu0 %v4294_v45 }
 0xb7f   :  { %4463 = vmatmul.mubr.bf16.vlgmr.msra.gmra.mxu0 %v4293_v1 }
 0xc3f   :  { %v4861_v30 = vpop.f32.mrf.mxu0 }
 0xc41   :  { %v4862_v41 = vpop.f32.mrf.mxu0 }
 0xc42   :  { %v4863_v9 = vadd.f32 %v4862_v41, %v4861_v30 }
 0xc43   :  { %v4864_v22 = vpop.f32.mrf.mxu0 }
 0xc44   :  { %v4465_v19 = vadd.f32 %v4863_v9, %v4828_v23 }
 0xc45   :  { %v4865_v18 = vpop.f32.mrf.mxu0 }
 0xc46   :  { %5194 = vtanh.f32 %v4465_v19 }
 0xc53   :  { %v5195_v61 = vpop.eup %5194 }
 0xc54   :  { %4471 = vst [vmem:[%s8068_s12] sm:$0xff] %v5195_v61 }

</bundles_post_ra>
